<compile_context>
chip_gen: v7x
topology: tpu7x:2x2x1
jax: 0.10.0
libtpu: 0.0.40
codegen_flags: <defaults>
</compile_context>

<pallas_src>
import jax
import jax.numpy as jnp
import numpy as np
from jax.experimental import pallas as pl
from jax.experimental.pallas import tpu as pltpu

EMB = 768          # EMB_SIZE hardcoded in the module
XDIM = 6           # numeric feature width (input_dim = 6 + EMB_SIZE)
NHEADS = 2         # default nheads
DH = EMB // NHEADS  # 384 per-head dim
REPR_HIDDEN = 256  # repr_layers = [256] (then +[768] appended by the module)
REG_HIDDEN = 64    # regressor_layers = [64]
OUT_PAD = 128      # lane-padded output width (cols 0:5 valid)
LN_EPS = 1e-5

# column offsets inside the 1536-wide small slab / fused layouts
C1 = EMB                       # 768   : end of wk block
C2 = EMB + REPR_HIDDEN         # 1024  : end of w1x / b2 block
C3 = C2 + 2 * REG_HIDDEN       # 1152  : end of fused regressor-1 block
C4 = C3 + OUT_PAD              # 1280  : end of fused regressor-2 bias block


def fnv_kernel(tf_ref, x_ref, wqv_ref, small_ref,
               wo_hbm, w1t_hbm, w2_hbm, wr1t_hbm, wr2_hbm,
               out_ref,
               wo_buf, w1t_buf, w2_buf, wr1t_buf, wr2_buf, dma_sems):
    f32 = jnp.float32
    bf16 = jnp.bfloat16

    # ---- issue manual DMAs for the later-layer weights (overlap with the
    # QV projection / attention / LayerNorm compute; waited right before use)
    cp_wo = pltpu.make_async_copy(wo_hbm, wo_buf, dma_sems.at[0])
    cp_w1 = pltpu.make_async_copy(w1t_hbm, w1t_buf, dma_sems.at[1])
    cp_w2 = pltpu.make_async_copy(w2_hbm, w2_buf, dma_sems.at[2])
    cp_r1 = pltpu.make_async_copy(wr1t_hbm, wr1t_buf, dma_sems.at[3])
    cp_r2 = pltpu.make_async_copy(wr2_hbm, wr2_buf, dma_sems.at[4])
    cp_wo.start()
    cp_w1.start()
    cp_w2.start()
    cp_r1.start()
    cp_r2.start()

    tf = tf_ref[...]   # [B, 768] f32
    x = x_ref[...]     # [B, 8]   f32 (cols 6,7 are zero padding)

    # ---- AttentiveEmbedding: MHA(query=tf, key=x, value=tf), 2 heads ----
    # fused Q||V projection (1/sqrt(head_dim) already folded into the Q half)
    qv = (jnp.dot(tf.astype(bf16), wqv_ref[...], preferred_element_type=f32)
          + small_ref[8:9, :])                                      # [B, 1536]
    q = qv[:, :EMB]
    v = qv[:, EMB:]
    # x-side K projection computed lazily (K=8 matmul is essentially free)
    k = (jnp.dot(x, small_ref[0:8, 0:EMB], preferred_element_type=f32)
         + small_ref[9:10, 0:EMB])                                  # [B, 768]

    heads = []
    for h in range(NHEADS):
        qh = q[:, h * DH:(h + 1) * DH]
        kh = k[:, h * DH:(h + 1) * DH]
        vh = v[:, h * DH:(h + 1) * DH]
        # scores over the (unbatched) "sequence" = batch dim -> [B, B]
        s = jax.lax.dot_general(qh, kh, (((1,), (1,)), ((), ())),
                                preferred_element_type=f32)
        s = s - jnp.max(s, axis=-1, keepdims=True)
        p = jnp.exp(s)
        p = p / jnp.sum(p, axis=-1, keepdims=True)   # exact; EUP/VPU idle anyway
        heads.append(jnp.dot(p, vh, preferred_element_type=f32))

    # output projection as two 384-row blocks (no materialized head concat)
    cp_wo.wait()
    attn = (jnp.dot(heads[0].astype(bf16), wo_buf[0:DH, :],
                    preferred_element_type=f32)
            + jnp.dot(heads[1].astype(bf16), wo_buf[DH:, :],
                      preferred_element_type=f32)
            + small_ref[9:10, EMB:])
    # attn_dropout: identity in eval mode

    # residual + LayerNorm(768)
    y = tf + attn
    mu = jnp.mean(y, axis=-1, keepdims=True)
    var = jnp.mean((y - mu) * (y - mu), axis=-1, keepdims=True)
    tf2 = ((y - mu) * jax.lax.rsqrt(var + LN_EPS) * small_ref[10:11, 0:EMB]
           + small_ref[10:11, EMB:])

    # ---- repr_enricher MLP: cat([tf2, x]) -> 256 -> ReLU -> 768 -> ReLU ----
    cp_w1.wait()
    h1 = jnp.maximum(
        jnp.dot(tf2.astype(bf16), w1t_buf[...], preferred_element_type=f32)
        + jnp.dot(x, small_ref[0:8, C1:C2], preferred_element_type=f32)
        + small_ref[11:12, 0:REPR_HIDDEN], 0.0)
    cp_w2.wait()
    tf3 = jnp.maximum(
        jnp.dot(h1.astype(bf16), w2_buf[...], preferred_element_type=f32)
        + small_ref[11:12, REPR_HIDDEN:C2], 0.0)

    # ---- fused regressor first layers: cat([tf3, x]) -> [he(64) | hp(64)] ----
    cp_r1.wait()
    hreg = jnp.maximum(
        jnp.dot(tf3.astype(bf16), wr1t_buf[...], preferred_element_type=f32)
        + jnp.dot(x, small_ref[0:8, C2:C3], preferred_element_type=f32)
        + small_ref[11:12, C2:C3], 0.0)                             # [B, 128]

    # ---- fused (block-diag, lane-padded) second layers -> [B, 128] ----
    # cols 0:2 = en, cols 2:5 = prot, cols 5:128 = relu(0) = 0
    cp_r2.wait()
    out = jnp.maximum(
        jnp.dot(hreg.astype(bf16), wr2_buf[...], preferred_element_type=f32)
        + small_ref[11:12, C3:C4], 0.0)
    out_ref[...] = out


def fnv_forward(text_features, x, packed):
    wqv, wo, w1t, w2, wr1t, wr2, small = packed
    B = text_features.shape[0]
    x8 = jnp.pad(x, ((0, 0), (0, 8 - XDIM)))   # layout plumbing only
    vmem = pl.BlockSpec(memory_space=pltpu.MemorySpace.VMEM)
    hbm = pl.BlockSpec(memory_space=pl.ANY)

    flops = 2 * B * (EMB * 2 * EMB          # QV projection
                     + 2 * B * EMB          # attention scores + PV
                     + EMB * EMB            # output projection
                     + EMB * REPR_HIDDEN + REPR_HIDDEN * EMB
                     + EMB * 2 * REG_HIDDEN + 2 * REG_HIDDEN * OUT_PAD)
    bytes_accessed = ((wqv.size + wo.size + w1t.size + w2.size
                       + wr1t.size + wr2.size) * 2
                      + small.size * 4 + text_features.size * 4
                      + B * OUT_PAD * 4)

    out = pl.pallas_call(
        fnv_kernel,
        out_shape=jax.ShapeDtypeStruct((B, OUT_PAD), jnp.float32),
        in_specs=[vmem, vmem, vmem, vmem, hbm, hbm, hbm, hbm, hbm],
        out_specs=vmem,
        scratch_shapes=[
            pltpu.VMEM((EMB, EMB), jnp.bfloat16),            # wo
            pltpu.VMEM((EMB, REPR_HIDDEN), jnp.bfloat16),    # w1t
            pltpu.VMEM((REPR_HIDDEN, EMB), jnp.bfloat16),    # w2
            pltpu.VMEM((EMB, 2 * REG_HIDDEN), jnp.bfloat16), # wr1t
            pltpu.VMEM((2 * REG_HIDDEN, OUT_PAD), jnp.bfloat16),  # wr2
            pltpu.SemaphoreType.DMA((5,)),
        ],
        compiler_params=pltpu.CompilerParams(
            vmem_limit_bytes=12 * 1024 * 1024),
        cost_estimate=pl.CostEstimate(
            flops=int(flops),
            transcendentals=int(2 * B * B + 2 * B),
            bytes_accessed=int(bytes_accessed)),
    )(text_features, x8, wqv, small, wo, w1t, w2, wr1t, wr2)
    # torch: output = torch.cat((en_output, prot_output), dim=1) -> cols 0:5
    return out[:, :5]


def _bf16rt(w):
    # round-trip through bf16 so the kernel's bf16 weights hold EXACTLY the
    # same values the f32 reference uses
    return w.astype(jnp.bfloat16).astype(jnp.float32)


def init_params(key):
    ks = iter(jax.random.split(key, 24))

    def w(fan_in, fan_out, rt=False):   # kaiming-normal-ish, deterministic
        wt = jax.random.normal(next(ks), (fan_in, fan_out), jnp.float32) \
            * (2.0 / fan_in) ** 0.5
        return _bf16rt(wt) if rt else wt

    def b(n):
        return jax.random.normal(next(ks), (1, n), jnp.float32) * 0.1

    wq, bq = w(EMB, EMB, rt=True), b(EMB)
    wk, bk = w(XDIM, EMB), b(EMB)
    wv, bv = w(EMB, EMB, rt=True), b(EMB)
    wo, bo = w(EMB, EMB, rt=True), b(EMB)
    ln_g = jnp.ones((1, EMB), jnp.float32)
    ln_b = jnp.zeros((1, EMB), jnp.float32)
    w1t, w1x, b1 = w(EMB, REPR_HIDDEN, rt=True), w(XDIM, REPR_HIDDEN), b(REPR_HIDDEN)
    w2, b2 = w(REPR_HIDDEN, EMB, rt=True), b(EMB)
    wp1t, wp1x, bp1 = w(EMB, REG_HIDDEN, rt=True), w(XDIM, REG_HIDDEN), b(REG_HIDDEN)
    wp2, bp2 = w(REG_HIDDEN, 3, rt=True), b(3)
    we1t, we1x, be1 = w(EMB, REG_HIDDEN, rt=True), w(XDIM, REG_HIDDEN), b(REG_HIDDEN)
    we2, be2 = w(REG_HIDDEN, 2, rt=True), b(2)
    return (wq, bq, wk, bk, wv, bv, wo, bo, ln_g, ln_b,
            w1t, w1x, b1, w2, b2,
            wp1t, wp1x, bp1, wp2, bp2,
            we1t, we1x, be1, we2, be2)


def pack_params(params):
    """Host/XLA-side one-time repack: bf16 big weights, fused layouts, one
    f32 slab for all the tiny parameters."""
    (wq, bq, wk, bk, wv, bv, wo, bo, ln_g, ln_b,
     w1t, w1x, b1, w2, b2,
     wp1t, wp1x, bp1, wp2, bp2,
     we1t, we1x, be1, we2, be2) = params
    bf16 = jnp.bfloat16
    scale = 1.0 / (DH ** 0.5)

    # fused Q||V projection, attention scale folded into the Q half
    w_qv = jnp.concatenate([wq * scale, wv], axis=1).astype(bf16)    # [768,1536]
    wo_b = wo.astype(bf16)                                           # [768, 768]
    w1t_b = w1t.astype(bf16)                                         # [768, 256]
    w2_b = w2.astype(bf16)                                           # [256, 768]
    # fused regressor first layers: cols 0:64 -> en branch, 64:128 -> prot
    wr1t = jnp.concatenate([we1t, wp1t], axis=1).astype(bf16)        # [768, 128]
    # fused, lane-padded block-diagonal second layers: cols 0:2 en, 2:5 prot
    wr2 = jnp.zeros((2 * REG_HIDDEN, OUT_PAD), jnp.float32)
    wr2 = wr2.at[:REG_HIDDEN, 0:2].set(we2)
    wr2 = wr2.at[REG_HIDDEN:, 2:5].set(wp2)
    wr2 = wr2.astype(bf16)                                           # [128, 128]

    # one f32 slab for every tiny parameter -> single DMA
    small = jnp.zeros((16, 2 * EMB), jnp.float32)
    # rows 0:8 (rows 6,7 zero): x-side weights [wk | w1x | we1x|wp1x]
    small = small.at[0:XDIM, 0:EMB].set(wk)
    small = small.at[0:XDIM, C1:C2].set(w1x)
    small = small.at[0:XDIM, C2:C3].set(jnp.concatenate([we1x, wp1x], axis=1))
    # bias / LN rows
    small = small.at[8, 0:EMB].set(bq[0] * scale)
    small = small.at[8, EMB:].set(bv[0])
    small = small.at[9, 0:EMB].set(bk[0])
    small = small.at[9, EMB:].set(bo[0])
    small = small.at[10, 0:EMB].set(ln_g[0])
    small = small.at[10, EMB:].set(ln_b[0])
    small = small.at[11, 0:REPR_HIDDEN].set(b1[0])
    small = small.at[11, REPR_HIDDEN:C2].set(b2[0])
    small = small.at[11, C2:C3].set(jnp.concatenate([be1, bp1], axis=1)[0])
    small = small.at[11, C3:C3 + 2].set(be2[0])
    small = small.at[11, C3 + 2:C3 + 5].set(bp2[0])
    return (w_qv, wo_b, w1t_b, w2_b, wr1t, wr2, small)


def fnv_reference(text_features, x, params):
    """Pure-JAX f32 reference of the PyTorch forward (eval mode)."""
    (wq, bq, wk, bk, wv, bv, wo, bo, ln_g, ln_b,
     w1t, w1x, b1, w2, b2,
     wp1t, wp1x, bp1, wp2, bp2,
     we1t, we1x, be1, we2, be2) = params
    tf = text_features
    q = tf @ wq + bq
    k = x @ wk + bk
    v = tf @ wv + bv
    scale = 1.0 / (DH ** 0.5)
    outs = []
    for h in range(NHEADS):
        qh = q[:, h * DH:(h + 1) * DH] * scale
        kh = k[:, h * DH:(h + 1) * DH]
        vh = v[:, h * DH:(h + 1) * DH]
        outs.append(jax.nn.softmax(qh @ kh.T, axis=-1) @ vh)
    attn = jnp.concatenate(outs, axis=-1) @ wo + bo
    y = tf + attn
    mu = jnp.mean(y, axis=-1, keepdims=True)
    var = jnp.mean((y - mu) ** 2, axis=-1, keepdims=True)
    tf2 = (y - mu) / jnp.sqrt(var + LN_EPS) * ln_g + ln_b
    cat1 = jnp.concatenate([tf2, x], axis=1)
    w1 = jnp.concatenate([w1t, w1x], axis=0)
    h1 = jax.nn.relu(cat1 @ w1 + b1)
    tf3 = jax.nn.relu(h1 @ w2 + b2)
    cat2 = jnp.concatenate([tf3, x], axis=1)
    wp1 = jnp.concatenate([wp1t, wp1x], axis=0)
    we1 = jnp.concatenate([we1t, we1x], axis=0)
    prot = jax.nn.relu(jax.nn.relu(cat2 @ wp1 + bp1) @ wp2 + bp2)
    en = jax.nn.relu(jax.nn.relu(cat2 @ we1 + be1) @ we2 + be2)
    return jnp.concatenate([en, prot], axis=1)


if __name__ == "__main__":
    key = jax.random.PRNGKey(0)
    k_tf, k_x, k_p = jax.random.split(key, 3)
    B = 8
    # text_features: pooled LLM output ([B, 768]); x: 6 numeric features
    text_features = jax.random.normal(k_tf, (B, EMB), jnp.float32)
    x = jax.random.normal(k_x, (B, XDIM), jnp.float32)
    params = init_params(k_p)
    packed = pack_params(params)

    out = jax.block_until_ready(fnv_forward(text_features, x, packed))
    assert out.shape == (B, 5), out.shape

    with jax.default_matmul_precision("highest"):
        ref = fnv_reference(text_features, x, params)
    np.testing.assert_allclose(np.asarray(out), np.asarray(ref),
                               rtol=2e-2, atol=2e-2)

    print("KERNEL_OK")
</pallas_src>

<mosaic_0001>
module attributes {stable_mosaic.version = 11 : i64} {
  func.func @fnv_kernel(%arg0: memref<8x768xf32, #tpu.memory_space<vmem>>, %arg1: memref<8x8xf32, #tpu.memory_space<vmem>>, %arg2: memref<768x1536xbf16, #tpu.memory_space<vmem>>, %arg3: memref<16x1536xf32, #tpu.memory_space<vmem>>, %arg4: memref<768x768xbf16, #tpu.memory_space<any>>, %arg5: memref<768x256xbf16, #tpu.memory_space<any>>, %arg6: memref<256x768xbf16, #tpu.memory_space<any>>, %arg7: memref<768x128xbf16, #tpu.memory_space<any>>, %arg8: memref<128x128xbf16, #tpu.memory_space<any>>, %arg9: memref<8x128xf32, #tpu.memory_space<vmem>>, %arg10: memref<768x768xbf16, #tpu.memory_space<vmem>>, %arg11: memref<768x256xbf16, #tpu.memory_space<vmem>>, %arg12: memref<256x768xbf16, #tpu.memory_space<vmem>>, %arg13: memref<768x128xbf16, #tpu.memory_space<vmem>>, %arg14: memref<128x128xbf16, #tpu.memory_space<vmem>>, %arg15: memref<5x!tpu.dma_semaphore, #tpu.memory_space<semaphore_mem>>) attributes {dimension_semantics = [], scalar_prefetch = 0 : i64, scratch_operands = 6 : i64, tpu.core_type = #tpu.core_type<tc>} {
    %c0_i32 = arith.constant 0 : i32
    %0 = tpu.memref_slice %arg15[%c0_i32] : memref<5x!tpu.dma_semaphore, #tpu.memory_space<semaphore_mem>> -> memref<1x!tpu.dma_semaphore, #tpu.memory_space<semaphore_mem>>
    %1 = tpu.memref_squeeze %0 : memref<1x!tpu.dma_semaphore, #tpu.memory_space<semaphore_mem>> -> memref<!tpu.dma_semaphore, #tpu.memory_space<semaphore_mem>>
    tpu.enqueue_dma source(%arg4 : memref<768x768xbf16, #tpu.memory_space<any>>) target(%arg10 : memref<768x768xbf16, #tpu.memory_space<vmem>>) target_semaphore(%1 : memref<!tpu.dma_semaphore, #tpu.memory_space<semaphore_mem>>)
    %c1_i32 = arith.constant 1 : i32
    %2 = tpu.memref_slice %arg15[%c1_i32] : memref<5x!tpu.dma_semaphore, #tpu.memory_space<semaphore_mem>> -> memref<1x!tpu.dma_semaphore, #tpu.memory_space<semaphore_mem>>
    %3 = tpu.memref_squeeze %2 : memref<1x!tpu.dma_semaphore, #tpu.memory_space<semaphore_mem>> -> memref<!tpu.dma_semaphore, #tpu.memory_space<semaphore_mem>>
    tpu.enqueue_dma source(%arg5 : memref<768x256xbf16, #tpu.memory_space<any>>) target(%arg11 : memref<768x256xbf16, #tpu.memory_space<vmem>>) target_semaphore(%3 : memref<!tpu.dma_semaphore, #tpu.memory_space<semaphore_mem>>)
    %c2_i32 = arith.constant 2 : i32
    %4 = tpu.memref_slice %arg15[%c2_i32] : memref<5x!tpu.dma_semaphore, #tpu.memory_space<semaphore_mem>> -> memref<1x!tpu.dma_semaphore, #tpu.memory_space<semaphore_mem>>
    %5 = tpu.memref_squeeze %4 : memref<1x!tpu.dma_semaphore, #tpu.memory_space<semaphore_mem>> -> memref<!tpu.dma_semaphore, #tpu.memory_space<semaphore_mem>>
    tpu.enqueue_dma source(%arg6 : memref<256x768xbf16, #tpu.memory_space<any>>) target(%arg12 : memref<256x768xbf16, #tpu.memory_space<vmem>>) target_semaphore(%5 : memref<!tpu.dma_semaphore, #tpu.memory_space<semaphore_mem>>)
    %c3_i32 = arith.constant 3 : i32
    %6 = tpu.memref_slice %arg15[%c3_i32] : memref<5x!tpu.dma_semaphore, #tpu.memory_space<semaphore_mem>> -> memref<1x!tpu.dma_semaphore, #tpu.memory_space<semaphore_mem>>
    %7 = tpu.memref_squeeze %6 : memref<1x!tpu.dma_semaphore, #tpu.memory_space<semaphore_mem>> -> memref<!tpu.dma_semaphore, #tpu.memory_space<semaphore_mem>>
    tpu.enqueue_dma source(%arg7 : memref<768x128xbf16, #tpu.memory_space<any>>) target(%arg13 : memref<768x128xbf16, #tpu.memory_space<vmem>>) target_semaphore(%7 : memref<!tpu.dma_semaphore, #tpu.memory_space<semaphore_mem>>)
    %c4_i32 = arith.constant 4 : i32
    %8 = tpu.memref_slice %arg15[%c4_i32] : memref<5x!tpu.dma_semaphore, #tpu.memory_space<semaphore_mem>> -> memref<1x!tpu.dma_semaphore, #tpu.memory_space<semaphore_mem>>
    %9 = tpu.memref_squeeze %8 : memref<1x!tpu.dma_semaphore, #tpu.memory_space<semaphore_mem>> -> memref<!tpu.dma_semaphore, #tpu.memory_space<semaphore_mem>>
    tpu.enqueue_dma source(%arg8 : memref<128x128xbf16, #tpu.memory_space<any>>) target(%arg14 : memref<128x128xbf16, #tpu.memory_space<vmem>>) target_semaphore(%9 : memref<!tpu.dma_semaphore, #tpu.memory_space<semaphore_mem>>)
    %c0 = arith.constant 0 : index
    %c0_0 = arith.constant 0 : index
    %10 = vector.load %arg0[%c0, %c0_0] : memref<8x768xf32, #tpu.memory_space<vmem>>, vector<8x768xf32>
    %c0_1 = arith.constant 0 : index
    %c0_2 = arith.constant 0 : index
    %11 = vector.load %arg1[%c0_1, %c0_2] : memref<8x8xf32, #tpu.memory_space<vmem>>, vector<8x8xf32>
    %12 = arith.truncf %10 : vector<8x768xf32> to vector<8x768xbf16>
    %c0_3 = arith.constant 0 : index
    %c0_4 = arith.constant 0 : index
    %13 = vector.load %arg2[%c0_3, %c0_4] : memref<768x1536xbf16, #tpu.memory_space<vmem>>, vector<768x1536xbf16>
    %cst = arith.constant dense<0.000000e+00> : vector<8x1536xf32>
    %14 = tpu.matmul %12, %13, %cst {dimension_numbers = #tpu.dot_dimension_numbers<[1], [0], [0], [1], [0, 0, 1, 1], [], []>} : vector<8x768xbf16>, vector<768x1536xbf16>, vector<8x1536xf32> -> vector<8x1536xf32>
    %c8 = arith.constant 8 : index
    %c0_5 = arith.constant 0 : index
    %15 = vector.load %arg3[%c8, %c0_5] : memref<16x1536xf32, #tpu.memory_space<vmem>>, vector<1x1536xf32>
    %16 = vector.broadcast %15 : vector<1x1536xf32> to vector<8x1536xf32>
    %17 = arith.addf %14, %16 : vector<8x1536xf32>
    %18 = vector.extract_strided_slice %17 {offsets = [0, 0], sizes = [8, 768], strides = [1, 1]} : vector<8x1536xf32> to vector<8x768xf32>
    %19 = vector.extract_strided_slice %17 {offsets = [0, 768], sizes = [8, 768], strides = [1, 1]} : vector<8x1536xf32> to vector<8x768xf32>
    %c0_6 = arith.constant 0 : index
    %c0_7 = arith.constant 0 : index
    %20 = vector.load %arg3[%c0_6, %c0_7] : memref<16x1536xf32, #tpu.memory_space<vmem>>, vector<8x768xf32>
    %cst_8 = arith.constant dense<0.000000e+00> : vector<8x768xf32>
    %21 = tpu.matmul %11, %20, %cst_8 {dimension_numbers = #tpu.dot_dimension_numbers<[1], [0], [0], [1], [0, 0, 1, 1], [], []>} : vector<8x8xf32>, vector<8x768xf32>, vector<8x768xf32> -> vector<8x768xf32>
    %c9 = arith.constant 9 : index
    %c0_9 = arith.constant 0 : index
    %22 = vector.load %arg3[%c9, %c0_9] : memref<16x1536xf32, #tpu.memory_space<vmem>>, vector<1x768xf32>
    %23 = vector.broadcast %22 : vector<1x768xf32> to vector<8x768xf32>
    %24 = arith.addf %21, %23 : vector<8x768xf32>
    %25 = vector.extract_strided_slice %18 {offsets = [0, 0], sizes = [8, 384], strides = [1, 1]} : vector<8x768xf32> to vector<8x384xf32>
    %26 = vector.extract_strided_slice %24 {offsets = [0, 0], sizes = [8, 384], strides = [1, 1]} : vector<8x768xf32> to vector<8x384xf32>
    %27 = vector.extract_strided_slice %19 {offsets = [0, 0], sizes = [8, 384], strides = [1, 1]} : vector<8x768xf32> to vector<8x384xf32>
    %cst_10 = arith.constant dense<0.000000e+00> : vector<8x8xf32>
    %28 = tpu.matmul %25, %26, %cst_10 {dimension_numbers = #tpu.dot_dimension_numbers<[1], [1], [0], [0], [0, 0, 1, 0], [], []>} : vector<8x384xf32>, vector<8x384xf32>, vector<8x8xf32> -> vector<8x8xf32>
    %cst_11 = arith.constant dense<0xFF800000> : vector<8xf32>
    %29 = vector.multi_reduction <maximumf>, %28, %cst_11 [1] : vector<8x8xf32> to vector<8xf32>
    %30 = vector.shape_cast %29 : vector<8xf32> to vector<8x1xf32>
    %31 = vector.broadcast %30 : vector<8x1xf32> to vector<8x8xf32>
    %32 = arith.subf %28, %31 : vector<8x8xf32>
    %33 = math.exp %32 : vector<8x8xf32>
    %cst_12 = arith.constant dense<0.000000e+00> : vector<8xf32>
    %34 = vector.multi_reduction <add>, %33, %cst_12 [1] : vector<8x8xf32> to vector<8xf32>
    %35 = vector.shape_cast %34 : vector<8xf32> to vector<8x1xf32>
    %36 = vector.broadcast %35 : vector<8x1xf32> to vector<8x8xf32>
    %37 = arith.divf %33, %36 : vector<8x8xf32>
    %cst_13 = arith.constant dense<0.000000e+00> : vector<8x384xf32>
    %38 = tpu.matmul %37, %27, %cst_13 {dimension_numbers = #tpu.dot_dimension_numbers<[1], [0], [0], [1], [0, 0, 1, 1], [], []>} : vector<8x8xf32>, vector<8x384xf32>, vector<8x384xf32> -> vector<8x384xf32>
    %39 = vector.extract_strided_slice %18 {offsets = [0, 384], sizes = [8, 384], strides = [1, 1]} : vector<8x768xf32> to vector<8x384xf32>
    %40 = vector.extract_strided_slice %24 {offsets = [0, 384], sizes = [8, 384], strides = [1, 1]} : vector<8x768xf32> to vector<8x384xf32>
    %41 = vector.extract_strided_slice %19 {offsets = [0, 384], sizes = [8, 384], strides = [1, 1]} : vector<8x768xf32> to vector<8x384xf32>
    %cst_14 = arith.constant dense<0.000000e+00> : vector<8x8xf32>
    %42 = tpu.matmul %39, %40, %cst_14 {dimension_numbers = #tpu.dot_dimension_numbers<[1], [1], [0], [0], [0, 0, 1, 0], [], []>} : vector<8x384xf32>, vector<8x384xf32>, vector<8x8xf32> -> vector<8x8xf32>
    %cst_15 = arith.constant dense<0xFF800000> : vector<8xf32>
    %43 = vector.multi_reduction <maximumf>, %42, %cst_15 [1] : vector<8x8xf32> to vector<8xf32>
    %44 = vector.shape_cast %43 : vector<8xf32> to vector<8x1xf32>
    %45 = vector.broadcast %44 : vector<8x1xf32> to vector<8x8xf32>
    %46 = arith.subf %42, %45 : vector<8x8xf32>
    %47 = math.exp %46 : vector<8x8xf32>
    %cst_16 = arith.constant dense<0.000000e+00> : vector<8xf32>
    %48 = vector.multi_reduction <add>, %47, %cst_16 [1] : vector<8x8xf32> to vector<8xf32>
    %49 = vector.shape_cast %48 : vector<8xf32> to vector<8x1xf32>
    %50 = vector.broadcast %49 : vector<8x1xf32> to vector<8x8xf32>
    %51 = arith.divf %47, %50 : vector<8x8xf32>
    %cst_17 = arith.constant dense<0.000000e+00> : vector<8x384xf32>
    %52 = tpu.matmul %51, %41, %cst_17 {dimension_numbers = #tpu.dot_dimension_numbers<[1], [0], [0], [1], [0, 0, 1, 1], [], []>} : vector<8x8xf32>, vector<8x384xf32>, vector<8x384xf32> -> vector<8x384xf32>
    %c0_i32_18 = arith.constant 0 : i32
    %53 = tpu.memref_slice %arg15[%c0_i32_18] : memref<5x!tpu.dma_semaphore, #tpu.memory_space<semaphore_mem>> -> memref<1x!tpu.dma_semaphore, #tpu.memory_space<semaphore_mem>>
    %54 = tpu.memref_squeeze %53 : memref<1x!tpu.dma_semaphore, #tpu.memory_space<semaphore_mem>> -> memref<!tpu.dma_semaphore, #tpu.memory_space<semaphore_mem>>
    tpu.wait_dma2 semaphore(%54 : memref<!tpu.dma_semaphore, #tpu.memory_space<semaphore_mem>>) src(%arg4 : memref<768x768xbf16, #tpu.memory_space<any>>) dst(%arg10 : memref<768x768xbf16, #tpu.memory_space<vmem>>)
    %55 = arith.truncf %38 : vector<8x384xf32> to vector<8x384xbf16>
    %c0_19 = arith.constant 0 : index
    %c0_20 = arith.constant 0 : index
    %56 = vector.load %arg10[%c0_19, %c0_20] : memref<768x768xbf16, #tpu.memory_space<vmem>>, vector<384x768xbf16>
    %cst_21 = arith.constant dense<0.000000e+00> : vector<8x768xf32>
    %57 = tpu.matmul %55, %56, %cst_21 {dimension_numbers = #tpu.dot_dimension_numbers<[1], [0], [0], [1], [0, 0, 1, 1], [], []>} : vector<8x384xbf16>, vector<384x768xbf16>, vector<8x768xf32> -> vector<8x768xf32>
    %58 = arith.truncf %52 : vector<8x384xf32> to vector<8x384xbf16>
    %c384 = arith.constant 384 : index
    %c0_22 = arith.constant 0 : index
    %59 = vector.load %arg10[%c384, %c0_22] : memref<768x768xbf16, #tpu.memory_space<vmem>>, vector<384x768xbf16>
    %cst_23 = arith.constant dense<0.000000e+00> : vector<8x768xf32>
    %60 = tpu.matmul %58, %59, %cst_23 {dimension_numbers = #tpu.dot_dimension_numbers<[1], [0], [0], [1], [0, 0, 1, 1], [], []>} : vector<8x384xbf16>, vector<384x768xbf16>, vector<8x768xf32> -> vector<8x768xf32>
    %61 = arith.addf %57, %60 : vector<8x768xf32>
    %c9_24 = arith.constant 9 : index
    %c768 = arith.constant 768 : index
    %62 = vector.load %arg3[%c9_24, %c768] : memref<16x1536xf32, #tpu.memory_space<vmem>>, vector<1x768xf32>
    %63 = vector.broadcast %62 : vector<1x768xf32> to vector<8x768xf32>
    %64 = arith.addf %61, %63 : vector<8x768xf32>
    %65 = arith.addf %10, %64 : vector<8x768xf32>
    %cst_25 = arith.constant dense<0.000000e+00> : vector<8xf32>
    %66 = vector.multi_reduction <add>, %65, %cst_25 [1] : vector<8x768xf32> to vector<8xf32>
    %67 = vector.shape_cast %66 : vector<8xf32> to vector<8x1xf32>
    %cst_26 = arith.constant 7.680000e+02 : f32
    %68 = vector.broadcast %cst_26 : f32 to vector<8x1xf32>
    %69 = arith.divf %67, %68 : vector<8x1xf32>
    %70 = vector.broadcast %69 : vector<8x1xf32> to vector<8x768xf32>
    %71 = arith.subf %65, %70 : vector<8x768xf32>
    %72 = vector.broadcast %69 : vector<8x1xf32> to vector<8x768xf32>
    %73 = arith.subf %65, %72 : vector<8x768xf32>
    %74 = arith.mulf %71, %73 : vector<8x768xf32>
    %cst_27 = arith.constant dense<0.000000e+00> : vector<8xf32>
    %75 = vector.multi_reduction <add>, %74, %cst_27 [1] : vector<8x768xf32> to vector<8xf32>
    %76 = vector.shape_cast %75 : vector<8xf32> to vector<8x1xf32>
    %cst_28 = arith.constant 7.680000e+02 : f32
    %77 = vector.broadcast %cst_28 : f32 to vector<8x1xf32>
    %78 = arith.divf %76, %77 : vector<8x1xf32>
    %79 = vector.broadcast %69 : vector<8x1xf32> to vector<8x768xf32>
    %80 = arith.subf %65, %79 : vector<8x768xf32>
    %cst_29 = arith.constant 9.99999974E-6 : f32
    %81 = vector.broadcast %cst_29 : f32 to vector<8x1xf32>
    %82 = arith.addf %78, %81 : vector<8x1xf32>
    %83 = math.rsqrt %82 : vector<8x1xf32>
    %84 = vector.broadcast %83 : vector<8x1xf32> to vector<8x768xf32>
    %85 = arith.mulf %80, %84 : vector<8x768xf32>
    %c10 = arith.constant 10 : index
    %c0_30 = arith.constant 0 : index
    %86 = vector.load %arg3[%c10, %c0_30] : memref<16x1536xf32, #tpu.memory_space<vmem>>, vector<1x768xf32>
    %87 = vector.broadcast %86 : vector<1x768xf32> to vector<8x768xf32>
    %88 = arith.mulf %85, %87 : vector<8x768xf32>
    %c10_31 = arith.constant 10 : index
    %c768_32 = arith.constant 768 : index
    %89 = vector.load %arg3[%c10_31, %c768_32] : memref<16x1536xf32, #tpu.memory_space<vmem>>, vector<1x768xf32>
    %90 = vector.broadcast %89 : vector<1x768xf32> to vector<8x768xf32>
    %91 = arith.addf %88, %90 : vector<8x768xf32>
    %c1_i32_33 = arith.constant 1 : i32
    %92 = tpu.memref_slice %arg15[%c1_i32_33] : memref<5x!tpu.dma_semaphore, #tpu.memory_space<semaphore_mem>> -> memref<1x!tpu.dma_semaphore, #tpu.memory_space<semaphore_mem>>
    %93 = tpu.memref_squeeze %92 : memref<1x!tpu.dma_semaphore, #tpu.memory_space<semaphore_mem>> -> memref<!tpu.dma_semaphore, #tpu.memory_space<semaphore_mem>>
    tpu.wait_dma2 semaphore(%93 : memref<!tpu.dma_semaphore, #tpu.memory_space<semaphore_mem>>) src(%arg5 : memref<768x256xbf16, #tpu.memory_space<any>>) dst(%arg11 : memref<768x256xbf16, #tpu.memory_space<vmem>>)
    %94 = arith.truncf %91 : vector<8x768xf32> to vector<8x768xbf16>
    %c0_34 = arith.constant 0 : index
    %c0_35 = arith.constant 0 : index
    %95 = vector.load %arg11[%c0_34, %c0_35] : memref<768x256xbf16, #tpu.memory_space<vmem>>, vector<768x256xbf16>
    %cst_36 = arith.constant dense<0.000000e+00> : vector<8x256xf32>
    %96 = tpu.matmul %94, %95, %cst_36 {dimension_numbers = #tpu.dot_dimension_numbers<[1], [0], [0], [1], [0, 0, 1, 1], [], []>} : vector<8x768xbf16>, vector<768x256xbf16>, vector<8x256xf32> -> vector<8x256xf32>
    %c0_37 = arith.constant 0 : index
    %c768_38 = arith.constant 768 : index
    %97 = vector.load %arg3[%c0_37, %c768_38] : memref<16x1536xf32, #tpu.memory_space<vmem>>, vector<8x256xf32>
    %cst_39 = arith.constant dense<0.000000e+00> : vector<8x256xf32>
    %98 = tpu.matmul %11, %97, %cst_39 {dimension_numbers = #tpu.dot_dimension_numbers<[1], [0], [0], [1], [0, 0, 1, 1], [], []>} : vector<8x8xf32>, vector<8x256xf32>, vector<8x256xf32> -> vector<8x256xf32>
    %99 = arith.addf %96, %98 : vector<8x256xf32>
    %c11 = arith.constant 11 : index
    %c0_40 = arith.constant 0 : index
    %100 = vector.load %arg3[%c11, %c0_40] : memref<16x1536xf32, #tpu.memory_space<vmem>>, vector<1x256xf32>
    %101 = vector.broadcast %100 : vector<1x256xf32> to vector<8x256xf32>
    %102 = arith.addf %99, %101 : vector<8x256xf32>
    %cst_41 = arith.constant 0.000000e+00 : f32
    %103 = vector.broadcast %cst_41 : f32 to vector<8x256xf32>
    %104 = arith.maximumf %102, %103 : vector<8x256xf32>
    %c2_i32_42 = arith.constant 2 : i32
    %105 = tpu.memref_slice %arg15[%c2_i32_42] : memref<5x!tpu.dma_semaphore, #tpu.memory_space<semaphore_mem>> -> memref<1x!tpu.dma_semaphore, #tpu.memory_space<semaphore_mem>>
    %106 = tpu.memref_squeeze %105 : memref<1x!tpu.dma_semaphore, #tpu.memory_space<semaphore_mem>> -> memref<!tpu.dma_semaphore, #tpu.memory_space<semaphore_mem>>
    tpu.wait_dma2 semaphore(%106 : memref<!tpu.dma_semaphore, #tpu.memory_space<semaphore_mem>>) src(%arg6 : memref<256x768xbf16, #tpu.memory_space<any>>) dst(%arg12 : memref<256x768xbf16, #tpu.memory_space<vmem>>)
    %107 = arith.truncf %104 : vector<8x256xf32> to vector<8x256xbf16>
    %c0_43 = arith.constant 0 : index
    %c0_44 = arith.constant 0 : index
    %108 = vector.load %arg12[%c0_43, %c0_44] : memref<256x768xbf16, #tpu.memory_space<vmem>>, vector<256x768xbf16>
    %cst_45 = arith.constant dense<0.000000e+00> : vector<8x768xf32>
    %109 = tpu.matmul %107, %108, %cst_45 {dimension_numbers = #tpu.dot_dimension_numbers<[1], [0], [0], [1], [0, 0, 1, 1], [], []>} : vector<8x256xbf16>, vector<256x768xbf16>, vector<8x768xf32> -> vector<8x768xf32>
    %c11_46 = arith.constant 11 : index
    %c256 = arith.constant 256 : index
    %110 = vector.load %arg3[%c11_46, %c256] : memref<16x1536xf32, #tpu.memory_space<vmem>>, vector<1x768xf32>
    %111 = vector.broadcast %110 : vector<1x768xf32> to vector<8x768xf32>
    %112 = arith.addf %109, %111 : vector<8x768xf32>
    %cst_47 = arith.constant 0.000000e+00 : f32
    %113 = vector.broadcast %cst_47 : f32 to vector<8x768xf32>
    %114 = arith.maximumf %112, %113 : vector<8x768xf32>
    %c3_i32_48 = arith.constant 3 : i32
    %115 = tpu.memref_slice %arg15[%c3_i32_48] : memref<5x!tpu.dma_semaphore, #tpu.memory_space<semaphore_mem>> -> memref<1x!tpu.dma_semaphore, #tpu.memory_space<semaphore_mem>>
    %116 = tpu.memref_squeeze %115 : memref<1x!tpu.dma_semaphore, #tpu.memory_space<semaphore_mem>> -> memref<!tpu.dma_semaphore, #tpu.memory_space<semaphore_mem>>
    tpu.wait_dma2 semaphore(%116 : memref<!tpu.dma_semaphore, #tpu.memory_space<semaphore_mem>>) src(%arg7 : memref<768x128xbf16, #tpu.memory_space<any>>) dst(%arg13 : memref<768x128xbf16, #tpu.memory_space<vmem>>)
    %117 = arith.truncf %114 : vector<8x768xf32> to vector<8x768xbf16>
    %c0_49 = arith.constant 0 : index
    %c0_50 = arith.constant 0 : index
    %118 = vector.load %arg13[%c0_49, %c0_50] : memref<768x128xbf16, #tpu.memory_space<vmem>>, vector<768x128xbf16>
    %cst_51 = arith.constant dense<0.000000e+00> : vector<8x128xf32>
    %119 = tpu.matmul %117, %118, %cst_51 {dimension_numbers = #tpu.dot_dimension_numbers<[1], [0], [0], [1], [0, 0, 1, 1], [], []>} : vector<8x768xbf16>, vector<768x128xbf16>, vector<8x128xf32> -> vector<8x128xf32>
    %c0_52 = arith.constant 0 : index
    %c1024 = arith.constant 1024 : index
    %120 = vector.load %arg3[%c0_52, %c1024] : memref<16x1536xf32, #tpu.memory_space<vmem>>, vector<8x128xf32>
    %cst_53 = arith.constant dense<0.000000e+00> : vector<8x128xf32>
    %121 = tpu.matmul %11, %120, %cst_53 {dimension_numbers = #tpu.dot_dimension_numbers<[1], [0], [0], [1], [0, 0, 1, 1], [], []>} : vector<8x8xf32>, vector<8x128xf32>, vector<8x128xf32> -> vector<8x128xf32>
    %122 = arith.addf %119, %121 : vector<8x128xf32>
    %c11_54 = arith.constant 11 : index
    %c1024_55 = arith.constant 1024 : index
    %123 = vector.load %arg3[%c11_54, %c1024_55] : memref<16x1536xf32, #tpu.memory_space<vmem>>, vector<1x128xf32>
    %124 = vector.broadcast %123 : vector<1x128xf32> to vector<8x128xf32>
    %125 = arith.addf %122, %124 : vector<8x128xf32>
    %cst_56 = arith.constant 0.000000e+00 : f32
    %126 = vector.broadcast %cst_56 : f32 to vector<8x128xf32>
    %127 = arith.maximumf %125, %126 : vector<8x128xf32>
    %c4_i32_57 = arith.constant 4 : i32
    %128 = tpu.memref_slice %arg15[%c4_i32_57] : memref<5x!tpu.dma_semaphore, #tpu.memory_space<semaphore_mem>> -> memref<1x!tpu.dma_semaphore, #tpu.memory_space<semaphore_mem>>
    %129 = tpu.memref_squeeze %128 : memref<1x!tpu.dma_semaphore, #tpu.memory_space<semaphore_mem>> -> memref<!tpu.dma_semaphore, #tpu.memory_space<semaphore_mem>>
    tpu.wait_dma2 semaphore(%129 : memref<!tpu.dma_semaphore, #tpu.memory_space<semaphore_mem>>) src(%arg8 : memref<128x128xbf16, #tpu.memory_space<any>>) dst(%arg14 : memref<128x128xbf16, #tpu.memory_space<vmem>>)
    %130 = arith.truncf %127 : vector<8x128xf32> to vector<8x128xbf16>
    %c0_58 = arith.constant 0 : index
    %c0_59 = arith.constant 0 : index
    %131 = vector.load %arg14[%c0_58, %c0_59] : memref<128x128xbf16, #tpu.memory_space<vmem>>, vector<128x128xbf16>
    %cst_60 = arith.constant dense<0.000000e+00> : vector<8x128xf32>
    %132 = tpu.matmul %130, %131, %cst_60 {dimension_numbers = #tpu.dot_dimension_numbers<[1], [0], [0], [1], [0, 0, 1, 1], [], []>} : vector<8x128xbf16>, vector<128x128xbf16>, vector<8x128xf32> -> vector<8x128xf32>
    %c11_61 = arith.constant 11 : index
    %c1152 = arith.constant 1152 : index
    %133 = vector.load %arg3[%c11_61, %c1152] : memref<16x1536xf32, #tpu.memory_space<vmem>>, vector<1x128xf32>
    %134 = vector.broadcast %133 : vector<1x128xf32> to vector<8x128xf32>
    %135 = arith.addf %132, %134 : vector<8x128xf32>
    %cst_62 = arith.constant 0.000000e+00 : f32
    %136 = vector.broadcast %cst_62 : f32 to vector<8x128xf32>
    %137 = arith.maximumf %135, %136 : vector<8x128xf32>
    %c0_63 = arith.constant 0 : index
    %c0_64 = arith.constant 0 : index
    %138 = vector.load %arg9[%c0_63, %c0_64] : memref<8x128xf32, #tpu.memory_space<vmem>>, vector<8x128xf32>
    tpu.vector_store %arg9[%c0_63, %c0_64], %137 {strides = array<i32>} : memref<8x128xf32, #tpu.memory_space<vmem>>, vector<8x128xf32>,
    return
  }
}

</mosaic_0001>

<bundles_post_ra>
// kernel: tpu_custom_call.1
= control target key start
LH: loop header
LB: loop body
LE: loop exit
PB: predicated region body
PF: predicated region fallthrough
CT: control target
= control target key end

     0   :  { %14 = vsyncpa [#allocation9], 0  ;;  %s9644_s0 = inlined_call_operand.hbm [shape: f32[8,768], index: 0, kind: input, shape index: {}]   ;;  %s9645_s1 = inlined_call_operand.hbm [shape: f32[8,8], index: 1, kind: input, shape index: {}]   ;;  %s9646_s2 = inlined_call_operand.hbm [shape: bf16[768,1536], index: 2, kind: input, shape index: {}]   ;;  %s9647_s3 = inlined_call_operand.hbm [shape: f32[16,1536], index: 3, kind: input, shape index: {}]   ;;  %s9648_s4 = inlined_call_operand.hbm [shape: bf16[768,768], index: 4, kind: input, shape index: {}]   ;;  %s9649_s5 = inlined_call_operand.hbm [shape: bf16[768,256], index: 5, kind: input, shape index: {}]   ;;  %s9650_s6 = inlined_call_operand.hbm [shape: bf16[256,768], index: 6, kind: input, shape index: {}]   ;;  %s9651_s7 = inlined_call_operand.hbm [shape: bf16[768,128], index: 7, kind: input, shape index: {}]   ;;  %s9652_s8 = inlined_call_operand.hbm [shape: bf16[128,128], index: 8, kind: input, shape index: {}]   ;;  %s9653_s9 = inlined_call_operand.hbm [shape: f32[8,128], index: 9, kind: output, shape index: {}]  }
   0x1   :  { %15 = vsyncpa [#allocation12], 0 }
   0x2   :  { %16 = vsyncpa [#allocation15], 0 }
   0x3   :  { %17 = vsyncpa [#allocation10], 0  ;;  %s9091_s30 = smov [#allocation11]   ;;  %s9092_s11 = smov [#allocation8]  }
   0x4   :  { %s34_s10 = sshll.u32 %s9091_s30, 4  ;;  %s24_s12 = sshll.u32 %s9092_s11, 4  ;;  %s35_s10 = int_to_ptr.vmem [resolvable:$true] %s34_s10  ;;  %s25_s12 = int_to_ptr.vmem [resolvable:$true] %s24_s12 }
   0x5   :  { %s8919_s15 = scalar_lea.hbm %s9645_s1, 128 }
   0x6   :  { %p8920_p0 = scmp.ne.s32.totalorder %s9645_s1, %s8919_s15  ;;  %p8923_p1 = scmp.lt.u32.totalorder %s8919_s15, %s9645_s1 }
   0x8   :  { %p8925_p2 = pnand %p8923_p1, %p8920_p0 }
   0xa   :  { %8928 = shalt.err (!%p8925_p2)
}
   0xb   :  { %s8929_s20 = scalar_lea.vmem %s35_s10, 128  ;;  %p8934_p4 = scmp.lt.s32.totalorder %s35_s10, %s35_s10 }
   0xc   :  { %p8930_p3 = scmp.ne.s32.totalorder %s35_s10, %s8929_s20  ;;  %p8935_p5 = scmp.lt.s32.totalorder %s8929_s20, %s8929_s20 }
   0xe   :  { %p8936_p6 = por %p8935_p5, %p8934_p4 }
  0x10   :  { %p8937_p7 = pnand %p8936_p6, %p8930_p3 }
  0x12   :  { %8940 = shalt.err (!%p8937_p7)
}
  0x13   :  { %37 = dma.hbm_to_vmem [thread:$0]  %s9645_s1, 128, %s35_s10, [#allocation12]  }
  0x14   :  { %s8941_s25 = scalar_lea.hbm %s9644_s0, 768 }
  0x15   :  { %p8942_p8 = scmp.ne.s32.totalorder %s9644_s0, %s8941_s25  ;;  %p8945_p9 = scmp.lt.u32.totalorder %s8941_s25, %s9644_s0 }
  0x17   :  { %p8947_p10 = pnand %p8945_p9, %p8942_p8 }
  0x19   :  { %8950 = shalt.err (!%p8947_p10)
}
  0x1a   :  { %s8951_s30 = scalar_lea.vmem %s25_s12, 768  ;;  %p8956_p12 = scmp.lt.s32.totalorder %s25_s12, %s25_s12 }
  0x1b   :  { %p8952_p11 = scmp.ne.s32.totalorder %s25_s12, %s8951_s30  ;;  %p8957_p13 = scmp.lt.s32.totalorder %s8951_s30, %s8951_s30 }
  0x1d   :  { %p8958_p0 = por %p8957_p13, %p8956_p12 }
  0x1f   :  { %p8959_p1 = pnand %p8958_p0, %p8952_p11 }
  0x21   :  { %8962 = shalt.err (!%p8959_p1)
}
  0x22   :  { %27 = dma.hbm_to_vmem [thread:$0]  %s9644_s0, 768, %s25_s12, [#allocation9]  }
  0x23   :  { %s9093_s11 = smov [#allocation13]   ;;  %s8963_s16 = scalar_lea.hbm %s9646_s2, 73728 }
  0x24   :  { %s43_s13 = sshll.u32 %s9093_s11, 4  ;;  %p8964_p2 = scmp.ne.s32.totalorder %s9646_s2, %s8963_s16  ;;  %s44_s13 = int_to_ptr.vmem [resolvable:$true] %s43_s13 }
  0x25   :  { %p8967_p3 = scmp.lt.u32.totalorder %s8963_s16, %s9646_s2 }
  0x27   :  { %p8969_p4 = pnand %p8967_p3, %p8964_p2 }
  0x29   :  { %8972 = shalt.err (!%p8969_p4)
}
  0x2a   :  { %s8973_s21 = scalar_lea.vmem %s44_s13, 73728  ;;  %p8978_p6 = scmp.lt.s32.totalorder %s44_s13, %s44_s13 }
  0x2b   :  { %p8974_p5 = scmp.ne.s32.totalorder %s44_s13, %s8973_s21  ;;  %p8979_p7 = scmp.lt.s32.totalorder %s8973_s21, %s8973_s21 }
  0x2d   :  { %p8980_p8 = por %p8979_p7, %p8978_p6 }
  0x2f   :  { %p8981_p9 = pnand %p8980_p8, %p8974_p5 }
  0x31   :  { %8984 = shalt.err (!%p8981_p9)
}
  0x32   :  { %s9094_s0 = smov 768   ;;  %s9095_s12 = smov 48  }
  0x33   :  { %49 = dma.hbm_to_vmem [thread:$0]  %s9646_s2, 73728, %s44_s13, [#allocation12], %s9094_s0, %s9094_s0, %s9095_s12  }
  0x34   :  { %s9096_s24 = smov [#allocation14]   ;;  %s8985_s28 = scalar_lea.hbm %s9647_s3, 3072 }
  0x35   :  { %s55_s25 = sshll.u32 %s9096_s24, 4  ;;  %p8986_p10 = scmp.ne.s32.totalorder %s9647_s3, %s8985_s28  ;;  %s56_s25 = int_to_ptr.vmem [resolvable:$true] %s55_s25 }
  0x36   :  { %p8989_p11 = scmp.lt.u32.totalorder %s8985_s28, %s9647_s3 }
  0x38   :  { %p8991_p12 = pnand %p8989_p11, %p8986_p10 }
  0x3a   :  { %8994 = shalt.err (!%p8991_p12)
}
  0x3b   :  { %s8995_s11 = scalar_lea.vmem %s56_s25, 3072  ;;  %p9000_p0 = scmp.lt.s32.totalorder %s56_s25, %s56_s25 }
  0x3c   :  { %p8996_p13 = scmp.ne.s32.totalorder %s56_s25, %s8995_s11  ;;  %p9001_p1 = scmp.lt.s32.totalorder %s8995_s11, %s8995_s11 }
  0x3e   :  { %p9002_p2 = por %p9001_p1, %p9000_p0 }
  0x40   :  { %p9003_p3 = pnand %p9002_p2, %p8996_p13 }
  0x42   :  { %9006 = shalt.err (!%p9003_p3)
}
  0x43   :  { %s9097_s2 = smov 1536   ;;  %s9098_s13 = smov 96  }
  0x44   :  { %61 = dma.hbm_to_vmem [thread:$0]  %s9647_s3, 3072, %s56_s25, [#allocation15], %s9097_s2, %s9097_s2, %s9098_s13  }
  0x45   :  { %9073 = dma.done.wait [#allocation9], 768  }
  0x46   :  { %9074 = vsyncadd [#allocation9], 4294966528 }
  0x47   :  { %9075 = dma.done.wait [#allocation12], 73856  }
  0x48   :  { %9076 = vsyncadd [#allocation12], 4294893440 }
  0x49   :  { %9077 = dma.done.wait [#allocation15], 3072  }
  0x4a   :  { %9078 = vsyncadd [#allocation15], 4294964224  ;;  %s79_s16 = sld [smem:[#allocation0]]   ;;  %91 = sst [smem:[#allocation18]] %s9094_s0  ;;  %vm4520_vm0 = vcmask 64512   ;;  %vm9116_vm1 = vmmov 0  }
  0x4b   :  { %93 = sst [smem:[#allocation18 + $0x1]] %s9094_s0  ;;  %s9099_s17 = smov 6  }
  0x4c   :  { %95 = sst [smem:[#allocation18 + $0x2]] %s9099_s17  ;;  %s9100_s18 = smov 64  }
  0x4d   :  { %97 = sst [smem:[#allocation18 + $0x3]] %s9100_s18  ;;  %s9101_s19 = smov [#allocation2]  }
  0x4e   :  { %s87_s20 = sshll.u32 %s9101_s19, 4  ;;  %s9102_s3 = smov 384   ;;  %s88_s20 = int_to_ptr.vmem [resolvable:$true] %s87_s20 }
  0x4f   :  { %103 = sst [smem:[#allocation18 + $0x6]] %s9102_s3  ;;  %s9103_s12 = smov 128  }
  0x50   :  { %105 = sst [smem:[#allocation18 + $0x7]] %s9100_s18  ;;  %s7225_s21 = sshll.u32 %s79_s16, 26 }
  0x51   :  { %99 = sst [smem:[#allocation18 + $0x4]] %s9103_s12  ;;  %s9228_s22 = sadd.s32 134217728, %s7225_s21 }
  0x52   :  { %s9104_s23 = smov 2   ;;  %s9105_s24 = smov 4  }
  0x53   :  { %101 = sst [smem:[#allocation18 + $0x5]] %s9104_s23  ;;  %s9106_s25 = smov [#allocation7]  }
  0x54   :  { %107 = sst [smem:[#allocation18 + $0x8]] %s9105_s24  ;;  %s9107_s26 = smov [#allocation17]  }
  0x55   :  { %109 = dma.general %s9648_s4, 36864, %s88_s20, %s9106_s25, %s9107_s26, [#allocation18], %s9228_s22, 0  }
  0x56   :  { %s9108_s29 = smov 256   ;;  %s9109_s30 = smov [#allocation3]  }
  0x57   :  { %126 = sst [smem:[#allocation20]] %s9108_s29  ;;  %s122_s1 = sshll.u32 %s9109_s30, 4  ;;  %s123_s1 = int_to_ptr.vmem [resolvable:$true] %s122_s1 }
  0x58   :  { %128 = sst [smem:[#allocation20 + $0x1]] %s9108_s29  ;;  %s9110_s4 = smov [#allocation7 + $0x1]  }
  0x59   :  { %130 = sst [smem:[#allocation20 + $0x2]] %s9104_s23  ;;  %s9111_s10 = smov [#allocation19]  }
  0x5a   :  { %132 = sst [smem:[#allocation20 + $0x3]] %s9100_s18  ;;  %s9112_s13 = smov [#allocation4]  }
  0x5b   :  { %134 = sst [smem:[#allocation20 + $0x4]] %s9103_s12  ;;  %s157_s14 = sshll.u32 %s9112_s13, 4  ;;  %s158_s14 = int_to_ptr.vmem [resolvable:$true] %s157_s14 }
  0x5c   :  { %136 = sst [smem:[#allocation20 + $0x5]] %s9104_s23  ;;  %s9114_s15 = smov [#allocation21]  }
  0x5d   :  { %138 = sst [smem:[#allocation20 + $0x6]] %s9103_s12  ;;  %s9007_s21 = scalar_lea.hbm %s9651_s7, 6144 }
  0x5e   :  { %140 = sst [smem:[#allocation20 + $0x7]] %s9100_s18  ;;  %p9008_p4 = scmp.ne.s32.totalorder %s9651_s7, %s9007_s21 }
  0x5f   :  { %142 = sst [smem:[#allocation20 + $0x8]] %s9105_s24  ;;  %p9011_p5 = scmp.lt.u32.totalorder %s9007_s21, %s9651_s7 }
  0x60   :  { %144 = dma.general %s9649_s5, 12288, %s123_s1, %s9110_s4, %s9111_s10, [#allocation20], %s9228_s22, 0  }
  0x61   :  { %161 = sst [smem:[#allocation22]] %s9094_s0  ;;  %s9113_s5 = smov [#allocation7 + $0x2]  }
  0x62   :  { %163 = sst [smem:[#allocation22 + $0x1]] %s9094_s0  ;;  %p9013_p6 = pnand %p9011_p5, %p9008_p4 }
  0x63   :  { %165 = sst [smem:[#allocation22 + $0x2]] %s9099_s17 }
  0x64   :  { %167 = sst [smem:[#allocation22 + $0x3]] %s9100_s18 }
  0x65   :  { %169 = sst [smem:[#allocation22 + $0x4]] %s9103_s12 }
  0x66   :  { %171 = sst [smem:[#allocation22 + $0x5]] %s9104_s23 }
  0x67   :  { %173 = sst [smem:[#allocation22 + $0x6]] %s9102_s3 }
  0x68   :  { %175 = sst [smem:[#allocation22 + $0x7]] %s9100_s18  ;;  %s9118_s18 = smov [#allocation6]  }
  0x69   :  { %177 = sst [smem:[#allocation22 + $0x8]] %s9105_s24  ;;  %s200_s19 = sshll.u32 %s9118_s18, 4  ;;  %s201_s19 = int_to_ptr.vmem [resolvable:$true] %s200_s19 }
  0x6a   :  { %179 = dma.general %s9650_s6, 12288, %s158_s14, %s9113_s5, %s9114_s15, [#allocation22], %s9228_s22, 0  }
  0x6b   :  { %v8045_v0 = vld [vmem:[#allocation13 + $0x4] ss:$48 sps:$4 sm:$0xff]   ;;  %v8047_v1 = vld [vmem:[#allocation13 + $0xc] ss:$48 sps:$4 sm:$0xff]   ;;  %v8049_v2 = vld [vmem:[#allocation13] ss:$48 sps:$4 sm:$0xff]  }
  0x6c   :  { %3741 = vmatprep.subr.bf16.mxu0 %v8045_v0  ;;  %v8050_v3 = vld [vmem:[#allocation13 + $0x8] ss:$48 sps:$4 sm:$0xff]   ;;  %3864 = vmatprep.subr.bf16.mxu1 %v8047_v1  ;;  %v8051_v4 = vld [vmem:[#allocation13 + $0x64] ss:$48 sps:$4 sm:$0xff]   ;;  %v8053_v5 = vld [vmem:[#allocation13 + $0x6c] ss:$48 sps:$4 sm:$0xff]  }
  0x6d   :  { %3742 = vmatpush1.bf16.msra.mxu0 %v8049_v2  ;;  %3865 = vmatpush1.bf16.msra.mxu1 %v8050_v3  ;;  %v8055_v6 = vld [vmem:[#allocation13 + $0x60] ss:$48 sps:$4 sm:$0xff]   ;;  %v8056_v7 = vld [vmem:[#allocation13 + $0x68] ss:$48 sps:$4 sm:$0xff]   ;;  %v8057_v8 = vld [vmem:[#allocation13 + $0xc4] ss:$48 sps:$4 sm:$0xff]  }
  0x6e   :  { %3743 = vmatprep.subr.bf16.mxu0 %v8051_v4  ;;  %3866 = vmatprep.subr.bf16.mxu1 %v8053_v5  ;;  %v8059_v9 = vld [vmem:[#allocation13 + $0xcc] ss:$48 sps:$4 sm:$0xff]   ;;  %v8061_v10 = vld [vmem:[#allocation13 + $0xc0] ss:$48 sps:$4 sm:$0xff]   ;;  %v8062_v11 = vld [vmem:[#allocation13 + $0xc8] ss:$48 sps:$4 sm:$0xff]  }
  0x6f   :  { %v8063_v12 = vld [vmem:[#allocation13 + $0x124] ss:$48 sps:$4 sm:$0xff]   ;;  %v8065_v13 = vld [vmem:[#allocation13 + $0x12c] ss:$48 sps:$4 sm:$0xff]   ;;  %v8067_v14 = vld [vmem:[#allocation13 + $0x120] ss:$48 sps:$4 sm:$0xff]  }
  0x70   :  { %v8068_v15 = vld [vmem:[#allocation13 + $0x128] ss:$48 sps:$4 sm:$0xff]   ;;  %v8069_v16 = vld [vmem:[#allocation13 + $0x184] ss:$48 sps:$4 sm:$0xff]   ;;  %v8071_v17 = vld [vmem:[#allocation13 + $0x18c] ss:$48 sps:$4 sm:$0xff]  }
  0x71   :  { %3744 = vmatpush1.bf16.msra.mxu0 %v8055_v6  ;;  %3867 = vmatpush1.bf16.msra.mxu1 %v8056_v7  ;;  %v8073_v18 = vld [vmem:[#allocation13 + $0x180] ss:$48 sps:$4 sm:$0xff]   ;;  %v8074_v19 = vld [vmem:[#allocation13 + $0x188] ss:$48 sps:$4 sm:$0xff]   ;;  %v8075_v20 = vld [vmem:[#allocation13 + $0x1e4] ss:$48 sps:$4 sm:$0xff]  }
  0x72   :  { %3745 = vmatprep.subr.bf16.mxu0 %v8057_v8  ;;  %3868 = vmatprep.subr.bf16.mxu1 %v8059_v9  ;;  %v8077_v21 = vld [vmem:[#allocation13 + $0x1ec] ss:$48 sps:$4 sm:$0xff]   ;;  %v8079_v22 = vld [vmem:[#allocation13 + $0x1e0] ss:$48 sps:$4 sm:$0xff]   ;;  %v8080_v23 = vld [vmem:[#allocation13 + $0x1e8] ss:$48 sps:$4 sm:$0xff]  }
  0x73   :  { %v8081_v24 = vld [vmem:[#allocation13 + $0x244] ss:$48 sps:$4 sm:$0xff]   ;;  %v8083_v25 = vld [vmem:[#allocation13 + $0x24c] ss:$48 sps:$4 sm:$0xff]   ;;  %v8085_v26 = vld [vmem:[#allocation13 + $0x240] ss:$48 sps:$4 sm:$0xff]  }
  0x74   :  { %v8086_v27 = vld [vmem:[#allocation13 + $0x248] ss:$48 sps:$4 sm:$0xff]   ;;  %v8087_v28 = vld [vmem:[#allocation13 + $0x2a4] ss:$48 sps:$4 sm:$0xff]   ;;  %v8089_v29 = vld [vmem:[#allocation13 + $0x2ac] ss:$48 sps:$4 sm:$0xff]  }
  0x75   :  { %3746 = vmatpush1.bf16.msra.mxu0 %v8061_v10  ;;  %3869 = vmatpush1.bf16.msra.mxu1 %v8062_v11  ;;  %v8091_v30 = vld [vmem:[#allocation13 + $0x2a0] ss:$48 sps:$4 sm:$0xff]   ;;  %v8092_v31 = vld [vmem:[#allocation13 + $0x2a8] ss:$48 sps:$4 sm:$0xff]   ;;  %v8093_v32 = vld [vmem:[#allocation13 + $0x304] ss:$48 sps:$4 sm:$0xff]  }
  0x76   :  { %3747 = vmatprep.subr.bf16.mxu0 %v8063_v12  ;;  %3870 = vmatprep.subr.bf16.mxu1 %v8065_v13  ;;  %v8095_v33 = vld [vmem:[#allocation13 + $0x30c] ss:$48 sps:$4 sm:$0xff]   ;;  %v8097_v34 = vld [vmem:[#allocation13 + $0x300] ss:$48 sps:$4 sm:$0xff]   ;;  %v8098_v35 = vld [vmem:[#allocation13 + $0x308] ss:$48 sps:$4 sm:$0xff]  }
  0x77   :  { %v8099_v36 = vld [vmem:[#allocation13 + $0x364] ss:$48 sps:$4 sm:$0xff]   ;;  %v8101_v37 = vld [vmem:[#allocation13 + $0x36c] ss:$48 sps:$4 sm:$0xff]   ;;  %v8103_v38 = vld [vmem:[#allocation13 + $0x360] ss:$48 sps:$4 sm:$0xff]  }
  0x78   :  { %v8104_v39 = vld [vmem:[#allocation13 + $0x368] ss:$48 sps:$4 sm:$0xff]   ;;  %v8105_v40 = vld [vmem:[#allocation13 + $0x3c4] ss:$48 sps:$4 sm:$0xff]   ;;  %v8107_v41 = vld [vmem:[#allocation13 + $0x3cc] ss:$48 sps:$4 sm:$0xff]  }
  0x79   :  { %3748 = vmatpush1.bf16.msra.mxu0 %v8067_v14  ;;  %3871 = vmatpush1.bf16.msra.mxu1 %v8068_v15  ;;  %v8109_v42 = vld [vmem:[#allocation13 + $0x3c0] ss:$48 sps:$4 sm:$0xff]   ;;  %v8110_v43 = vld [vmem:[#allocation13 + $0x3c8] ss:$48 sps:$4 sm:$0xff]   ;;  %v8111_v44 = vld [vmem:[#allocation13 + $0x424] ss:$48 sps:$4 sm:$0xff]  }
  0x7a   :  { %3749 = vmatprep.subr.bf16.mxu0 %v8069_v16  ;;  %3872 = vmatprep.subr.bf16.mxu1 %v8071_v17  ;;  %v8113_v45 = vld [vmem:[#allocation13 + $0x42c] ss:$48 sps:$4 sm:$0xff]   ;;  %v9260_v46 = vld [vmem:[#allocation8 + $0x8] sm:$0xff]  ;;  %v8116_v49 = vld [vmem:[#allocation13 + $0x428] ss:$48 sps:$4 sm:$0xff]   ;;  %s9117_s6 = smov [#allocation5]  }
  0x7b   :  { %v8115_v47 = vld [vmem:[#allocation13 + $0x420] ss:$48 sps:$4 sm:$0xff]   ;;  %v9264_v48 = vpack.c.bf16 %v9260_v46, %v9260_v46  ;;  %v8117_v50 = vld [vmem:[#allocation13 + $0x484] ss:$48 sps:$4 sm:$0xff]   ;;  %v8119_v51 = vld [vmem:[#allocation13 + $0x48c] ss:$48 sps:$4 sm:$0xff]  }
  0x7c   :  { %v8121_v52 = vld [vmem:[#allocation13 + $0x480] ss:$48 sps:$4 sm:$0xff]   ;;  %v8122_v53 = vld [vmem:[#allocation13 + $0x488] ss:$48 sps:$4 sm:$0xff]   ;;  %v8123_v54 = vld [vmem:[#allocation13 + $0x4e4] ss:$48 sps:$4 sm:$0xff]  }
  0x7d   :  { %3750 = vmatpush1.bf16.msra.mxu0 %v8073_v18  ;;  %3873 = vmatpush1.bf16.msra.mxu1 %v8074_v19  ;;  %v8125_v55 = vld [vmem:[#allocation13 + $0x4ec] ss:$48 sps:$4 sm:$0xff]   ;;  %v8127_v56 = vld [vmem:[#allocation13 + $0x4e0] ss:$48 sps:$4 sm:$0xff]   ;;  %v8128_v57 = vld [vmem:[#allocation13 + $0x4e8] ss:$48 sps:$4 sm:$0xff]  }
  0x7e   :  { %3751 = vmatprep.subr.bf16.mxu0 %v8075_v20  ;;  %3874 = vmatprep.subr.bf16.mxu1 %v8077_v21  ;;  %v8129_v58 = vld [vmem:[#allocation13 + $0x544] ss:$48 sps:$4 sm:$0xff]   ;;  %v8131_v59 = vld [vmem:[#allocation13 + $0x54c] ss:$48 sps:$4 sm:$0xff]   ;;  %v8133_v60 = vld [vmem:[#allocation13 + $0x540] ss:$48 sps:$4 sm:$0xff]  }
  0x7f   :  { %3773 = vmatprep.mubr.bf16.mxu0 %v9264_v48  ;;  %3896 = vmatprep.mubr.bf16.mxu1 %v9264_v48  ;;  %v8134_v61 = vld [vmem:[#allocation13 + $0x548] ss:$48 sps:$4 sm:$0xff]   ;;  %v8135_v62 = vld [vmem:[#allocation13 + $0x5a4] ss:$48 sps:$4 sm:$0xff]   ;;  %v8137_v63 = vld [vmem:[#allocation13 + $0x5ac] ss:$48 sps:$4 sm:$0xff]  }
  0x80   :  { %v8139_v0 = vld [vmem:[#allocation13 + $0x5a0] ss:$48 sps:$4 sm:$0xff]   ;;  %v8140_v1 = vld [vmem:[#allocation13 + $0x5a8] ss:$48 sps:$4 sm:$0xff]   ;;  %v8143_v3 = vld [vmem:[#allocation13 + $0x604] ss:$48 sps:$4 sm:$0xff]  }
  0x81   :  { %3752 = vmatpush1.bf16.msra.mxu0 %v8079_v22  ;;  %3875 = vmatpush1.bf16.msra.mxu1 %v8080_v23  ;;  %v9268_v2 = vld [vmem:[#allocation8] sm:$0xff]  ;;  %v8141_v6 = vld [vmem:[#allocation13 + $0x600] ss:$48 sps:$4 sm:$0xff]   ;;  %v8149_v8 = vld [vmem:[#allocation13 + $0x664] ss:$48 sps:$4 sm:$0xff]   ;;  %s188_s17 = sshll.u32 %s9117_s6, 4  ;;  %s189_s17 = int_to_ptr.vmem [resolvable:$true] %s188_s17 }
  0x82   :  { %3753 = vmatprep.subr.bf16.mxu0 %v8081_v24  ;;  %3876 = vmatprep.subr.bf16.mxu1 %v8083_v25  ;;  %v8146_v4 = vld [vmem:[#allocation13 + $0x60c] ss:$48 sps:$4 sm:$0xff]   ;;  %v9272_v5 = vpack.c.bf16 %v9268_v2, %v9268_v2  ;;  %v8144_v7 = vld [vmem:[#allocation13 + $0x608] ss:$48 sps:$4 sm:$0xff]   ;;  %v8147_v10 = vld [vmem:[#allocation13 + $0x660] ss:$48 sps:$4 sm:$0xff]  }
  0x83   :  { %v8152_v9 = vld [vmem:[#allocation13 + $0x66c] ss:$48 sps:$4 sm:$0xff]   ;;  %v8150_v11 = vld [vmem:[#allocation13 + $0x668] ss:$48 sps:$4 sm:$0xff]   ;;  %v8155_v12 = vld [vmem:[#allocation13 + $0x6c4] ss:$48 sps:$4 sm:$0xff]  }
  0x84   :  { %v8158_v13 = vld [vmem:[#allocation13 + $0x6cc] ss:$48 sps:$4 sm:$0xff]   ;;  %v8153_v14 = vld [vmem:[#allocation13 + $0x6c0] ss:$48 sps:$4 sm:$0xff]   ;;  %v8156_v15 = vld [vmem:[#allocation13 + $0x6c8] ss:$48 sps:$4 sm:$0xff]  }
  0x85   :  { %3754 = vmatpush1.bf16.msra.mxu0 %v8085_v26  ;;  %3877 = vmatpush1.bf16.msra.mxu1 %v8086_v27  ;;  %v8161_v16 = vld [vmem:[#allocation13 + $0x724] ss:$48 sps:$4 sm:$0xff]   ;;  %v8164_v17 = vld [vmem:[#allocation13 + $0x72c] ss:$48 sps:$4 sm:$0xff]   ;;  %v8159_v18 = vld [vmem:[#allocation13 + $0x720] ss:$48 sps:$4 sm:$0xff]  }
  0x86   :  { %3755 = vmatprep.subr.bf16.mxu0 %v8087_v28  ;;  %3878 = vmatprep.subr.bf16.mxu1 %v8089_v29  ;;  %v8162_v19 = vld [vmem:[#allocation13 + $0x728] ss:$48 sps:$4 sm:$0xff]   ;;  %v8167_v20 = vld [vmem:[#allocation13 + $0x784] ss:$48 sps:$4 sm:$0xff]   ;;  %v8170_v21 = vld [vmem:[#allocation13 + $0x78c] ss:$48 sps:$4 sm:$0xff]  }
  0x87   :  { %v8165_v22 = vld [vmem:[#allocation13 + $0x780] ss:$48 sps:$4 sm:$0xff]   ;;  %v8168_v23 = vld [vmem:[#allocation13 + $0x788] ss:$48 sps:$4 sm:$0xff]   ;;  %v8173_v24 = vld [vmem:[#allocation13 + $0x7e4] ss:$48 sps:$4 sm:$0xff]  }
  0x88   :  { %v8176_v25 = vld [vmem:[#allocation13 + $0x7ec] ss:$48 sps:$4 sm:$0xff]   ;;  %v8171_v26 = vld [vmem:[#allocation13 + $0x7e0] ss:$48 sps:$4 sm:$0xff]   ;;  %v8174_v27 = vld [vmem:[#allocation13 + $0x7e8] ss:$48 sps:$4 sm:$0xff]  }
  0x89   :  { %3756 = vmatpush1.bf16.msra.mxu0 %v8091_v30  ;;  %3879 = vmatpush1.bf16.msra.mxu1 %v8092_v31  ;;  %v8179_v28 = vld [vmem:[#allocation13 + $0x844] ss:$48 sps:$4 sm:$0xff]   ;;  %v8182_v29 = vld [vmem:[#allocation13 + $0x84c] ss:$48 sps:$4 sm:$0xff]   ;;  %v8177_v31 = vld [vmem:[#allocation13 + $0x840] ss:$48 sps:$4 sm:$0xff]  }
  0x8a   :  { %3757 = vmatprep.subr.bf16.mxu0 %v8093_v32  ;;  %3880 = vmatprep.subr.bf16.mxu1 %v8095_v33  ;;  %v9276_v30 = vld [vmem:[#allocation8 + $0x18] sm:$0xff]  ;;  %v8180_v33 = vld [vmem:[#allocation13 + $0x848] ss:$48 sps:$4 sm:$0xff]  }
  0x8b   :  { %v9280_v32 = vpack.c.bf16 %v9276_v30, %v9276_v30 }
  0x8d   :  { %3758 = vmatpush1.bf16.msra.mxu0 %v8097_v34  ;;  %3881 = vmatpush1.bf16.msra.mxu1 %v8098_v35  ;;  %v8185_v34 = vld [vmem:[#allocation13 + $0x8a4] ss:$48 sps:$4 sm:$0xff]   ;;  %v8188_v35 = vld [vmem:[#allocation13 + $0x8ac] ss:$48 sps:$4 sm:$0xff]  }
  0x8e   :  { %3759 = vmatprep.subr.bf16.mxu0 %v8099_v36  ;;  %3882 = vmatprep.subr.bf16.mxu1 %v8101_v37  ;;  %v8183_v36 = vld [vmem:[#allocation13 + $0x8a0] ss:$48 sps:$4 sm:$0xff]   ;;  %v8186_v37 = vld [vmem:[#allocation13 + $0x8a8] ss:$48 sps:$4 sm:$0xff]  }
  0x91   :  { %3760 = vmatpush1.bf16.msra.mxu0 %v8103_v38  ;;  %3883 = vmatpush1.bf16.msra.mxu1 %v8104_v39  ;;  %v8191_v38 = vld [vmem:[#allocation13 + $0x904] ss:$48 sps:$4 sm:$0xff]   ;;  %v8194_v39 = vld [vmem:[#allocation13 + $0x90c] ss:$48 sps:$4 sm:$0xff]  }
  0x92   :  { %3761 = vmatprep.subr.bf16.mxu0 %v8105_v40  ;;  %3884 = vmatprep.subr.bf16.mxu1 %v8107_v41  ;;  %v8189_v40 = vld [vmem:[#allocation13 + $0x900] ss:$48 sps:$4 sm:$0xff]   ;;  %v8192_v41 = vld [vmem:[#allocation13 + $0x908] ss:$48 sps:$4 sm:$0xff]  }
  0x95   :  { %3762 = vmatpush1.bf16.msra.mxu0 %v8109_v42  ;;  %3885 = vmatpush1.bf16.msra.mxu1 %v8110_v43  ;;  %v8197_v42 = vld [vmem:[#allocation13 + $0x964] ss:$48 sps:$4 sm:$0xff]   ;;  %v8200_v43 = vld [vmem:[#allocation13 + $0x96c] ss:$48 sps:$4 sm:$0xff]  }
  0x96   :  { %3763 = vmatprep.subr.bf16.mxu0 %v8111_v44  ;;  %3886 = vmatprep.subr.bf16.mxu1 %v8113_v45  ;;  %v8195_v44 = vld [vmem:[#allocation13 + $0x960] ss:$48 sps:$4 sm:$0xff]   ;;  %v8198_v45 = vld [vmem:[#allocation13 + $0x968] ss:$48 sps:$4 sm:$0xff]  }
  0x99   :  { %3764 = vmatpush1.bf16.msra.mxu0 %v8115_v47  ;;  %3887 = vmatpush1.bf16.msra.mxu1 %v8116_v49  ;;  %v8203_v47 = vld [vmem:[#allocation13 + $0x9c4] ss:$48 sps:$4 sm:$0xff]   ;;  %v8206_v49 = vld [vmem:[#allocation13 + $0x9cc] ss:$48 sps:$4 sm:$0xff]  }
  0x9a   :  { %3765 = vmatprep.subr.bf16.mxu0 %v8117_v50  ;;  %3888 = vmatprep.subr.bf16.mxu1 %v8119_v51  ;;  %v8201_v50 = vld [vmem:[#allocation13 + $0x9c0] ss:$48 sps:$4 sm:$0xff]   ;;  %v8204_v51 = vld [vmem:[#allocation13 + $0x9c8] ss:$48 sps:$4 sm:$0xff]  }
  0x9d   :  { %3766 = vmatpush1.bf16.msra.mxu0 %v8121_v52  ;;  %3889 = vmatpush1.bf16.msra.mxu1 %v8122_v53  ;;  %v8209_v52 = vld [vmem:[#allocation13 + $0xa24] ss:$48 sps:$4 sm:$0xff]   ;;  %v8212_v53 = vld [vmem:[#allocation13 + $0xa2c] ss:$48 sps:$4 sm:$0xff]  }
  0x9e   :  { %3767 = vmatprep.subr.bf16.mxu0 %v8123_v54  ;;  %3890 = vmatprep.subr.bf16.mxu1 %v8125_v55  ;;  %v8207_v54 = vld [vmem:[#allocation13 + $0xa20] ss:$48 sps:$4 sm:$0xff]   ;;  %v8210_v55 = vld [vmem:[#allocation13 + $0xa28] ss:$48 sps:$4 sm:$0xff]  }
  0xa1   :  { %3768 = vmatpush1.bf16.msra.mxu0 %v8127_v56  ;;  %3891 = vmatpush1.bf16.msra.mxu1 %v8128_v57  ;;  %v8215_v56 = vld [vmem:[#allocation13 + $0xa84] ss:$48 sps:$4 sm:$0xff]   ;;  %v8218_v57 = vld [vmem:[#allocation13 + $0xa8c] ss:$48 sps:$4 sm:$0xff]  }
  0xa2   :  { %3769 = vmatprep.subr.bf16.mxu0 %v8129_v58  ;;  %3892 = vmatprep.subr.bf16.mxu1 %v8131_v59  ;;  %v8213_v58 = vld [vmem:[#allocation13 + $0xa80] ss:$48 sps:$4 sm:$0xff]   ;;  %v8216_v59 = vld [vmem:[#allocation13 + $0xa88] ss:$48 sps:$4 sm:$0xff]  }
  0xa5   :  { %3770 = vmatpush1.bf16.msra.mxu0 %v8133_v60  ;;  %3893 = vmatpush1.bf16.msra.mxu1 %v8134_v61  ;;  %v8221_v60 = vld [vmem:[#allocation13 + $0xae4] ss:$48 sps:$4 sm:$0xff]   ;;  %v8224_v61 = vld [vmem:[#allocation13 + $0xaec] ss:$48 sps:$4 sm:$0xff]  }
  0xa6   :  { %3771 = vmatprep.subr.bf16.mxu0 %v8135_v62  ;;  %3894 = vmatprep.subr.bf16.mxu1 %v8137_v63  ;;  %v8219_v62 = vld [vmem:[#allocation13 + $0xae0] ss:$48 sps:$4 sm:$0xff]   ;;  %v8222_v63 = vld [vmem:[#allocation13 + $0xae8] ss:$48 sps:$4 sm:$0xff]  }
  0xa9   :  { %3772 = vmatpush1.bf16.msra.mxu0 %v8139_v0  ;;  %3895 = vmatpush1.bf16.msra.mxu1 %v8140_v1  ;;  %v8227_v0 = vld [vmem:[#allocation13 + $0xb44] ss:$48 sps:$4 sm:$0xff]   ;;  %v8230_v1 = vld [vmem:[#allocation13 + $0xb4c] ss:$48 sps:$4 sm:$0xff]  }
  0xaa   :  { %3782 = vmatprep.subr.bf16.mxu0 %v8143_v3  ;;  %3905 = vmatprep.subr.bf16.mxu1 %v8146_v4  ;;  %v8225_v3 = vld [vmem:[#allocation13 + $0xb40] ss:$48 sps:$4 sm:$0xff]   ;;  %v8228_v4 = vld [vmem:[#allocation13 + $0xb48] ss:$48 sps:$4 sm:$0xff]  }
  0xac   :  { %3774 = vmatmul.mubr.bf16.vlgmr.msra.gmra.mrb[0].mxu0 %v9272_v5  ;;  %3897 = vmatmul.mubr.bf16.vlgmr.msra.gmra.mrb[0].mxu1 %v9272_v5 }
  0xad   :  { %3783 = vmatpush1.bf16.msra.mxu0 %v8141_v6  ;;  %3906 = vmatpush1.bf16.msra.mxu1 %v8144_v7  ;;  %v8233_v6 = vld [vmem:[#allocation13 + $0xba4] ss:$48 sps:$4 sm:$0xff]   ;;  %v8236_v7 = vld [vmem:[#allocation13 + $0xbac] ss:$48 sps:$4 sm:$0xff]  }
  0xae   :  { %3784 = vmatprep.subr.bf16.mxu0 %v8149_v8  ;;  %3907 = vmatprep.subr.bf16.mxu1 %v8152_v9  ;;  %v8231_v8 = vld [vmem:[#allocation13 + $0xba0] ss:$48 sps:$4 sm:$0xff]   ;;  %v8234_v9 = vld [vmem:[#allocation13 + $0xba8] ss:$48 sps:$4 sm:$0xff]  }
  0xaf   :  { %3814 = vmatprep.mubr.bf16.mxu0 %v9280_v32  ;;  %3937 = vmatprep.mubr.bf16.mxu1 %v9280_v32 }
  0xb1   :  { %3785 = vmatpush1.bf16.msra.mxu0 %v8147_v10  ;;  %3908 = vmatpush1.bf16.msra.mxu1 %v8150_v11  ;;  %v8239_v10 = vld [vmem:[#allocation13 + $0xc04] ss:$48 sps:$4 sm:$0xff]   ;;  %v9284_v11 = vld [vmem:[#allocation8 + $0x10] sm:$0xff] }
  0xb2   :  { %3786 = vmatprep.subr.bf16.mxu0 %v8155_v12  ;;  %3909 = vmatprep.subr.bf16.mxu1 %v8158_v13  ;;  %v8242_v12 = vld [vmem:[#allocation13 + $0xc0c] ss:$48 sps:$4 sm:$0xff]   ;;  %v8237_v13 = vld [vmem:[#allocation13 + $0xc00] ss:$48 sps:$4 sm:$0xff]  }
  0xb5   :  { %3787 = vmatpush1.bf16.msra.mxu0 %v8153_v14  ;;  %3910 = vmatpush1.bf16.msra.mxu1 %v8156_v15  ;;  %v9288_v14 = vpack.c.bf16 %v9284_v11, %v9284_v11  ;;  %v8240_v15 = vld [vmem:[#allocation13 + $0xc08] ss:$48 sps:$4 sm:$0xff]  }
  0xb6   :  { %3788 = vmatprep.subr.bf16.mxu0 %v8161_v16  ;;  %3911 = vmatprep.subr.bf16.mxu1 %v8164_v17  ;;  %v8245_v16 = vld [vmem:[#allocation13 + $0xc64] ss:$48 sps:$4 sm:$0xff]   ;;  %v8248_v17 = vld [vmem:[#allocation13 + $0xc6c] ss:$48 sps:$4 sm:$0xff]  }
  0xb9   :  { %3789 = vmatpush1.bf16.msra.mxu0 %v8159_v18  ;;  %3912 = vmatpush1.bf16.msra.mxu1 %v8162_v19  ;;  %v9290_v18 = vld [vmem:[#allocation8 + $0x28] sm:$0xff] }
  0xba   :  { %3790 = vmatprep.subr.bf16.mxu0 %v8167_v20  ;;  %3913 = vmatprep.subr.bf16.mxu1 %v8170_v21  ;;  %v9294_v19 = vpack.c.bf16 %v9290_v18, %v9290_v18  ;;  %v8243_v20 = vld [vmem:[#allocation13 + $0xc60] ss:$48 sps:$4 sm:$0xff]   ;;  %v8246_v21 = vld [vmem:[#allocation13 + $0xc68] ss:$48 sps:$4 sm:$0xff]  }
  0xbd   :  { %3791 = vmatpush1.bf16.msra.mxu0 %v8165_v22  ;;  %3914 = vmatpush1.bf16.msra.mxu1 %v8168_v23  ;;  %v8251_v22 = vld [vmem:[#allocation13 + $0xcc4] ss:$48 sps:$4 sm:$0xff]   ;;  %v8254_v23 = vld [vmem:[#allocation13 + $0xccc] ss:$48 sps:$4 sm:$0xff]  }
  0xbe   :  { %3792 = vmatprep.subr.bf16.mxu0 %v8173_v24  ;;  %3915 = vmatprep.subr.bf16.mxu1 %v8176_v25  ;;  %v8249_v24 = vld [vmem:[#allocation13 + $0xcc0] ss:$48 sps:$4 sm:$0xff]   ;;  %v8252_v25 = vld [vmem:[#allocation13 + $0xcc8] ss:$48 sps:$4 sm:$0xff]  }
  0xc1   :  { %3793 = vmatpush1.bf16.msra.mxu0 %v8171_v26  ;;  %3916 = vmatpush1.bf16.msra.mxu1 %v8174_v27  ;;  %v8257_v26 = vld [vmem:[#allocation13 + $0xd24] ss:$48 sps:$4 sm:$0xff]   ;;  %v8260_v27 = vld [vmem:[#allocation13 + $0xd2c] ss:$48 sps:$4 sm:$0xff]  }
  0xc2   :  { %3794 = vmatprep.subr.bf16.mxu0 %v8179_v28  ;;  %3917 = vmatprep.subr.bf16.mxu1 %v8182_v29  ;;  %v8255_v28 = vld [vmem:[#allocation13 + $0xd20] ss:$48 sps:$4 sm:$0xff]   ;;  %v8258_v29 = vld [vmem:[#allocation13 + $0xd28] ss:$48 sps:$4 sm:$0xff]  }
  0xc5   :  { %3795 = vmatpush1.bf16.msra.mxu0 %v8177_v31  ;;  %3918 = vmatpush1.bf16.msra.mxu1 %v8180_v33  ;;  %v8263_v31 = vld [vmem:[#allocation13 + $0xd84] ss:$48 sps:$4 sm:$0xff]   ;;  %v8266_v33 = vld [vmem:[#allocation13 + $0xd8c] ss:$48 sps:$4 sm:$0xff]  }
  0xc6   :  { %3796 = vmatprep.subr.bf16.mxu0 %v8185_v34  ;;  %3919 = vmatprep.subr.bf16.mxu1 %v8188_v35  ;;  %v8261_v34 = vld [vmem:[#allocation13 + $0xd80] ss:$48 sps:$4 sm:$0xff]   ;;  %v8264_v35 = vld [vmem:[#allocation13 + $0xd88] ss:$48 sps:$4 sm:$0xff]  }
  0xc9   :  { %3797 = vmatpush1.bf16.msra.mxu0 %v8183_v36  ;;  %3920 = vmatpush1.bf16.msra.mxu1 %v8186_v37  ;;  %v8269_v36 = vld [vmem:[#allocation13 + $0xde4] ss:$48 sps:$4 sm:$0xff]   ;;  %v8272_v37 = vld [vmem:[#allocation13 + $0xdec] ss:$48 sps:$4 sm:$0xff]  }
  0xca   :  { %3798 = vmatprep.subr.bf16.mxu0 %v8191_v38  ;;  %3921 = vmatprep.subr.bf16.mxu1 %v8194_v39  ;;  %v8267_v38 = vld [vmem:[#allocation13 + $0xde0] ss:$48 sps:$4 sm:$0xff]   ;;  %v8270_v39 = vld [vmem:[#allocation13 + $0xde8] ss:$48 sps:$4 sm:$0xff]  }
  0xcd   :  { %3799 = vmatpush1.bf16.msra.mxu0 %v8189_v40  ;;  %3922 = vmatpush1.bf16.msra.mxu1 %v8192_v41  ;;  %v8275_v40 = vld [vmem:[#allocation13 + $0xe44] ss:$48 sps:$4 sm:$0xff]   ;;  %v8278_v41 = vld [vmem:[#allocation13 + $0xe4c] ss:$48 sps:$4 sm:$0xff]  }
  0xce   :  { %3800 = vmatprep.subr.bf16.mxu0 %v8197_v42  ;;  %3923 = vmatprep.subr.bf16.mxu1 %v8200_v43  ;;  %v8273_v42 = vld [vmem:[#allocation13 + $0xe40] ss:$48 sps:$4 sm:$0xff]   ;;  %v8276_v43 = vld [vmem:[#allocation13 + $0xe48] ss:$48 sps:$4 sm:$0xff]  }
  0xd1   :  { %3801 = vmatpush1.bf16.msra.mxu0 %v8195_v44  ;;  %3924 = vmatpush1.bf16.msra.mxu1 %v8198_v45  ;;  %v8281_v44 = vld [vmem:[#allocation13 + $0xea4] ss:$48 sps:$4 sm:$0xff]   ;;  %v8284_v45 = vld [vmem:[#allocation13 + $0xeac] ss:$48 sps:$4 sm:$0xff]  }
  0xd2   :  { %3802 = vmatprep.subr.bf16.mxu0 %v8203_v47  ;;  %3925 = vmatprep.subr.bf16.mxu1 %v8206_v49  ;;  %v8279_v47 = vld [vmem:[#allocation13 + $0xea0] ss:$48 sps:$4 sm:$0xff]   ;;  %v8282_v49 = vld [vmem:[#allocation13 + $0xea8] ss:$48 sps:$4 sm:$0xff]  }
  0xd5   :  { %3803 = vmatpush1.bf16.msra.mxu0 %v8201_v50  ;;  %3926 = vmatpush1.bf16.msra.mxu1 %v8204_v51  ;;  %v8287_v50 = vld [vmem:[#allocation13 + $0xf04] ss:$48 sps:$4 sm:$0xff]   ;;  %v8290_v51 = vld [vmem:[#allocation13 + $0xf0c] ss:$48 sps:$4 sm:$0xff]  }
  0xd6   :  { %3804 = vmatprep.subr.bf16.mxu0 %v8209_v52  ;;  %3927 = vmatprep.subr.bf16.mxu1 %v8212_v53  ;;  %v8285_v52 = vld [vmem:[#allocation13 + $0xf00] ss:$48 sps:$4 sm:$0xff]   ;;  %v8288_v53 = vld [vmem:[#allocation13 + $0xf08] ss:$48 sps:$4 sm:$0xff]  }
  0xd9   :  { %3805 = vmatpush1.bf16.msra.mxu0 %v8207_v54  ;;  %3928 = vmatpush1.bf16.msra.mxu1 %v8210_v55  ;;  %v8293_v54 = vld [vmem:[#allocation13 + $0xf64] ss:$48 sps:$4 sm:$0xff]   ;;  %v8296_v55 = vld [vmem:[#allocation13 + $0xf6c] ss:$48 sps:$4 sm:$0xff]  }
  0xda   :  { %3806 = vmatprep.subr.bf16.mxu0 %v8215_v56  ;;  %3929 = vmatprep.subr.bf16.mxu1 %v8218_v57  ;;  %v8291_v56 = vld [vmem:[#allocation13 + $0xf60] ss:$48 sps:$4 sm:$0xff]   ;;  %v8294_v57 = vld [vmem:[#allocation13 + $0xf68] ss:$48 sps:$4 sm:$0xff]  }
  0xdd   :  { %3807 = vmatpush1.bf16.msra.mxu0 %v8213_v58  ;;  %3930 = vmatpush1.bf16.msra.mxu1 %v8216_v59  ;;  %v8299_v58 = vld [vmem:[#allocation13 + $0xfc4] ss:$48 sps:$4 sm:$0xff]   ;;  %v8302_v59 = vld [vmem:[#allocation13 + $0xfcc] ss:$48 sps:$4 sm:$0xff]  }
  0xde   :  { %3808 = vmatprep.subr.bf16.mxu0 %v8221_v60  ;;  %3931 = vmatprep.subr.bf16.mxu1 %v8224_v61  ;;  %v8297_v60 = vld [vmem:[#allocation13 + $0xfc0] ss:$48 sps:$4 sm:$0xff]   ;;  %v8300_v61 = vld [vmem:[#allocation13 + $0xfc8] ss:$48 sps:$4 sm:$0xff]  }
  0xe1   :  { %3809 = vmatpush1.bf16.msra.mxu0 %v8219_v62  ;;  %3932 = vmatpush1.bf16.msra.mxu1 %v8222_v63  ;;  %v8305_v62 = vld [vmem:[#allocation13 + $0x1024] ss:$48 sps:$4 sm:$0xff]   ;;  %v8308_v63 = vld [vmem:[#allocation13 + $0x102c] ss:$48 sps:$4 sm:$0xff]  }
  0xe2   :  { %3810 = vmatprep.subr.bf16.mxu0 %v8227_v0  ;;  %3933 = vmatprep.subr.bf16.mxu1 %v8230_v1  ;;  %v8303_v0 = vld [vmem:[#allocation13 + $0x1020] ss:$48 sps:$4 sm:$0xff]   ;;  %v8306_v1 = vld [vmem:[#allocation13 + $0x1028] ss:$48 sps:$4 sm:$0xff]  }
  0xe5   :  { %3811 = vmatpush1.bf16.msra.mxu0 %v8225_v3  ;;  %3934 = vmatpush1.bf16.msra.mxu1 %v8228_v4  ;;  %v8311_v3 = vld [vmem:[#allocation13 + $0x1084] ss:$48 sps:$4 sm:$0xff]   ;;  %v8314_v4 = vld [vmem:[#allocation13 + $0x108c] ss:$48 sps:$4 sm:$0xff]  }
  0xe6   :  { %3812 = vmatprep.subr.bf16.mxu0 %v8233_v6  ;;  %3935 = vmatprep.subr.bf16.mxu1 %v8236_v7  ;;  %v8309_v6 = vld [vmem:[#allocation13 + $0x1080] ss:$48 sps:$4 sm:$0xff]   ;;  %v8312_v7 = vld [vmem:[#allocation13 + $0x1088] ss:$48 sps:$4 sm:$0xff]  }
  0xe9   :  { %3813 = vmatpush1.bf16.msra.mxu0 %v8231_v8  ;;  %3936 = vmatpush1.bf16.msra.mxu1 %v8234_v9  ;;  %v8317_v8 = vld [vmem:[#allocation13 + $0x10e4] ss:$48 sps:$4 sm:$0xff]   ;;  %v8320_v9 = vld [vmem:[#allocation13 + $0x10ec] ss:$48 sps:$4 sm:$0xff]  }
  0xea   :  { %3823 = vmatprep.subr.bf16.mxu0 %v8239_v10  ;;  %3946 = vmatprep.subr.bf16.mxu1 %v8242_v12  ;;  %v8315_v10 = vld [vmem:[#allocation13 + $0x10e0] ss:$48 sps:$4 sm:$0xff]   ;;  %v8318_v12 = vld [vmem:[#allocation13 + $0x10e8] ss:$48 sps:$4 sm:$0xff]  }
  0xec   :  { %3815 = vmatmul.mubr.bf16.vlgmr.msra.gmra.mrb[0].mxu0 %v9288_v14  ;;  %3938 = vmatmul.mubr.bf16.vlgmr.msra.gmra.mrb[0].mxu1 %v9288_v14 }
  0xed   :  { %3824 = vmatpush1.bf16.msra.mxu0 %v8237_v13  ;;  %3947 = vmatpush1.bf16.msra.mxu1 %v8240_v15  ;;  %v8323_v13 = vld [vmem:[#allocation13 + $0x1144] ss:$48 sps:$4 sm:$0xff]   ;;  %v8326_v15 = vld [vmem:[#allocation13 + $0x114c] ss:$48 sps:$4 sm:$0xff]  }
  0xee   :  { %3825 = vmatprep.subr.bf16.mxu0 %v8245_v16  ;;  %3948 = vmatprep.subr.bf16.mxu1 %v8248_v17  ;;  %v8321_v16 = vld [vmem:[#allocation13 + $0x1140] ss:$48 sps:$4 sm:$0xff]   ;;  %v8324_v17 = vld [vmem:[#allocation13 + $0x1148] ss:$48 sps:$4 sm:$0xff]  }
  0xef   :  { %3855 = vmatprep.mubr.bf16.mxu0 %v9294_v19  ;;  %3978 = vmatprep.mubr.bf16.mxu1 %v9294_v19 }
  0xf1   :  { %3826 = vmatpush1.bf16.msra.mxu0 %v8243_v20  ;;  %3949 = vmatpush1.bf16.msra.mxu1 %v8246_v21  ;;  %v8329_v20 = vld [vmem:[#allocation13 + $0x11a4] ss:$48 sps:$4 sm:$0xff]   ;;  %v8332_v21 = vld [vmem:[#allocation13 + $0x11ac] ss:$48 sps:$4 sm:$0xff]  }
  0xf2   :  { %3827 = vmatprep.subr.bf16.mxu0 %v8251_v22  ;;  %3950 = vmatprep.subr.bf16.mxu1 %v8254_v23  ;;  %v8327_v22 = vld [vmem:[#allocation13 + $0x11a0] ss:$48 sps:$4 sm:$0xff]   ;;  %v8330_v23 = vld [vmem:[#allocation13 + $0x11a8] ss:$48 sps:$4 sm:$0xff]  }
  0xf5   :  { %3828 = vmatpush1.bf16.msra.mxu0 %v8249_v24  ;;  %3951 = vmatpush1.bf16.msra.mxu1 %v8252_v25  ;;  %v9300_v24 = vld [vmem:[#allocation8 + $0x20] sm:$0xff]  ;;  %v8335_v25 = vld [vmem:[#allocation13 + $0x14] ss:$48 sps:$4 sm:$0xff]  }
  0xf6   :  { %3829 = vmatprep.subr.bf16.mxu0 %v8257_v26  ;;  %3952 = vmatprep.subr.bf16.mxu1 %v8260_v27  ;;  %v8338_v26 = vld [vmem:[#allocation13 + $0x1c] ss:$48 sps:$4 sm:$0xff]   ;;  %v9304_v27 = vpack.c.bf16 %v9300_v24, %v9300_v24 }
  0xf9   :  { %3830 = vmatpush1.bf16.msra.mxu0 %v8255_v28  ;;  %3953 = vmatpush1.bf16.msra.mxu1 %v8258_v29  ;;  %v8333_v28 = vld [vmem:[#allocation13 + $0x10] ss:$48 sps:$4 sm:$0xff]   ;;  %v8336_v29 = vld [vmem:[#allocation13 + $0x18] ss:$48 sps:$4 sm:$0xff]  }
  0xfa   :  { %3831 = vmatprep.subr.bf16.mxu0 %v8263_v31  ;;  %3954 = vmatprep.subr.bf16.mxu1 %v8266_v33  ;;  %v8341_v31 = vld [vmem:[#allocation13 + $0x74] ss:$48 sps:$4 sm:$0xff]   ;;  %v8344_v33 = vld [vmem:[#allocation13 + $0x7c] ss:$48 sps:$4 sm:$0xff]  }
  0xfd   :  { %3832 = vmatpush1.bf16.msra.mxu0 %v8261_v34  ;;  %3955 = vmatpush1.bf16.msra.mxu1 %v8264_v35  ;;  %v8339_v34 = vld [vmem:[#allocation13 + $0x70] ss:$48 sps:$4 sm:$0xff]   ;;  %v8342_v35 = vld [vmem:[#allocation13 + $0x78] ss:$48 sps:$4 sm:$0xff]  }
  0xfe   :  { %3833 = vmatprep.subr.bf16.mxu0 %v8269_v36  ;;  %3956 = vmatprep.subr.bf16.mxu1 %v8272_v37  ;;  %v8347_v36 = vld [vmem:[#allocation13 + $0xd4] ss:$48 sps:$4 sm:$0xff]   ;;  %v8350_v37 = vld [vmem:[#allocation13 + $0xdc] ss:$48 sps:$4 sm:$0xff]  }
 0x101   :  { %3834 = vmatpush1.bf16.msra.mxu0 %v8267_v38  ;;  %3957 = vmatpush1.bf16.msra.mxu1 %v8270_v39  ;;  %v8345_v38 = vld [vmem:[#allocation13 + $0xd0] ss:$48 sps:$4 sm:$0xff]   ;;  %v8348_v39 = vld [vmem:[#allocation13 + $0xd8] ss:$48 sps:$4 sm:$0xff]  }
 0x102   :  { %3835 = vmatprep.subr.bf16.mxu0 %v8275_v40  ;;  %3958 = vmatprep.subr.bf16.mxu1 %v8278_v41  ;;  %v8353_v40 = vld [vmem:[#allocation13 + $0x134] ss:$48 sps:$4 sm:$0xff]   ;;  %v8356_v41 = vld [vmem:[#allocation13 + $0x13c] ss:$48 sps:$4 sm:$0xff]  }
 0x105   :  { %3836 = vmatpush1.bf16.msra.mxu0 %v8273_v42  ;;  %3959 = vmatpush1.bf16.msra.mxu1 %v8276_v43  ;;  %v8351_v42 = vld [vmem:[#allocation13 + $0x130] ss:$48 sps:$4 sm:$0xff]   ;;  %v8354_v43 = vld [vmem:[#allocation13 + $0x138] ss:$48 sps:$4 sm:$0xff]  }
 0x106   :  { %3837 = vmatprep.subr.bf16.mxu0 %v8281_v44  ;;  %3960 = vmatprep.subr.bf16.mxu1 %v8284_v45  ;;  %v8359_v44 = vld [vmem:[#allocation13 + $0x194] ss:$48 sps:$4 sm:$0xff]   ;;  %v8362_v45 = vld [vmem:[#allocation13 + $0x19c] ss:$48 sps:$4 sm:$0xff]  }
 0x109   :  { %3838 = vmatpush1.bf16.msra.mxu0 %v8279_v47  ;;  %3961 = vmatpush1.bf16.msra.mxu1 %v8282_v49  ;;  %v8357_v47 = vld [vmem:[#allocation13 + $0x190] ss:$48 sps:$4 sm:$0xff]   ;;  %v8360_v49 = vld [vmem:[#allocation13 + $0x198] ss:$48 sps:$4 sm:$0xff]  }
 0x10a   :  { %3839 = vmatprep.subr.bf16.mxu0 %v8287_v50  ;;  %3962 = vmatprep.subr.bf16.mxu1 %v8290_v51  ;;  %v8365_v50 = vld [vmem:[#allocation13 + $0x1f4] ss:$48 sps:$4 sm:$0xff]   ;;  %v8368_v51 = vld [vmem:[#allocation13 + $0x1fc] ss:$48 sps:$4 sm:$0xff]  }
 0x10d   :  { %3840 = vmatpush1.bf16.msra.mxu0 %v8285_v52  ;;  %3963 = vmatpush1.bf16.msra.mxu1 %v8288_v53  ;;  %v8363_v52 = vld [vmem:[#allocation13 + $0x1f0] ss:$48 sps:$4 sm:$0xff]   ;;  %v8366_v53 = vld [vmem:[#allocation13 + $0x1f8] ss:$48 sps:$4 sm:$0xff]  }
 0x10e   :  { %3841 = vmatprep.subr.bf16.mxu0 %v8293_v54  ;;  %3964 = vmatprep.subr.bf16.mxu1 %v8296_v55  ;;  %v8371_v54 = vld [vmem:[#allocation13 + $0x254] ss:$48 sps:$4 sm:$0xff]   ;;  %v8374_v55 = vld [vmem:[#allocation13 + $0x25c] ss:$48 sps:$4 sm:$0xff]  }
 0x111   :  { %3842 = vmatpush1.bf16.msra.mxu0 %v8291_v56  ;;  %3965 = vmatpush1.bf16.msra.mxu1 %v8294_v57  ;;  %v8369_v56 = vld [vmem:[#allocation13 + $0x250] ss:$48 sps:$4 sm:$0xff]   ;;  %v8372_v57 = vld [vmem:[#allocation13 + $0x258] ss:$48 sps:$4 sm:$0xff]  }
 0x112   :  { %3843 = vmatprep.subr.bf16.mxu0 %v8299_v58  ;;  %3966 = vmatprep.subr.bf16.mxu1 %v8302_v59  ;;  %v8377_v58 = vld [vmem:[#allocation13 + $0x2b4] ss:$48 sps:$4 sm:$0xff]   ;;  %v8380_v59 = vld [vmem:[#allocation13 + $0x2bc] ss:$48 sps:$4 sm:$0xff]  }
 0x115   :  { %3844 = vmatpush1.bf16.msra.mxu0 %v8297_v60  ;;  %3967 = vmatpush1.bf16.msra.mxu1 %v8300_v61  ;;  %v8375_v60 = vld [vmem:[#allocation13 + $0x2b0] ss:$48 sps:$4 sm:$0xff]   ;;  %v8378_v61 = vld [vmem:[#allocation13 + $0x2b8] ss:$48 sps:$4 sm:$0xff]  }
 0x116   :  { %3845 = vmatprep.subr.bf16.mxu0 %v8305_v62  ;;  %3968 = vmatprep.subr.bf16.mxu1 %v8308_v63  ;;  %v8383_v62 = vld [vmem:[#allocation13 + $0x314] ss:$48 sps:$4 sm:$0xff]   ;;  %v8386_v63 = vld [vmem:[#allocation13 + $0x31c] ss:$48 sps:$4 sm:$0xff]  }
 0x119   :  { %3846 = vmatpush1.bf16.msra.mxu0 %v8303_v0  ;;  %3969 = vmatpush1.bf16.msra.mxu1 %v8306_v1  ;;  %v8381_v0 = vld [vmem:[#allocation13 + $0x310] ss:$48 sps:$4 sm:$0xff]   ;;  %v8384_v1 = vld [vmem:[#allocation13 + $0x318] ss:$48 sps:$4 sm:$0xff]  }
 0x11a   :  { %3847 = vmatprep.subr.bf16.mxu0 %v8311_v3  ;;  %3970 = vmatprep.subr.bf16.mxu1 %v8314_v4  ;;  %v8389_v3 = vld [vmem:[#allocation13 + $0x374] ss:$48 sps:$4 sm:$0xff]   ;;  %v8392_v4 = vld [vmem:[#allocation13 + $0x37c] ss:$48 sps:$4 sm:$0xff]  }
 0x11d   :  { %3848 = vmatpush1.bf16.msra.mxu0 %v8309_v6  ;;  %3971 = vmatpush1.bf16.msra.mxu1 %v8312_v7  ;;  %v8387_v6 = vld [vmem:[#allocation13 + $0x370] ss:$48 sps:$4 sm:$0xff]   ;;  %v8390_v7 = vld [vmem:[#allocation13 + $0x378] ss:$48 sps:$4 sm:$0xff]  }
 0x11e   :  { %3849 = vmatprep.subr.bf16.mxu0 %v8317_v8  ;;  %3972 = vmatprep.subr.bf16.mxu1 %v8320_v9  ;;  %v8395_v8 = vld [vmem:[#allocation13 + $0x3d4] ss:$48 sps:$4 sm:$0xff]   ;;  %v8398_v9 = vld [vmem:[#allocation13 + $0x3dc] ss:$48 sps:$4 sm:$0xff]  }
 0x121   :  { %3850 = vmatpush1.bf16.msra.mxu0 %v8315_v10  ;;  %3973 = vmatpush1.bf16.msra.mxu1 %v8318_v12  ;;  %v8393_v10 = vld [vmem:[#allocation13 + $0x3d0] ss:$48 sps:$4 sm:$0xff]   ;;  %v8396_v12 = vld [vmem:[#allocation13 + $0x3d8] ss:$48 sps:$4 sm:$0xff]  }
 0x122   :  { %3851 = vmatprep.subr.bf16.mxu0 %v8323_v13  ;;  %3974 = vmatprep.subr.bf16.mxu1 %v8326_v15  ;;  %v8401_v13 = vld [vmem:[#allocation13 + $0x434] ss:$48 sps:$4 sm:$0xff]   ;;  %v8404_v15 = vld [vmem:[#allocation13 + $0x43c] ss:$48 sps:$4 sm:$0xff]  }
 0x125   :  { %3852 = vmatpush1.bf16.msra.mxu0 %v8321_v16  ;;  %3975 = vmatpush1.bf16.msra.mxu1 %v8324_v17  ;;  %v8399_v16 = vld [vmem:[#allocation13 + $0x430] ss:$48 sps:$4 sm:$0xff]   ;;  %v8402_v17 = vld [vmem:[#allocation13 + $0x438] ss:$48 sps:$4 sm:$0xff]  }
 0x126   :  { %3853 = vmatprep.subr.bf16.mxu0 %v8329_v20  ;;  %3976 = vmatprep.subr.bf16.mxu1 %v8332_v21  ;;  %v8407_v20 = vld [vmem:[#allocation13 + $0x494] ss:$48 sps:$4 sm:$0xff]   ;;  %v8410_v21 = vld [vmem:[#allocation13 + $0x49c] ss:$48 sps:$4 sm:$0xff]  }
 0x129   :  { %3854 = vmatpush1.bf16.msra.mxu0 %v8327_v22  ;;  %3977 = vmatpush1.bf16.msra.mxu1 %v8330_v23  ;;  %v8405_v22 = vld [vmem:[#allocation13 + $0x490] ss:$48 sps:$4 sm:$0xff]   ;;  %v8408_v23 = vld [vmem:[#allocation13 + $0x498] ss:$48 sps:$4 sm:$0xff]  }
 0x12a   :  { %3987 = vmatprep.subr.bf16.mxu0 %v8335_v25  ;;  %4110 = vmatprep.subr.bf16.mxu1 %v8338_v26  ;;  %v8413_v25 = vld [vmem:[#allocation13 + $0x4f4] ss:$48 sps:$4 sm:$0xff]   ;;  %v8416_v26 = vld [vmem:[#allocation13 + $0x4fc] ss:$48 sps:$4 sm:$0xff]  }
 0x12c   :  { %3856 = vmatmul.mubr.bf16.vlgmr.msra.gmra.mrb[0].mxu0 %v9304_v27  ;;  %3979 = vmatmul.mubr.bf16.vlgmr.msra.gmra.mrb[0].mxu1 %v9304_v27 }
 0x12d   :  { %3988 = vmatpush1.bf16.msra.mxu0 %v8333_v28  ;;  %4111 = vmatpush1.bf16.msra.mxu1 %v8336_v29  ;;  %v8411_v28 = vld [vmem:[#allocation13 + $0x4f0] ss:$48 sps:$4 sm:$0xff]   ;;  %v8414_v29 = vld [vmem:[#allocation13 + $0x4f8] ss:$48 sps:$4 sm:$0xff]  }
 0x12e   :  { %3989 = vmatprep.subr.bf16.mxu0 %v8341_v31  ;;  %4112 = vmatprep.subr.bf16.mxu1 %v8344_v33  ;;  %v8419_v31 = vld [vmem:[#allocation13 + $0x554] ss:$48 sps:$4 sm:$0xff]   ;;  %v8422_v33 = vld [vmem:[#allocation13 + $0x55c] ss:$48 sps:$4 sm:$0xff]  }
 0x12f   :  { %4019 = vmatprep.mubr.bf16.mxu0 %v9264_v48  ;;  %4142 = vmatprep.mubr.bf16.mxu1 %v9264_v48 }
 0x131   :  { %3990 = vmatpush1.bf16.msra.mxu0 %v8339_v34  ;;  %4113 = vmatpush1.bf16.msra.mxu1 %v8342_v35  ;;  %v8417_v34 = vld [vmem:[#allocation13 + $0x550] ss:$48 sps:$4 sm:$0xff]   ;;  %v8420_v35 = vld [vmem:[#allocation13 + $0x558] ss:$48 sps:$4 sm:$0xff]  }
 0x132   :  { %3991 = vmatprep.subr.bf16.mxu0 %v8347_v36  ;;  %4114 = vmatprep.subr.bf16.mxu1 %v8350_v37  ;;  %v8425_v36 = vld [vmem:[#allocation13 + $0x5b4] ss:$48 sps:$4 sm:$0xff]   ;;  %v8428_v37 = vld [vmem:[#allocation13 + $0x5bc] ss:$48 sps:$4 sm:$0xff]  }
 0x135   :  { %3992 = vmatpush1.bf16.msra.mxu0 %v8345_v38  ;;  %4115 = vmatpush1.bf16.msra.mxu1 %v8348_v39  ;;  %v8423_v38 = vld [vmem:[#allocation13 + $0x5b0] ss:$48 sps:$4 sm:$0xff]   ;;  %v8426_v39 = vld [vmem:[#allocation13 + $0x5b8] ss:$48 sps:$4 sm:$0xff]  }
 0x136   :  { %3993 = vmatprep.subr.bf16.mxu0 %v8353_v40  ;;  %4116 = vmatprep.subr.bf16.mxu1 %v8356_v41  ;;  %v8431_v40 = vld [vmem:[#allocation13 + $0x614] ss:$48 sps:$4 sm:$0xff]   ;;  %v8434_v41 = vld [vmem:[#allocation13 + $0x61c] ss:$48 sps:$4 sm:$0xff]  }
 0x139   :  { %3994 = vmatpush1.bf16.msra.mxu0 %v8351_v42  ;;  %4117 = vmatpush1.bf16.msra.mxu1 %v8354_v43  ;;  %v8429_v42 = vld [vmem:[#allocation13 + $0x610] ss:$48 sps:$4 sm:$0xff]   ;;  %v8432_v43 = vld [vmem:[#allocation13 + $0x618] ss:$48 sps:$4 sm:$0xff]  }
 0x13a   :  { %3995 = vmatprep.subr.bf16.mxu0 %v8359_v44  ;;  %4118 = vmatprep.subr.bf16.mxu1 %v8362_v45  ;;  %v8437_v44 = vld [vmem:[#allocation13 + $0x674] ss:$48 sps:$4 sm:$0xff]   ;;  %v8440_v45 = vld [vmem:[#allocation13 + $0x67c] ss:$48 sps:$4 sm:$0xff]  }
 0x13d   :  { %3996 = vmatpush1.bf16.msra.mxu0 %v8357_v47  ;;  %4119 = vmatpush1.bf16.msra.mxu1 %v8360_v49  ;;  %v8435_v47 = vld [vmem:[#allocation13 + $0x670] ss:$48 sps:$4 sm:$0xff]   ;;  %v8438_v49 = vld [vmem:[#allocation13 + $0x678] ss:$48 sps:$4 sm:$0xff]  }
 0x13e   :  { %3997 = vmatprep.subr.bf16.mxu0 %v8365_v50  ;;  %4120 = vmatprep.subr.bf16.mxu1 %v8368_v51  ;;  %v8443_v50 = vld [vmem:[#allocation13 + $0x6d4] ss:$48 sps:$4 sm:$0xff]   ;;  %v8446_v51 = vld [vmem:[#allocation13 + $0x6dc] ss:$48 sps:$4 sm:$0xff]  }
 0x141   :  { %3998 = vmatpush1.bf16.msra.mxu0 %v8363_v52  ;;  %4121 = vmatpush1.bf16.msra.mxu1 %v8366_v53  ;;  %v8441_v52 = vld [vmem:[#allocation13 + $0x6d0] ss:$48 sps:$4 sm:$0xff]   ;;  %v8444_v53 = vld [vmem:[#allocation13 + $0x6d8] ss:$48 sps:$4 sm:$0xff]  }
 0x142   :  { %3999 = vmatprep.subr.bf16.mxu0 %v8371_v54  ;;  %4122 = vmatprep.subr.bf16.mxu1 %v8374_v55  ;;  %v8449_v54 = vld [vmem:[#allocation13 + $0x734] ss:$48 sps:$4 sm:$0xff]   ;;  %v8452_v55 = vld [vmem:[#allocation13 + $0x73c] ss:$48 sps:$4 sm:$0xff]  }
 0x145   :  { %4000 = vmatpush1.bf16.msra.mxu0 %v8369_v56  ;;  %4123 = vmatpush1.bf16.msra.mxu1 %v8372_v57  ;;  %v8447_v56 = vld [vmem:[#allocation13 + $0x730] ss:$48 sps:$4 sm:$0xff]   ;;  %v8450_v57 = vld [vmem:[#allocation13 + $0x738] ss:$48 sps:$4 sm:$0xff]  }
 0x146   :  { %4001 = vmatprep.subr.bf16.mxu0 %v8377_v58  ;;  %4124 = vmatprep.subr.bf16.mxu1 %v8380_v59  ;;  %v8455_v58 = vld [vmem:[#allocation13 + $0x794] ss:$48 sps:$4 sm:$0xff]   ;;  %v8458_v59 = vld [vmem:[#allocation13 + $0x79c] ss:$48 sps:$4 sm:$0xff]  }
 0x149   :  { %4002 = vmatpush1.bf16.msra.mxu0 %v8375_v60  ;;  %4125 = vmatpush1.bf16.msra.mxu1 %v8378_v61  ;;  %v8453_v60 = vld [vmem:[#allocation13 + $0x790] ss:$48 sps:$4 sm:$0xff]   ;;  %v8456_v61 = vld [vmem:[#allocation13 + $0x798] ss:$48 sps:$4 sm:$0xff]  }
 0x14a   :  { %4003 = vmatprep.subr.bf16.mxu0 %v8383_v62  ;;  %4126 = vmatprep.subr.bf16.mxu1 %v8386_v63  ;;  %v8461_v62 = vld [vmem:[#allocation13 + $0x7f4] ss:$48 sps:$4 sm:$0xff]   ;;  %v8464_v63 = vld [vmem:[#allocation13 + $0x7fc] ss:$48 sps:$4 sm:$0xff]  }
 0x14d   :  { %4004 = vmatpush1.bf16.msra.mxu0 %v8381_v0  ;;  %4127 = vmatpush1.bf16.msra.mxu1 %v8384_v1  ;;  %v8459_v0 = vld [vmem:[#allocation13 + $0x7f0] ss:$48 sps:$4 sm:$0xff]   ;;  %v8462_v1 = vld [vmem:[#allocation13 + $0x7f8] ss:$48 sps:$4 sm:$0xff]  }
 0x14e   :  { %4005 = vmatprep.subr.bf16.mxu0 %v8389_v3  ;;  %4128 = vmatprep.subr.bf16.mxu1 %v8392_v4  ;;  %v8467_v3 = vld [vmem:[#allocation13 + $0x854] ss:$48 sps:$4 sm:$0xff]   ;;  %v8470_v4 = vld [vmem:[#allocation13 + $0x85c] ss:$48 sps:$4 sm:$0xff]  }
 0x151   :  { %4006 = vmatpush1.bf16.msra.mxu0 %v8387_v6  ;;  %4129 = vmatpush1.bf16.msra.mxu1 %v8390_v7  ;;  %v8465_v6 = vld [vmem:[#allocation13 + $0x850] ss:$48 sps:$4 sm:$0xff]   ;;  %v8468_v7 = vld [vmem:[#allocation13 + $0x858] ss:$48 sps:$4 sm:$0xff]  }
 0x152   :  { %4007 = vmatprep.subr.bf16.mxu0 %v8395_v8  ;;  %4130 = vmatprep.subr.bf16.mxu1 %v8398_v9  ;;  %v8473_v8 = vld [vmem:[#allocation13 + $0x8b4] ss:$48 sps:$4 sm:$0xff]   ;;  %v8476_v9 = vld [vmem:[#allocation13 + $0x8bc] ss:$48 sps:$4 sm:$0xff]  }
 0x155   :  { %4008 = vmatpush1.bf16.msra.mxu0 %v8393_v10  ;;  %4131 = vmatpush1.bf16.msra.mxu1 %v8396_v12  ;;  %v8471_v10 = vld [vmem:[#allocation13 + $0x8b0] ss:$48 sps:$4 sm:$0xff]   ;;  %v8474_v12 = vld [vmem:[#allocation13 + $0x8b8] ss:$48 sps:$4 sm:$0xff]  }
 0x156   :  { %4009 = vmatprep.subr.bf16.mxu0 %v8401_v13  ;;  %4132 = vmatprep.subr.bf16.mxu1 %v8404_v15  ;;  %v8479_v13 = vld [vmem:[#allocation13 + $0x914] ss:$48 sps:$4 sm:$0xff]   ;;  %v8482_v15 = vld [vmem:[#allocation13 + $0x91c] ss:$48 sps:$4 sm:$0xff]  }
 0x159   :  { %4010 = vmatpush1.bf16.msra.mxu0 %v8399_v16  ;;  %4133 = vmatpush1.bf16.msra.mxu1 %v8402_v17  ;;  %v8477_v16 = vld [vmem:[#allocation13 + $0x910] ss:$48 sps:$4 sm:$0xff]   ;;  %v8480_v17 = vld [vmem:[#allocation13 + $0x918] ss:$48 sps:$4 sm:$0xff]  }
 0x15a   :  { %4011 = vmatprep.subr.bf16.mxu0 %v8407_v20  ;;  %4134 = vmatprep.subr.bf16.mxu1 %v8410_v21  ;;  %v8485_v20 = vld [vmem:[#allocation13 + $0x974] ss:$48 sps:$4 sm:$0xff]   ;;  %v8488_v21 = vld [vmem:[#allocation13 + $0x97c] ss:$48 sps:$4 sm:$0xff]  }
 0x15d   :  { %4012 = vmatpush1.bf16.msra.mxu0 %v8405_v22  ;;  %4135 = vmatpush1.bf16.msra.mxu1 %v8408_v23  ;;  %v8483_v22 = vld [vmem:[#allocation13 + $0x970] ss:$48 sps:$4 sm:$0xff]   ;;  %v8486_v23 = vld [vmem:[#allocation13 + $0x978] ss:$48 sps:$4 sm:$0xff]  }
 0x15e   :  { %4013 = vmatprep.subr.bf16.mxu0 %v8413_v25  ;;  %4136 = vmatprep.subr.bf16.mxu1 %v8416_v26  ;;  %v8491_v25 = vld [vmem:[#allocation13 + $0x9d4] ss:$48 sps:$4 sm:$0xff]   ;;  %v8494_v26 = vld [vmem:[#allocation13 + $0x9dc] ss:$48 sps:$4 sm:$0xff]  }
 0x161   :  { %4014 = vmatpush1.bf16.msra.mxu0 %v8411_v28  ;;  %4137 = vmatpush1.bf16.msra.mxu1 %v8414_v29  ;;  %v8489_v28 = vld [vmem:[#allocation13 + $0x9d0] ss:$48 sps:$4 sm:$0xff]   ;;  %v8492_v29 = vld [vmem:[#allocation13 + $0x9d8] ss:$48 sps:$4 sm:$0xff]  }
 0x162   :  { %4015 = vmatprep.subr.bf16.mxu0 %v8419_v31  ;;  %4138 = vmatprep.subr.bf16.mxu1 %v8422_v33  ;;  %v8497_v31 = vld [vmem:[#allocation13 + $0xa34] ss:$48 sps:$4 sm:$0xff]   ;;  %v8500_v33 = vld [vmem:[#allocation13 + $0xa3c] ss:$48 sps:$4 sm:$0xff]  }
 0x165   :  { %4016 = vmatpush1.bf16.msra.mxu0 %v8417_v34  ;;  %4139 = vmatpush1.bf16.msra.mxu1 %v8420_v35  ;;  %v8495_v34 = vld [vmem:[#allocation13 + $0xa30] ss:$48 sps:$4 sm:$0xff]   ;;  %v8498_v35 = vld [vmem:[#allocation13 + $0xa38] ss:$48 sps:$4 sm:$0xff]  }
 0x166   :  { %4017 = vmatprep.subr.bf16.mxu0 %v8425_v36  ;;  %4140 = vmatprep.subr.bf16.mxu1 %v8428_v37  ;;  %v8503_v36 = vld [vmem:[#allocation13 + $0xa94] ss:$48 sps:$4 sm:$0xff]   ;;  %v8506_v37 = vld [vmem:[#allocation13 + $0xa9c] ss:$48 sps:$4 sm:$0xff]  }
 0x169   :  { %4018 = vmatpush1.bf16.msra.mxu0 %v8423_v38  ;;  %4141 = vmatpush1.bf16.msra.mxu1 %v8426_v39  ;;  %v8501_v38 = vld [vmem:[#allocation13 + $0xa90] ss:$48 sps:$4 sm:$0xff]   ;;  %v8504_v39 = vld [vmem:[#allocation13 + $0xa98] ss:$48 sps:$4 sm:$0xff]  }
 0x16a   :  { %4028 = vmatprep.subr.bf16.mxu0 %v8431_v40  ;;  %4151 = vmatprep.subr.bf16.mxu1 %v8434_v41  ;;  %v8509_v40 = vld [vmem:[#allocation13 + $0xaf4] ss:$48 sps:$4 sm:$0xff]   ;;  %v8512_v41 = vld [vmem:[#allocation13 + $0xafc] ss:$48 sps:$4 sm:$0xff]  }
 0x16c   :  { %4020 = vmatmul.mubr.bf16.vlgmr.msra.gmra.mrb[4].mxu0 %v9272_v5  ;;  %4143 = vmatmul.mubr.bf16.vlgmr.msra.gmra.mrb[4].mxu1 %v9272_v5 }
 0x16d   :  { %4029 = vmatpush1.bf16.msra.mxu0 %v8429_v42  ;;  %4152 = vmatpush1.bf16.msra.mxu1 %v8432_v43  ;;  %v8507_v42 = vld [vmem:[#allocation13 + $0xaf0] ss:$48 sps:$4 sm:$0xff]   ;;  %v8510_v43 = vld [vmem:[#allocation13 + $0xaf8] ss:$48 sps:$4 sm:$0xff]  }
 0x16e   :  { %4030 = vmatprep.subr.bf16.mxu0 %v8437_v44  ;;  %4153 = vmatprep.subr.bf16.mxu1 %v8440_v45  ;;  %v8515_v44 = vld [vmem:[#allocation13 + $0xb54] ss:$48 sps:$4 sm:$0xff]   ;;  %v8518_v45 = vld [vmem:[#allocation13 + $0xb5c] ss:$48 sps:$4 sm:$0xff]  }
 0x16f   :  { %4060 = vmatprep.mubr.bf16.mxu0 %v9280_v32  ;;  %4183 = vmatprep.mubr.bf16.mxu1 %v9280_v32 }
 0x171   :  { %4031 = vmatpush1.bf16.msra.mxu0 %v8435_v47  ;;  %4154 = vmatpush1.bf16.msra.mxu1 %v8438_v49  ;;  %v8513_v47 = vld [vmem:[#allocation13 + $0xb50] ss:$48 sps:$4 sm:$0xff]   ;;  %v8516_v49 = vld [vmem:[#allocation13 + $0xb58] ss:$48 sps:$4 sm:$0xff]  }
 0x172   :  { %4032 = vmatprep.subr.bf16.mxu0 %v8443_v50  ;;  %4155 = vmatprep.subr.bf16.mxu1 %v8446_v51  ;;  %v8521_v50 = vld [vmem:[#allocation13 + $0xbb4] ss:$48 sps:$4 sm:$0xff]   ;;  %v8524_v51 = vld [vmem:[#allocation13 + $0xbbc] ss:$48 sps:$4 sm:$0xff]  }
 0x175   :  { %4033 = vmatpush1.bf16.msra.mxu0 %v8441_v52  ;;  %4156 = vmatpush1.bf16.msra.mxu1 %v8444_v53  ;;  %v8519_v52 = vld [vmem:[#allocation13 + $0xbb0] ss:$48 sps:$4 sm:$0xff]   ;;  %v8522_v53 = vld [vmem:[#allocation13 + $0xbb8] ss:$48 sps:$4 sm:$0xff]  }
 0x176   :  { %4034 = vmatprep.subr.bf16.mxu0 %v8449_v54  ;;  %4157 = vmatprep.subr.bf16.mxu1 %v8452_v55  ;;  %v8527_v54 = vld [vmem:[#allocation13 + $0xc14] ss:$48 sps:$4 sm:$0xff]   ;;  %v8530_v55 = vld [vmem:[#allocation13 + $0xc1c] ss:$48 sps:$4 sm:$0xff]  }
 0x179   :  { %4035 = vmatpush1.bf16.msra.mxu0 %v8447_v56  ;;  %4158 = vmatpush1.bf16.msra.mxu1 %v8450_v57  ;;  %v8525_v56 = vld [vmem:[#allocation13 + $0xc10] ss:$48 sps:$4 sm:$0xff]   ;;  %v8528_v57 = vld [vmem:[#allocation13 + $0xc18] ss:$48 sps:$4 sm:$0xff]  }
 0x17a   :  { %4036 = vmatprep.subr.bf16.mxu0 %v8455_v58  ;;  %4159 = vmatprep.subr.bf16.mxu1 %v8458_v59  ;;  %v8533_v58 = vld [vmem:[#allocation13 + $0xc74] ss:$48 sps:$4 sm:$0xff]   ;;  %v8536_v59 = vld [vmem:[#allocation13 + $0xc7c] ss:$48 sps:$4 sm:$0xff]  }
 0x17d   :  { %4037 = vmatpush1.bf16.msra.mxu0 %v8453_v60  ;;  %4160 = vmatpush1.bf16.msra.mxu1 %v8456_v61  ;;  %v8531_v60 = vld [vmem:[#allocation13 + $0xc70] ss:$48 sps:$4 sm:$0xff]   ;;  %v8534_v61 = vld [vmem:[#allocation13 + $0xc78] ss:$48 sps:$4 sm:$0xff]  }
 0x17e   :  { %4038 = vmatprep.subr.bf16.mxu0 %v8461_v62  ;;  %4161 = vmatprep.subr.bf16.mxu1 %v8464_v63  ;;  %v8539_v62 = vld [vmem:[#allocation13 + $0xcd4] ss:$48 sps:$4 sm:$0xff]   ;;  %v8542_v63 = vld [vmem:[#allocation13 + $0xcdc] ss:$48 sps:$4 sm:$0xff]  }
 0x181   :  { %4039 = vmatpush1.bf16.msra.mxu0 %v8459_v0  ;;  %4162 = vmatpush1.bf16.msra.mxu1 %v8462_v1  ;;  %v8537_v0 = vld [vmem:[#allocation13 + $0xcd0] ss:$48 sps:$4 sm:$0xff]   ;;  %v8540_v1 = vld [vmem:[#allocation13 + $0xcd8] ss:$48 sps:$4 sm:$0xff]  }
 0x182   :  { %4040 = vmatprep.subr.bf16.mxu0 %v8467_v3  ;;  %4163 = vmatprep.subr.bf16.mxu1 %v8470_v4  ;;  %v8545_v3 = vld [vmem:[#allocation13 + $0xd34] ss:$48 sps:$4 sm:$0xff]   ;;  %v8548_v4 = vld [vmem:[#allocation13 + $0xd3c] ss:$48 sps:$4 sm:$0xff]  }
 0x185   :  { %4041 = vmatpush1.bf16.msra.mxu0 %v8465_v6  ;;  %4164 = vmatpush1.bf16.msra.mxu1 %v8468_v7  ;;  %v8543_v6 = vld [vmem:[#allocation13 + $0xd30] ss:$48 sps:$4 sm:$0xff]   ;;  %v8546_v7 = vld [vmem:[#allocation13 + $0xd38] ss:$48 sps:$4 sm:$0xff]  }
 0x186   :  { %4042 = vmatprep.subr.bf16.mxu0 %v8473_v8  ;;  %4165 = vmatprep.subr.bf16.mxu1 %v8476_v9  ;;  %v8551_v8 = vld [vmem:[#allocation13 + $0xd94] ss:$48 sps:$4 sm:$0xff]   ;;  %v8554_v9 = vld [vmem:[#allocation13 + $0xd9c] ss:$48 sps:$4 sm:$0xff]  }
 0x189   :  { %4043 = vmatpush1.bf16.msra.mxu0 %v8471_v10  ;;  %4166 = vmatpush1.bf16.msra.mxu1 %v8474_v12  ;;  %v8549_v10 = vld [vmem:[#allocation13 + $0xd90] ss:$48 sps:$4 sm:$0xff]   ;;  %v8552_v12 = vld [vmem:[#allocation13 + $0xd98] ss:$48 sps:$4 sm:$0xff]  }
 0x18a   :  { %4044 = vmatprep.subr.bf16.mxu0 %v8479_v13  ;;  %4167 = vmatprep.subr.bf16.mxu1 %v8482_v15  ;;  %v8557_v13 = vld [vmem:[#allocation13 + $0xdf4] ss:$48 sps:$4 sm:$0xff]   ;;  %v8560_v15 = vld [vmem:[#allocation13 + $0xdfc] ss:$48 sps:$4 sm:$0xff]  }
 0x18d   :  { %4045 = vmatpush1.bf16.msra.mxu0 %v8477_v16  ;;  %4168 = vmatpush1.bf16.msra.mxu1 %v8480_v17  ;;  %v8555_v16 = vld [vmem:[#allocation13 + $0xdf0] ss:$48 sps:$4 sm:$0xff]   ;;  %v8558_v17 = vld [vmem:[#allocation13 + $0xdf8] ss:$48 sps:$4 sm:$0xff]  }
 0x18e   :  { %4046 = vmatprep.subr.bf16.mxu0 %v8485_v20  ;;  %4169 = vmatprep.subr.bf16.mxu1 %v8488_v21  ;;  %v8563_v20 = vld [vmem:[#allocation13 + $0xe54] ss:$48 sps:$4 sm:$0xff]   ;;  %v8566_v21 = vld [vmem:[#allocation13 + $0xe5c] ss:$48 sps:$4 sm:$0xff]  }
 0x191   :  { %4047 = vmatpush1.bf16.msra.mxu0 %v8483_v22  ;;  %4170 = vmatpush1.bf16.msra.mxu1 %v8486_v23  ;;  %v8561_v22 = vld [vmem:[#allocation13 + $0xe50] ss:$48 sps:$4 sm:$0xff]   ;;  %v8564_v23 = vld [vmem:[#allocation13 + $0xe58] ss:$48 sps:$4 sm:$0xff]  }
 0x192   :  { %4048 = vmatprep.subr.bf16.mxu0 %v8491_v25  ;;  %4171 = vmatprep.subr.bf16.mxu1 %v8494_v26  ;;  %v8569_v25 = vld [vmem:[#allocation13 + $0xeb4] ss:$48 sps:$4 sm:$0xff]   ;;  %v8572_v26 = vld [vmem:[#allocation13 + $0xebc] ss:$48 sps:$4 sm:$0xff]  }
 0x195   :  { %4049 = vmatpush1.bf16.msra.mxu0 %v8489_v28  ;;  %4172 = vmatpush1.bf16.msra.mxu1 %v8492_v29  ;;  %v8567_v28 = vld [vmem:[#allocation13 + $0xeb0] ss:$48 sps:$4 sm:$0xff]   ;;  %v8570_v29 = vld [vmem:[#allocation13 + $0xeb8] ss:$48 sps:$4 sm:$0xff]  }
 0x196   :  { %4050 = vmatprep.subr.bf16.mxu0 %v8497_v31  ;;  %4173 = vmatprep.subr.bf16.mxu1 %v8500_v33  ;;  %v8575_v31 = vld [vmem:[#allocation13 + $0xf14] ss:$48 sps:$4 sm:$0xff]   ;;  %v8578_v33 = vld [vmem:[#allocation13 + $0xf1c] ss:$48 sps:$4 sm:$0xff]  }
 0x199   :  { %4051 = vmatpush1.bf16.msra.mxu0 %v8495_v34  ;;  %4174 = vmatpush1.bf16.msra.mxu1 %v8498_v35  ;;  %v8573_v34 = vld [vmem:[#allocation13 + $0xf10] ss:$48 sps:$4 sm:$0xff]   ;;  %v8576_v35 = vld [vmem:[#allocation13 + $0xf18] ss:$48 sps:$4 sm:$0xff]  }
 0x19a   :  { %4052 = vmatprep.subr.bf16.mxu0 %v8503_v36  ;;  %4175 = vmatprep.subr.bf16.mxu1 %v8506_v37  ;;  %v8581_v36 = vld [vmem:[#allocation13 + $0xf74] ss:$48 sps:$4 sm:$0xff]   ;;  %v8584_v37 = vld [vmem:[#allocation13 + $0xf7c] ss:$48 sps:$4 sm:$0xff]  }
 0x19d   :  { %4053 = vmatpush1.bf16.msra.mxu0 %v8501_v38  ;;  %4176 = vmatpush1.bf16.msra.mxu1 %v8504_v39  ;;  %v8579_v38 = vld [vmem:[#allocation13 + $0xf70] ss:$48 sps:$4 sm:$0xff]   ;;  %v8582_v39 = vld [vmem:[#allocation13 + $0xf78] ss:$48 sps:$4 sm:$0xff]  }
 0x19e   :  { %4054 = vmatprep.subr.bf16.mxu0 %v8509_v40  ;;  %4177 = vmatprep.subr.bf16.mxu1 %v8512_v41  ;;  %v8587_v40 = vld [vmem:[#allocation13 + $0xfd4] ss:$48 sps:$4 sm:$0xff]   ;;  %v8590_v41 = vld [vmem:[#allocation13 + $0xfdc] ss:$48 sps:$4 sm:$0xff]  }
 0x1a1   :  { %4055 = vmatpush1.bf16.msra.mxu0 %v8507_v42  ;;  %4178 = vmatpush1.bf16.msra.mxu1 %v8510_v43  ;;  %v8585_v42 = vld [vmem:[#allocation13 + $0xfd0] ss:$48 sps:$4 sm:$0xff]   ;;  %v8588_v43 = vld [vmem:[#allocation13 + $0xfd8] ss:$48 sps:$4 sm:$0xff]  }
 0x1a2   :  { %4056 = vmatprep.subr.bf16.mxu0 %v8515_v44  ;;  %4179 = vmatprep.subr.bf16.mxu1 %v8518_v45  ;;  %v8593_v44 = vld [vmem:[#allocation13 + $0x1034] ss:$48 sps:$4 sm:$0xff]   ;;  %v8596_v45 = vld [vmem:[#allocation13 + $0x103c] ss:$48 sps:$4 sm:$0xff]  }
 0x1a5   :  { %4057 = vmatpush1.bf16.msra.mxu0 %v8513_v47  ;;  %4180 = vmatpush1.bf16.msra.mxu1 %v8516_v49  ;;  %v8591_v47 = vld [vmem:[#allocation13 + $0x1030] ss:$48 sps:$4 sm:$0xff]   ;;  %v8594_v49 = vld [vmem:[#allocation13 + $0x1038] ss:$48 sps:$4 sm:$0xff]  }
 0x1a6   :  { %4058 = vmatprep.subr.bf16.mxu0 %v8521_v50  ;;  %4181 = vmatprep.subr.bf16.mxu1 %v8524_v51  ;;  %v8599_v50 = vld [vmem:[#allocation13 + $0x1094] ss:$48 sps:$4 sm:$0xff]   ;;  %v8602_v51 = vld [vmem:[#allocation13 + $0x109c] ss:$48 sps:$4 sm:$0xff]  }
 0x1a9   :  { %4059 = vmatpush1.bf16.msra.mxu0 %v8519_v52  ;;  %4182 = vmatpush1.bf16.msra.mxu1 %v8522_v53  ;;  %v8597_v52 = vld [vmem:[#allocation13 + $0x1090] ss:$48 sps:$4 sm:$0xff]   ;;  %v8600_v53 = vld [vmem:[#allocation13 + $0x1098] ss:$48 sps:$4 sm:$0xff]  }
 0x1aa   :  { %4069 = vmatprep.subr.bf16.mxu0 %v8527_v54  ;;  %4192 = vmatprep.subr.bf16.mxu1 %v8530_v55  ;;  %v8605_v54 = vld [vmem:[#allocation13 + $0x10f4] ss:$48 sps:$4 sm:$0xff]   ;;  %v8608_v55 = vld [vmem:[#allocation13 + $0x10fc] ss:$48 sps:$4 sm:$0xff]  }
 0x1ac   :  { %4061 = vmatmul.mubr.bf16.vlgmr.msra.gmra.mrb[4].mxu0 %v9288_v14  ;;  %4184 = vmatmul.mubr.bf16.vlgmr.msra.gmra.mrb[4].mxu1 %v9288_v14 }
 0x1ad   :  { %4070 = vmatpush1.bf16.msra.mxu0 %v8525_v56  ;;  %4193 = vmatpush1.bf16.msra.mxu1 %v8528_v57  ;;  %v8603_v56 = vld [vmem:[#allocation13 + $0x10f0] ss:$48 sps:$4 sm:$0xff]   ;;  %v8606_v57 = vld [vmem:[#allocation13 + $0x10f8] ss:$48 sps:$4 sm:$0xff]  }
 0x1ae   :  { %4071 = vmatprep.subr.bf16.mxu0 %v8533_v58  ;;  %4194 = vmatprep.subr.bf16.mxu1 %v8536_v59  ;;  %v8611_v58 = vld [vmem:[#allocation13 + $0x1154] ss:$48 sps:$4 sm:$0xff]   ;;  %v8614_v59 = vld [vmem:[#allocation13 + $0x115c] ss:$48 sps:$4 sm:$0xff]  }
 0x1af   :  { %4101 = vmatprep.mubr.bf16.mxu0 %v9294_v19  ;;  %4224 = vmatprep.mubr.bf16.mxu1 %v9294_v19 }
 0x1b1   :  { %4072 = vmatpush1.bf16.msra.mxu0 %v8531_v60  ;;  %4195 = vmatpush1.bf16.msra.mxu1 %v8534_v61  ;;  %v8609_v60 = vld [vmem:[#allocation13 + $0x1150] ss:$48 sps:$4 sm:$0xff]   ;;  %v8612_v61 = vld [vmem:[#allocation13 + $0x1158] ss:$48 sps:$4 sm:$0xff]  }
 0x1b2   :  { %4073 = vmatprep.subr.bf16.mxu0 %v8539_v62  ;;  %4196 = vmatprep.subr.bf16.mxu1 %v8542_v63  ;;  %v8617_v62 = vld [vmem:[#allocation13 + $0x11b4] ss:$48 sps:$4 sm:$0xff]   ;;  %v8620_v63 = vld [vmem:[#allocation13 + $0x11bc] ss:$48 sps:$4 sm:$0xff]  }
 0x1b5   :  { %4074 = vmatpush1.bf16.msra.mxu0 %v8537_v0  ;;  %4197 = vmatpush1.bf16.msra.mxu1 %v8540_v1  ;;  %v8615_v0 = vld [vmem:[#allocation13 + $0x11b0] ss:$48 sps:$4 sm:$0xff]   ;;  %v8618_v1 = vld [vmem:[#allocation13 + $0x11b8] ss:$48 sps:$4 sm:$0xff]  }
 0x1b6   :  { %4075 = vmatprep.subr.bf16.mxu0 %v8545_v3  ;;  %4198 = vmatprep.subr.bf16.mxu1 %v8548_v4  ;;  %v8623_v3 = vld [vmem:[#allocation13 + $0x24] ss:$48 sps:$4 sm:$0xff]   ;;  %v8626_v4 = vld [vmem:[#allocation13 + $0x2c] ss:$48 sps:$4 sm:$0xff]  }
 0x1b9   :  { %4076 = vmatpush1.bf16.msra.mxu0 %v8543_v6  ;;  %4199 = vmatpush1.bf16.msra.mxu1 %v8546_v7  ;;  %v8621_v6 = vld [vmem:[#allocation13 + $0x20] ss:$48 sps:$4 sm:$0xff]   ;;  %v8624_v7 = vld [vmem:[#allocation13 + $0x28] ss:$48 sps:$4 sm:$0xff]  }
 0x1ba   :  { %4077 = vmatprep.subr.bf16.mxu0 %v8551_v8  ;;  %4200 = vmatprep.subr.bf16.mxu1 %v8554_v9  ;;  %v8629_v8 = vld [vmem:[#allocation13 + $0x84] ss:$48 sps:$4 sm:$0xff]   ;;  %v8632_v9 = vld [vmem:[#allocation13 + $0x8c] ss:$48 sps:$4 sm:$0xff]  }
 0x1bd   :  { %4078 = vmatpush1.bf16.msra.mxu0 %v8549_v10  ;;  %4201 = vmatpush1.bf16.msra.mxu1 %v8552_v12  ;;  %v8627_v10 = vld [vmem:[#allocation13 + $0x80] ss:$48 sps:$4 sm:$0xff]   ;;  %v8630_v12 = vld [vmem:[#allocation13 + $0x88] ss:$48 sps:$4 sm:$0xff]  }
 0x1be   :  { %4079 = vmatprep.subr.bf16.mxu0 %v8557_v13  ;;  %4202 = vmatprep.subr.bf16.mxu1 %v8560_v15  ;;  %v8635_v13 = vld [vmem:[#allocation13 + $0xe4] ss:$48 sps:$4 sm:$0xff]   ;;  %v8638_v15 = vld [vmem:[#allocation13 + $0xec] ss:$48 sps:$4 sm:$0xff]  }
 0x1c1   :  { %4080 = vmatpush1.bf16.msra.mxu0 %v8555_v16  ;;  %4203 = vmatpush1.bf16.msra.mxu1 %v8558_v17  ;;  %v8633_v16 = vld [vmem:[#allocation13 + $0xe0] ss:$48 sps:$4 sm:$0xff]   ;;  %v8636_v17 = vld [vmem:[#allocation13 + $0xe8] ss:$48 sps:$4 sm:$0xff]  }
 0x1c2   :  { %4081 = vmatprep.subr.bf16.mxu0 %v8563_v20  ;;  %4204 = vmatprep.subr.bf16.mxu1 %v8566_v21  ;;  %v8641_v20 = vld [vmem:[#allocation13 + $0x144] ss:$48 sps:$4 sm:$0xff]   ;;  %v8644_v21 = vld [vmem:[#allocation13 + $0x14c] ss:$48 sps:$4 sm:$0xff]  }
 0x1c5   :  { %4082 = vmatpush1.bf16.msra.mxu0 %v8561_v22  ;;  %4205 = vmatpush1.bf16.msra.mxu1 %v8564_v23  ;;  %v8639_v22 = vld [vmem:[#allocation13 + $0x140] ss:$48 sps:$4 sm:$0xff]   ;;  %v8642_v23 = vld [vmem:[#allocation13 + $0x148] ss:$48 sps:$4 sm:$0xff]  }
 0x1c6   :  { %4083 = vmatprep.subr.bf16.mxu0 %v8569_v25  ;;  %4206 = vmatprep.subr.bf16.mxu1 %v8572_v26  ;;  %v8647_v25 = vld [vmem:[#allocation13 + $0x1a4] ss:$48 sps:$4 sm:$0xff]   ;;  %v8650_v26 = vld [vmem:[#allocation13 + $0x1ac] ss:$48 sps:$4 sm:$0xff]  }
 0x1c9   :  { %4084 = vmatpush1.bf16.msra.mxu0 %v8567_v28  ;;  %4207 = vmatpush1.bf16.msra.mxu1 %v8570_v29  ;;  %v8645_v28 = vld [vmem:[#allocation13 + $0x1a0] ss:$48 sps:$4 sm:$0xff]   ;;  %v8653_v29 = vld [vmem:[#allocation13 + $0x204] ss:$48 sps:$4 sm:$0xff]  }
 0x1ca   :  { %4085 = vmatprep.subr.bf16.mxu0 %v8575_v31  ;;  %4208 = vmatprep.subr.bf16.mxu1 %v8578_v33  ;;  %v8656_v31 = vld [vmem:[#allocation13 + $0x20c] ss:$48 sps:$4 sm:$0xff]   ;;  %v8651_v33 = vld [vmem:[#allocation13 + $0x200] ss:$48 sps:$4 sm:$0xff]  }
 0x1cd   :  { %4086 = vmatpush1.bf16.msra.mxu0 %v8573_v34  ;;  %4209 = vmatpush1.bf16.msra.mxu1 %v8576_v35  ;;  %v8654_v34 = vld [vmem:[#allocation13 + $0x208] ss:$48 sps:$4 sm:$0xff]   ;;  %v8659_v35 = vld [vmem:[#allocation13 + $0x264] ss:$48 sps:$4 sm:$0xff]  }
 0x1ce   :  { %4087 = vmatprep.subr.bf16.mxu0 %v8581_v36  ;;  %4210 = vmatprep.subr.bf16.mxu1 %v8584_v37  ;;  %v8662_v36 = vld [vmem:[#allocation13 + $0x26c] ss:$48 sps:$4 sm:$0xff]  }
 0x1d1   :  { %4088 = vmatpush1.bf16.msra.mxu0 %v8579_v38  ;;  %4211 = vmatpush1.bf16.msra.mxu1 %v8582_v39 }
 0x1d2   :  { %4089 = vmatprep.subr.bf16.mxu0 %v8587_v40  ;;  %4212 = vmatprep.subr.bf16.mxu1 %v8590_v41 }
 0x1d5   :  { %4090 = vmatpush1.bf16.msra.mxu0 %v8585_v42  ;;  %4213 = vmatpush1.bf16.msra.mxu1 %v8588_v43  ;;  %v8657_v43 = vld [vmem:[#allocation13 + $0x260] ss:$48 sps:$4 sm:$0xff]  }
 0x1d6   :  { %4091 = vmatprep.subr.bf16.mxu0 %v8593_v44  ;;  %4214 = vmatprep.subr.bf16.mxu1 %v8596_v45  ;;  %v8660_v44 = vld [vmem:[#allocation13 + $0x268] ss:$48 sps:$4 sm:$0xff]  }
 0x1d9   :  { %4092 = vmatpush1.bf16.msra.mxu0 %v8591_v47  ;;  %4215 = vmatpush1.bf16.msra.mxu1 %v8594_v49  ;;  %v8665_v49 = vld [vmem:[#allocation13 + $0x2c4] ss:$48 sps:$4 sm:$0xff]  }
 0x1da   :  { %4093 = vmatprep.subr.bf16.mxu0 %v8599_v50  ;;  %4216 = vmatprep.subr.bf16.mxu1 %v8602_v51  ;;  %v8668_v50 = vld [vmem:[#allocation13 + $0x2cc] ss:$48 sps:$4 sm:$0xff]   ;;  %v8663_v51 = vld [vmem:[#allocation13 + $0x2c0] ss:$48 sps:$4 sm:$0xff]  }
 0x1dd   :  { %4094 = vmatpush1.bf16.msra.mxu0 %v8597_v52  ;;  %4217 = vmatpush1.bf16.msra.mxu1 %v8600_v53  ;;  %v8666_v52 = vld [vmem:[#allocation13 + $0x2c8] ss:$48 sps:$4 sm:$0xff]   ;;  %v8671_v53 = vld [vmem:[#allocation13 + $0x324] ss:$48 sps:$4 sm:$0xff]  }
 0x1de   :  { %4095 = vmatprep.subr.bf16.mxu0 %v8605_v54  ;;  %4218 = vmatprep.subr.bf16.mxu1 %v8608_v55  ;;  %v8674_v54 = vld [vmem:[#allocation13 + $0x32c] ss:$48 sps:$4 sm:$0xff]   ;;  %v8669_v55 = vld [vmem:[#allocation13 + $0x320] ss:$48 sps:$4 sm:$0xff]  }
 0x1e1   :  { %4096 = vmatpush1.bf16.msra.mxu0 %v8603_v56  ;;  %4219 = vmatpush1.bf16.msra.mxu1 %v8606_v57  ;;  %v8672_v56 = vld [vmem:[#allocation13 + $0x328] ss:$48 sps:$4 sm:$0xff]   ;;  %v8677_v57 = vld [vmem:[#allocation13 + $0x384] ss:$48 sps:$4 sm:$0xff]  }
 0x1e2   :  { %4097 = vmatprep.subr.bf16.mxu0 %v8611_v58  ;;  %4220 = vmatprep.subr.bf16.mxu1 %v8614_v59  ;;  %v8680_v58 = vld [vmem:[#allocation13 + $0x38c] ss:$48 sps:$4 sm:$0xff]   ;;  %v8675_v59 = vld [vmem:[#allocation13 + $0x380] ss:$48 sps:$4 sm:$0xff]  }
 0x1e5   :  { %4098 = vmatpush1.bf16.msra.mxu0 %v8609_v60  ;;  %4221 = vmatpush1.bf16.msra.mxu1 %v8612_v61  ;;  %v8678_v60 = vld [vmem:[#allocation13 + $0x388] ss:$48 sps:$4 sm:$0xff]   ;;  %v8683_v61 = vld [vmem:[#allocation13 + $0x3e4] ss:$48 sps:$4 sm:$0xff]  }
 0x1e6   :  { %4099 = vmatprep.subr.bf16.mxu0 %v8617_v62  ;;  %4222 = vmatprep.subr.bf16.mxu1 %v8620_v63  ;;  %v8686_v62 = vld [vmem:[#allocation13 + $0x3ec] ss:$48 sps:$4 sm:$0xff]   ;;  %v8681_v63 = vld [vmem:[#allocation13 + $0x3e0] ss:$48 sps:$4 sm:$0xff]  }
 0x1e9   :  { %4100 = vmatpush1.bf16.msra.mxu0 %v8615_v0  ;;  %4223 = vmatpush1.bf16.msra.mxu1 %v8618_v1  ;;  %v8684_v0 = vld [vmem:[#allocation13 + $0x3e8] ss:$48 sps:$4 sm:$0xff]   ;;  %v8689_v1 = vld [vmem:[#allocation13 + $0x444] ss:$48 sps:$4 sm:$0xff]  }
 0x1ea   :  { %4233 = vmatprep.subr.bf16.mxu0 %v8623_v3  ;;  %4356 = vmatprep.subr.bf16.mxu1 %v8626_v4  ;;  %v8692_v3 = vld [vmem:[#allocation13 + $0x44c] ss:$48 sps:$4 sm:$0xff]   ;;  %v8687_v4 = vld [vmem:[#allocation13 + $0x440] ss:$48 sps:$4 sm:$0xff]  }
 0x1ec   :  { %4102 = vmatmul.mubr.bf16.vlgmr.msra.gmra.mrb[4].mxu0 %v9304_v27  ;;  %4225 = vmatmul.mubr.bf16.vlgmr.msra.gmra.mrb[4].mxu1 %v9304_v27 }
 0x1ed   :  { %4234 = vmatpush1.bf16.msra.mxu0 %v8621_v6  ;;  %4357 = vmatpush1.bf16.msra.mxu1 %v8624_v7  ;;  %v8690_v6 = vld [vmem:[#allocation13 + $0x448] ss:$48 sps:$4 sm:$0xff]   ;;  %v8695_v7 = vld [vmem:[#allocation13 + $0x4a4] ss:$48 sps:$4 sm:$0xff]  }
 0x1ee   :  { %4235 = vmatprep.subr.bf16.mxu0 %v8629_v8  ;;  %4358 = vmatprep.subr.bf16.mxu1 %v8632_v9  ;;  %v8698_v8 = vld [vmem:[#allocation13 + $0x4ac] ss:$48 sps:$4 sm:$0xff]   ;;  %v8693_v9 = vld [vmem:[#allocation13 + $0x4a0] ss:$48 sps:$4 sm:$0xff]  }
 0x1ef   :  { %4265 = vmatprep.mubr.bf16.mxu0 %v9264_v48  ;;  %4388 = vmatprep.mubr.bf16.mxu1 %v9264_v48  ;;  %v8648_v48 = vld [vmem:[#allocation13 + $0x1a8] ss:$48 sps:$4 sm:$0xff]  }
 0x1f1   :  { %4236 = vmatpush1.bf16.msra.mxu0 %v8627_v10  ;;  %4359 = vmatpush1.bf16.msra.mxu1 %v8630_v12  ;;  %v8696_v10 = vld [vmem:[#allocation13 + $0x4a8] ss:$48 sps:$4 sm:$0xff]   ;;  %v8701_v12 = vld [vmem:[#allocation13 + $0x504] ss:$48 sps:$4 sm:$0xff]  }
 0x1f2   :  { %4237 = vmatprep.subr.bf16.mxu0 %v8635_v13  ;;  %4360 = vmatprep.subr.bf16.mxu1 %v8638_v15  ;;  %v8704_v13 = vld [vmem:[#allocation13 + $0x50c] ss:$48 sps:$4 sm:$0xff]   ;;  %v8699_v15 = vld [vmem:[#allocation13 + $0x500] ss:$48 sps:$4 sm:$0xff]  }
 0x1f5   :  { %4238 = vmatpush1.bf16.msra.mxu0 %v8633_v16  ;;  %4361 = vmatpush1.bf16.msra.mxu1 %v8636_v17  ;;  %v8702_v16 = vld [vmem:[#allocation13 + $0x508] ss:$48 sps:$4 sm:$0xff]   ;;  %v8707_v17 = vld [vmem:[#allocation13 + $0x564] ss:$48 sps:$4 sm:$0xff]  }
 0x1f6   :  { %4239 = vmatprep.subr.bf16.mxu0 %v8641_v20  ;;  %4362 = vmatprep.subr.bf16.mxu1 %v8644_v21  ;;  %v8710_v20 = vld [vmem:[#allocation13 + $0x56c] ss:$48 sps:$4 sm:$0xff]   ;;  %v8705_v21 = vld [vmem:[#allocation13 + $0x560] ss:$48 sps:$4 sm:$0xff]  }
 0x1f9   :  { %4240 = vmatpush1.bf16.msra.mxu0 %v8639_v22  ;;  %4363 = vmatpush1.bf16.msra.mxu1 %v8642_v23  ;;  %v8708_v22 = vld [vmem:[#allocation13 + $0x568] ss:$48 sps:$4 sm:$0xff]   ;;  %v8713_v23 = vld [vmem:[#allocation13 + $0x5c4] ss:$48 sps:$4 sm:$0xff]  }
 0x1fa   :  { %4241 = vmatprep.subr.bf16.mxu0 %v8647_v25  ;;  %4364 = vmatprep.subr.bf16.mxu1 %v8650_v26  ;;  %v8716_v25 = vld [vmem:[#allocation13 + $0x5cc] ss:$48 sps:$4 sm:$0xff]   ;;  %v8711_v26 = vld [vmem:[#allocation13 + $0x5c0] ss:$48 sps:$4 sm:$0xff]  }
 0x1fd   :  { %4242 = vmatpush1.bf16.msra.mxu0 %v8645_v28  ;;  %4365 = vmatpush1.bf16.msra.mxu1 %v8648_v48  ;;  %v8714_v28 = vld [vmem:[#allocation13 + $0x5c8] ss:$48 sps:$4 sm:$0xff]   ;;  %v8719_v48 = vld [vmem:[#allocation13 + $0x624] ss:$48 sps:$4 sm:$0xff]  }
 0x1fe   :  { %4243 = vmatprep.subr.bf16.mxu0 %v8653_v29  ;;  %4366 = vmatprep.subr.bf16.mxu1 %v8656_v31  ;;  %v8722_v29 = vld [vmem:[#allocation13 + $0x62c] ss:$48 sps:$4 sm:$0xff]   ;;  %v8717_v31 = vld [vmem:[#allocation13 + $0x620] ss:$48 sps:$4 sm:$0xff]  }
 0x1ff   :  { %v9322_v37 = vpop.f32.mrb[0].mxu0  ;;  %v9324_v38 = vpop.f32.mrb[0].mxu1 }
 0x200   :  { %v9326_v39 = vpop.f32.mrb[1].mxu0  ;;  %v9328_v40 = vpop.f32.mrb[1].mxu1 }
 0x201   :  { %v3861_v41 = vpop.f32.mrb[2].mxu0  ;;  %v3984_v42 = vpop.f32.mrb[2].mxu1  ;;  %4244 = vmatpush1.bf16.msra.mxu0 %v8651_v33  ;;  %4367 = vmatpush1.bf16.msra.mxu1 %v8654_v34  ;;  %v8720_v33 = vld [vmem:[#allocation13 + $0x628] ss:$48 sps:$4 sm:$0xff]   ;;  %v8725_v34 = vld [vmem:[#allocation13 + $0x684] ss:$48 sps:$4 sm:$0xff]  }
 0x202   :  { %v3862_v45 = vpop.f32.mrb[3].mxu0  ;;  %v3985_v47 = vpop.f32.mrb[3].mxu1  ;;  %4245 = vmatprep.subr.bf16.mxu0 %v8659_v35  ;;  %4368 = vmatprep.subr.bf16.mxu1 %v8662_v36  ;;  %v8728_v35 = vld [vmem:[#allocation13 + $0x68c] ss:$48 sps:$4 sm:$0xff]   ;;  %v8723_v36 = vld [vmem:[#allocation13 + $0x680] ss:$48 sps:$4 sm:$0xff]  }
 0x203   :  { %v8726_v41 = vld [vmem:[#allocation13 + $0x688] ss:$48 sps:$4 sm:$0xff]   ;;  %v8731_v42 = vld [vmem:[#allocation13 + $0x6e4] ss:$48 sps:$4 sm:$0xff]  }
 0x204   :  { %v8732_v45 = vld [vmem:[#allocation13 + $0x6e8] ss:$48 sps:$4 sm:$0xff]   ;;  %v8737_v47 = vld [vmem:[#allocation13 + $0x744] ss:$48 sps:$4 sm:$0xff]  }
 0x205   :  { %4246 = vmatpush1.bf16.msra.mxu0 %v8657_v43  ;;  %4369 = vmatpush1.bf16.msra.mxu1 %v8660_v44  ;;  %v8734_v43 = vld [vmem:[#allocation13 + $0x6ec] ss:$48 sps:$4 sm:$0xff]   ;;  %v8729_v44 = vld [vmem:[#allocation13 + $0x6e0] ss:$48 sps:$4 sm:$0xff]  }
 0x206   :  { %4247 = vmatprep.subr.bf16.mxu0 %v8665_v49  ;;  %4370 = vmatprep.subr.bf16.mxu1 %v8668_v50  ;;  %v8735_v49 = vld [vmem:[#allocation13 + $0x740] ss:$48 sps:$4 sm:$0xff]   ;;  %v8738_v50 = vld [vmem:[#allocation13 + $0x748] ss:$48 sps:$4 sm:$0xff]  }
 0x209   :  { %4248 = vmatpush1.bf16.msra.mxu0 %v8663_v51  ;;  %4371 = vmatpush1.bf16.msra.mxu1 %v8666_v52  ;;  %v8743_v51 = vld [vmem:[#allocation13 + $0x7a4] ss:$48 sps:$4 sm:$0xff]   ;;  %v8746_v52 = vld [vmem:[#allocation13 + $0x7ac] ss:$48 sps:$4 sm:$0xff]  }
 0x20a   :  { %4249 = vmatprep.subr.bf16.mxu0 %v8671_v53  ;;  %4372 = vmatprep.subr.bf16.mxu1 %v8674_v54  ;;  %v8741_v53 = vld [vmem:[#allocation13 + $0x7a0] ss:$48 sps:$4 sm:$0xff]   ;;  %v8749_v54 = vld [vmem:[#allocation13 + $0x804] ss:$48 sps:$4 sm:$0xff]  }
 0x20d   :  { %4250 = vmatpush1.bf16.msra.mxu0 %v8669_v55  ;;  %4373 = vmatpush1.bf16.msra.mxu1 %v8672_v56  ;;  %v8752_v55 = vld [vmem:[#allocation13 + $0x80c] ss:$48 sps:$4 sm:$0xff]   ;;  %v8747_v56 = vld [vmem:[#allocation13 + $0x800] ss:$48 sps:$4 sm:$0xff]  }
 0x20e   :  { %4251 = vmatprep.subr.bf16.mxu0 %v8677_v57  ;;  %4374 = vmatprep.subr.bf16.mxu1 %v8680_v58  ;;  %v8750_v57 = vld [vmem:[#allocation13 + $0x808] ss:$48 sps:$4 sm:$0xff]   ;;  %v8755_v58 = vld [vmem:[#allocation13 + $0x864] ss:$48 sps:$4 sm:$0xff]  }
 0x211   :  { %4252 = vmatpush1.bf16.msra.mxu0 %v8675_v59  ;;  %4375 = vmatpush1.bf16.msra.mxu1 %v8678_v60  ;;  %v8758_v59 = vld [vmem:[#allocation13 + $0x86c] ss:$48 sps:$4 sm:$0xff]   ;;  %v8753_v60 = vld [vmem:[#allocation13 + $0x860] ss:$48 sps:$4 sm:$0xff]  }
 0x212   :  { %4253 = vmatprep.subr.bf16.mxu0 %v8683_v61  ;;  %4376 = vmatprep.subr.bf16.mxu1 %v8686_v62  ;;  %v8756_v61 = vld [vmem:[#allocation13 + $0x868] ss:$48 sps:$4 sm:$0xff]   ;;  %v8761_v62 = vld [vmem:[#allocation13 + $0x8c4] ss:$48 sps:$4 sm:$0xff]  }
 0x215   :  { %4254 = vmatpush1.bf16.msra.mxu0 %v8681_v63  ;;  %4377 = vmatpush1.bf16.msra.mxu1 %v8684_v0  ;;  %v8764_v63 = vld [vmem:[#allocation13 + $0x8cc] ss:$48 sps:$4 sm:$0xff]   ;;  %v8759_v0 = vld [vmem:[#allocation13 + $0x8c0] ss:$48 sps:$4 sm:$0xff]  }
 0x216   :  { %4255 = vmatprep.subr.bf16.mxu0 %v8689_v1  ;;  %4378 = vmatprep.subr.bf16.mxu1 %v8692_v3  ;;  %v8762_v1 = vld [vmem:[#allocation13 + $0x8c8] ss:$48 sps:$4 sm:$0xff]   ;;  %v8767_v3 = vld [vmem:[#allocation13 + $0x924] ss:$48 sps:$4 sm:$0xff]  }
 0x219   :  { %4256 = vmatpush1.bf16.msra.mxu0 %v8687_v4  ;;  %4379 = vmatpush1.bf16.msra.mxu1 %v8690_v6  ;;  %v8770_v4 = vld [vmem:[#allocation13 + $0x92c] ss:$48 sps:$4 sm:$0xff]   ;;  %v8765_v6 = vld [vmem:[#allocation13 + $0x920] ss:$48 sps:$4 sm:$0xff]  }
 0x21a   :  { %4257 = vmatprep.subr.bf16.mxu0 %v8695_v7  ;;  %4380 = vmatprep.subr.bf16.mxu1 %v8698_v8  ;;  %v8768_v7 = vld [vmem:[#allocation13 + $0x928] ss:$48 sps:$4 sm:$0xff]   ;;  %v8773_v8 = vld [vmem:[#allocation13 + $0x984] ss:$48 sps:$4 sm:$0xff]  }
 0x21d   :  { %4258 = vmatpush1.bf16.msra.mxu0 %v8693_v9  ;;  %4381 = vmatpush1.bf16.msra.mxu1 %v8696_v10  ;;  %v8776_v9 = vld [vmem:[#allocation13 + $0x98c] ss:$48 sps:$4 sm:$0xff]   ;;  %v8771_v10 = vld [vmem:[#allocation13 + $0x980] ss:$48 sps:$4 sm:$0xff]  }
 0x21e   :  { %4259 = vmatprep.subr.bf16.mxu0 %v8701_v12  ;;  %4382 = vmatprep.subr.bf16.mxu1 %v8704_v13  ;;  %v8774_v12 = vld [vmem:[#allocation13 + $0x988] ss:$48 sps:$4 sm:$0xff]   ;;  %v8779_v13 = vld [vmem:[#allocation13 + $0x9e4] ss:$48 sps:$4 sm:$0xff]  }
 0x221   :  { %4260 = vmatpush1.bf16.msra.mxu0 %v8699_v15  ;;  %4383 = vmatpush1.bf16.msra.mxu1 %v8702_v16  ;;  %v8782_v15 = vld [vmem:[#allocation13 + $0x9ec] ss:$48 sps:$4 sm:$0xff]   ;;  %v8777_v16 = vld [vmem:[#allocation13 + $0x9e0] ss:$48 sps:$4 sm:$0xff]  }
 0x222   :  { %4261 = vmatprep.subr.bf16.mxu0 %v8707_v17  ;;  %4384 = vmatprep.subr.bf16.mxu1 %v8710_v20  ;;  %v8780_v17 = vld [vmem:[#allocation13 + $0x9e8] ss:$48 sps:$4 sm:$0xff]   ;;  %v8785_v20 = vld [vmem:[#allocation13 + $0xa44] ss:$48 sps:$4 sm:$0xff]  }
 0x225   :  { %4262 = vmatpush1.bf16.msra.mxu0 %v8705_v21  ;;  %4385 = vmatpush1.bf16.msra.mxu1 %v8708_v22  ;;  %v8788_v21 = vld [vmem:[#allocation13 + $0xa4c] ss:$48 sps:$4 sm:$0xff]   ;;  %v8783_v22 = vld [vmem:[#allocation13 + $0xa40] ss:$48 sps:$4 sm:$0xff]  }
 0x226   :  { %4263 = vmatprep.subr.bf16.mxu0 %v8713_v23  ;;  %4386 = vmatprep.subr.bf16.mxu1 %v8716_v25  ;;  %v8786_v23 = vld [vmem:[#allocation13 + $0xa48] ss:$48 sps:$4 sm:$0xff]   ;;  %v8791_v25 = vld [vmem:[#allocation13 + $0xaa4] ss:$48 sps:$4 sm:$0xff]  }
 0x229   :  { %4264 = vmatpush1.bf16.msra.mxu0 %v8711_v26  ;;  %4387 = vmatpush1.bf16.msra.mxu1 %v8714_v28  ;;  %v8794_v26 = vld [vmem:[#allocation13 + $0xaac] ss:$48 sps:$4 sm:$0xff]   ;;  %v8789_v28 = vld [vmem:[#allocation13 + $0xaa0] ss:$48 sps:$4 sm:$0xff]  }
 0x22a   :  { %4274 = vmatprep.subr.bf16.mxu0 %v8719_v48  ;;  %4397 = vmatprep.subr.bf16.mxu1 %v8722_v29  ;;  %v8792_v48 = vld [vmem:[#allocation13 + $0xaa8] ss:$48 sps:$4 sm:$0xff]   ;;  %v8797_v29 = vld [vmem:[#allocation13 + $0xb04] ss:$48 sps:$4 sm:$0xff]  }
 0x22c   :  { %4266 = vmatmul.mubr.bf16.vlgmr.msra.gmra.mrb[8].mxu0 %v9272_v5  ;;  %4389 = vmatmul.mubr.bf16.vlgmr.msra.gmra.mrb[8].mxu1 %v9272_v5  ;;  %v8740_v5 = vld [vmem:[#allocation13 + $0x74c] ss:$48 sps:$4 sm:$0xff]  }
 0x22d   :  { %4275 = vmatpush1.bf16.msra.mxu0 %v8717_v31  ;;  %4398 = vmatpush1.bf16.msra.mxu1 %v8720_v33  ;;  %v8800_v31 = vld [vmem:[#allocation13 + $0xb0c] ss:$48 sps:$4 sm:$0xff]   ;;  %v8795_v33 = vld [vmem:[#allocation13 + $0xb00] ss:$48 sps:$4 sm:$0xff]  }
 0x22e   :  { %4276 = vmatprep.subr.bf16.mxu0 %v8725_v34  ;;  %4399 = vmatprep.subr.bf16.mxu1 %v8728_v35  ;;  %v8798_v34 = vld [vmem:[#allocation13 + $0xb08] ss:$48 sps:$4 sm:$0xff]   ;;  %v8803_v35 = vld [vmem:[#allocation13 + $0xb64] ss:$48 sps:$4 sm:$0xff]  }
 0x22f   :  { %4306 = vmatprep.mubr.bf16.mxu0 %v9280_v32  ;;  %4429 = vmatprep.mubr.bf16.mxu1 %v9280_v32  ;;  %v8744_v32 = vld [vmem:[#allocation13 + $0x7a8] ss:$48 sps:$4 sm:$0xff]  }
 0x231   :  { %4277 = vmatpush1.bf16.msra.mxu0 %v8723_v36  ;;  %4400 = vmatpush1.bf16.msra.mxu1 %v8726_v41  ;;  %v8806_v36 = vld [vmem:[#allocation13 + $0xb6c] ss:$48 sps:$4 sm:$0xff]   ;;  %v8801_v41 = vld [vmem:[#allocation13 + $0xb60] ss:$48 sps:$4 sm:$0xff]  }
 0x232   :  { %4278 = vmatprep.subr.bf16.mxu0 %v8731_v42  ;;  %4401 = vmatprep.subr.bf16.mxu1 %v8734_v43  ;;  %v8804_v42 = vld [vmem:[#allocation13 + $0xb68] ss:$48 sps:$4 sm:$0xff]   ;;  %v8809_v43 = vld [vmem:[#allocation13 + $0xbc4] ss:$48 sps:$4 sm:$0xff]  }
 0x235   :  { %4279 = vmatpush1.bf16.msra.mxu0 %v8729_v44  ;;  %4402 = vmatpush1.bf16.msra.mxu1 %v8732_v45  ;;  %v8812_v44 = vld [vmem:[#allocation13 + $0xbcc] ss:$48 sps:$4 sm:$0xff]   ;;  %v8807_v45 = vld [vmem:[#allocation13 + $0xbc0] ss:$48 sps:$4 sm:$0xff]  }
 0x236   :  { %4280 = vmatprep.subr.bf16.mxu0 %v8737_v47  ;;  %4403 = vmatprep.subr.bf16.mxu1 %v8740_v5  ;;  %v8810_v47 = vld [vmem:[#allocation13 + $0xbc8] ss:$48 sps:$4 sm:$0xff]   ;;  %v8815_v5 = vld [vmem:[#allocation13 + $0xc24] ss:$48 sps:$4 sm:$0xff]  }
 0x239   :  { %4281 = vmatpush1.bf16.msra.mxu0 %v8735_v49  ;;  %4404 = vmatpush1.bf16.msra.mxu1 %v8738_v50  ;;  %v8818_v49 = vld [vmem:[#allocation13 + $0xc2c] ss:$48 sps:$4 sm:$0xff]   ;;  %v8813_v50 = vld [vmem:[#allocation13 + $0xc20] ss:$48 sps:$4 sm:$0xff]  }
 0x23a   :  { %4282 = vmatprep.subr.bf16.mxu0 %v8743_v51  ;;  %4405 = vmatprep.subr.bf16.mxu1 %v8746_v52  ;;  %v8816_v51 = vld [vmem:[#allocation13 + $0xc28] ss:$48 sps:$4 sm:$0xff]   ;;  %v8821_v52 = vld [vmem:[#allocation13 + $0xc84] ss:$48 sps:$4 sm:$0xff]  }
 0x23d   :  { %4283 = vmatpush1.bf16.msra.mxu0 %v8741_v53  ;;  %4406 = vmatpush1.bf16.msra.mxu1 %v8744_v32  ;;  %v8824_v53 = vld [vmem:[#allocation13 + $0xc8c] ss:$48 sps:$4 sm:$0xff]   ;;  %v8819_v32 = vld [vmem:[#allocation13 + $0xc80] ss:$48 sps:$4 sm:$0xff]  }
 0x23e   :  { %4284 = vmatprep.subr.bf16.mxu0 %v8749_v54  ;;  %4407 = vmatprep.subr.bf16.mxu1 %v8752_v55  ;;  %v8822_v54 = vld [vmem:[#allocation13 + $0xc88] ss:$48 sps:$4 sm:$0xff]   ;;  %v8827_v55 = vld [vmem:[#allocation13 + $0xce4] ss:$48 sps:$4 sm:$0xff]  }
 0x241   :  { %4285 = vmatpush1.bf16.msra.mxu0 %v8747_v56  ;;  %4408 = vmatpush1.bf16.msra.mxu1 %v8750_v57  ;;  %v8830_v56 = vld [vmem:[#allocation13 + $0xcec] ss:$48 sps:$4 sm:$0xff]   ;;  %v8825_v57 = vld [vmem:[#allocation13 + $0xce0] ss:$48 sps:$4 sm:$0xff]  }
 0x242   :  { %4286 = vmatprep.subr.bf16.mxu0 %v8755_v58  ;;  %4409 = vmatprep.subr.bf16.mxu1 %v8758_v59  ;;  %v8828_v58 = vld [vmem:[#allocation13 + $0xce8] ss:$48 sps:$4 sm:$0xff]   ;;  %v8833_v59 = vld [vmem:[#allocation13 + $0xd44] ss:$48 sps:$4 sm:$0xff]  }
 0x245   :  { %4287 = vmatpush1.bf16.msra.mxu0 %v8753_v60  ;;  %4410 = vmatpush1.bf16.msra.mxu1 %v8756_v61  ;;  %v8831_v60 = vld [vmem:[#allocation13 + $0xd40] ss:$48 sps:$4 sm:$0xff]   ;;  %v8834_v61 = vld [vmem:[#allocation13 + $0xd48] ss:$48 sps:$4 sm:$0xff]  }
 0x246   :  { %4288 = vmatprep.subr.bf16.mxu0 %v8761_v62  ;;  %4411 = vmatprep.subr.bf16.mxu1 %v8764_v63  ;;  %v8839_v62 = vld [vmem:[#allocation13 + $0xda4] ss:$48 sps:$4 sm:$0xff]   ;;  %v8842_v63 = vld [vmem:[#allocation13 + $0xdac] ss:$48 sps:$4 sm:$0xff]  }
 0x249   :  { %4289 = vmatpush1.bf16.msra.mxu0 %v8759_v0  ;;  %4412 = vmatpush1.bf16.msra.mxu1 %v8762_v1  ;;  %v8837_v0 = vld [vmem:[#allocation13 + $0xda0] ss:$48 sps:$4 sm:$0xff]   ;;  %v8845_v1 = vld [vmem:[#allocation13 + $0xe04] ss:$48 sps:$4 sm:$0xff]  }
 0x24a   :  { %4290 = vmatprep.subr.bf16.mxu0 %v8767_v3  ;;  %4413 = vmatprep.subr.bf16.mxu1 %v8770_v4  ;;  %v8848_v3 = vld [vmem:[#allocation13 + $0xe0c] ss:$48 sps:$4 sm:$0xff]   ;;  %v8843_v4 = vld [vmem:[#allocation13 + $0xe00] ss:$48 sps:$4 sm:$0xff]  }
 0x24d   :  { %4291 = vmatpush1.bf16.msra.mxu0 %v8765_v6  ;;  %4414 = vmatpush1.bf16.msra.mxu1 %v8768_v7  ;;  %v8846_v6 = vld [vmem:[#allocation13 + $0xe08] ss:$48 sps:$4 sm:$0xff]   ;;  %v8851_v7 = vld [vmem:[#allocation13 + $0xe64] ss:$48 sps:$4 sm:$0xff]  }
 0x24e   :  { %4292 = vmatprep.subr.bf16.mxu0 %v8773_v8  ;;  %4415 = vmatprep.subr.bf16.mxu1 %v8776_v9  ;;  %v8854_v8 = vld [vmem:[#allocation13 + $0xe6c] ss:$48 sps:$4 sm:$0xff]   ;;  %v8849_v9 = vld [vmem:[#allocation13 + $0xe60] ss:$48 sps:$4 sm:$0xff]  }
 0x251   :  { %4293 = vmatpush1.bf16.msra.mxu0 %v8771_v10  ;;  %4416 = vmatpush1.bf16.msra.mxu1 %v8774_v12  ;;  %v8852_v10 = vld [vmem:[#allocation13 + $0xe68] ss:$48 sps:$4 sm:$0xff]   ;;  %v8857_v12 = vld [vmem:[#allocation13 + $0xec4] ss:$48 sps:$4 sm:$0xff]  }
 0x252   :  { %4294 = vmatprep.subr.bf16.mxu0 %v8779_v13  ;;  %4417 = vmatprep.subr.bf16.mxu1 %v8782_v15  ;;  %v8860_v13 = vld [vmem:[#allocation13 + $0xecc] ss:$48 sps:$4 sm:$0xff]   ;;  %v8855_v15 = vld [vmem:[#allocation13 + $0xec0] ss:$48 sps:$4 sm:$0xff]  }
 0x255   :  { %4295 = vmatpush1.bf16.msra.mxu0 %v8777_v16  ;;  %4418 = vmatpush1.bf16.msra.mxu1 %v8780_v17  ;;  %v8858_v16 = vld [vmem:[#allocation13 + $0xec8] ss:$48 sps:$4 sm:$0xff]   ;;  %v8863_v17 = vld [vmem:[#allocation13 + $0xf24] ss:$48 sps:$4 sm:$0xff]  }
 0x256   :  { %4296 = vmatprep.subr.bf16.mxu0 %v8785_v20  ;;  %4419 = vmatprep.subr.bf16.mxu1 %v8788_v21  ;;  %v8866_v20 = vld [vmem:[#allocation13 + $0xf2c] ss:$48 sps:$4 sm:$0xff]   ;;  %v8861_v21 = vld [vmem:[#allocation13 + $0xf20] ss:$48 sps:$4 sm:$0xff]  }
 0x259   :  { %4297 = vmatpush1.bf16.msra.mxu0 %v8783_v22  ;;  %4420 = vmatpush1.bf16.msra.mxu1 %v8786_v23  ;;  %v8864_v22 = vld [vmem:[#allocation13 + $0xf28] ss:$48 sps:$4 sm:$0xff]   ;;  %v8869_v23 = vld [vmem:[#allocation13 + $0xf84] ss:$48 sps:$4 sm:$0xff]  }
 0x25a   :  { %4298 = vmatprep.subr.bf16.mxu0 %v8791_v25  ;;  %4421 = vmatprep.subr.bf16.mxu1 %v8794_v26  ;;  %v8872_v25 = vld [vmem:[#allocation13 + $0xf8c] ss:$48 sps:$4 sm:$0xff]   ;;  %v8867_v26 = vld [vmem:[#allocation13 + $0xf80] ss:$48 sps:$4 sm:$0xff]  }
 0x25d   :  { %4299 = vmatpush1.bf16.msra.mxu0 %v8789_v28  ;;  %4422 = vmatpush1.bf16.msra.mxu1 %v8792_v48  ;;  %v8870_v28 = vld [vmem:[#allocation13 + $0xf88] ss:$48 sps:$4 sm:$0xff]   ;;  %v8875_v48 = vld [vmem:[#allocation13 + $0xfe4] ss:$48 sps:$4 sm:$0xff]  }
 0x25e   :  { %4300 = vmatprep.subr.bf16.mxu0 %v8797_v29  ;;  %4423 = vmatprep.subr.bf16.mxu1 %v8800_v31  ;;  %v8878_v29 = vld [vmem:[#allocation13 + $0xfec] ss:$48 sps:$4 sm:$0xff]   ;;  %v8873_v31 = vld [vmem:[#allocation13 + $0xfe0] ss:$48 sps:$4 sm:$0xff]  }
 0x261   :  { %4301 = vmatpush1.bf16.msra.mxu0 %v8795_v33  ;;  %4424 = vmatpush1.bf16.msra.mxu1 %v8798_v34  ;;  %v8876_v33 = vld [vmem:[#allocation13 + $0xfe8] ss:$48 sps:$4 sm:$0xff]   ;;  %v8881_v34 = vld [vmem:[#allocation13 + $0x1044] ss:$48 sps:$4 sm:$0xff]  }
 0x262   :  { %4302 = vmatprep.subr.bf16.mxu0 %v8803_v35  ;;  %4425 = vmatprep.subr.bf16.mxu1 %v8806_v36  ;;  %v8884_v35 = vld [vmem:[#allocation13 + $0x104c] ss:$48 sps:$4 sm:$0xff]   ;;  %v8879_v36 = vld [vmem:[#allocation13 + $0x1040] ss:$48 sps:$4 sm:$0xff]  }
 0x265   :  { %4303 = vmatpush1.bf16.msra.mxu0 %v8801_v41  ;;  %4426 = vmatpush1.bf16.msra.mxu1 %v8804_v42  ;;  %v8882_v41 = vld [vmem:[#allocation13 + $0x1048] ss:$48 sps:$4 sm:$0xff]   ;;  %v8887_v42 = vld [vmem:[#allocation13 + $0x10a4] ss:$48 sps:$4 sm:$0xff]  }
 0x266   :  { %4304 = vmatprep.subr.bf16.mxu0 %v8809_v43  ;;  %4427 = vmatprep.subr.bf16.mxu1 %v8812_v44  ;;  %v8890_v43 = vld [vmem:[#allocation13 + $0x10ac] ss:$48 sps:$4 sm:$0xff]   ;;  %v8885_v44 = vld [vmem:[#allocation13 + $0x10a0] ss:$48 sps:$4 sm:$0xff]  }
 0x269   :  { %4305 = vmatpush1.bf16.msra.mxu0 %v8807_v45  ;;  %4428 = vmatpush1.bf16.msra.mxu1 %v8810_v47  ;;  %v8888_v45 = vld [vmem:[#allocation13 + $0x10a8] ss:$48 sps:$4 sm:$0xff]   ;;  %v8893_v47 = vld [vmem:[#allocation13 + $0x1104] ss:$48 sps:$4 sm:$0xff]  }
 0x26a   :  { %4315 = vmatprep.subr.bf16.mxu0 %v8815_v5  ;;  %4438 = vmatprep.subr.bf16.mxu1 %v8818_v49  ;;  %v8896_v5 = vld [vmem:[#allocation13 + $0x110c] ss:$48 sps:$4 sm:$0xff]   ;;  %v8891_v49 = vld [vmem:[#allocation13 + $0x1100] ss:$48 sps:$4 sm:$0xff]  }
 0x26c   :  { %4307 = vmatmul.mubr.bf16.vlgmr.msra.gmra.mrb[8].mxu0 %v9288_v14  ;;  %4430 = vmatmul.mubr.bf16.vlgmr.msra.gmra.mrb[8].mxu1 %v9288_v14  ;;  %v8836_v14 = vld [vmem:[#allocation13 + $0xd4c] ss:$48 sps:$4 sm:$0xff]  }
 0x26d   :  { %4316 = vmatpush1.bf16.msra.mxu0 %v8813_v50  ;;  %4439 = vmatpush1.bf16.msra.mxu1 %v8816_v51  ;;  %v8894_v50 = vld [vmem:[#allocation13 + $0x1108] ss:$48 sps:$4 sm:$0xff]   ;;  %v8899_v51 = vld [vmem:[#allocation13 + $0x1164] ss:$48 sps:$4 sm:$0xff]  }
 0x26e   :  { %4317 = vmatprep.subr.bf16.mxu0 %v8821_v52  ;;  %4440 = vmatprep.subr.bf16.mxu1 %v8824_v53  ;;  %v8902_v52 = vld [vmem:[#allocation13 + $0x116c] ss:$48 sps:$4 sm:$0xff]   ;;  %v8897_v53 = vld [vmem:[#allocation13 + $0x1160] ss:$48 sps:$4 sm:$0xff]  }
 0x26f   :  { %4347 = vmatprep.mubr.bf16.mxu0 %v9294_v19  ;;  %4470 = vmatprep.mubr.bf16.mxu1 %v9294_v19  ;;  %v8840_v19 = vld [vmem:[#allocation13 + $0xda8] ss:$48 sps:$4 sm:$0xff]  }
 0x271   :  { %4318 = vmatpush1.bf16.msra.mxu0 %v8819_v32  ;;  %4441 = vmatpush1.bf16.msra.mxu1 %v8822_v54  ;;  %v8900_v32 = vld [vmem:[#allocation13 + $0x1168] ss:$48 sps:$4 sm:$0xff]   ;;  %v8905_v54 = vld [vmem:[#allocation13 + $0x11c4] ss:$48 sps:$4 sm:$0xff]  }
 0x272   :  { %4319 = vmatprep.subr.bf16.mxu0 %v8827_v55  ;;  %4442 = vmatprep.subr.bf16.mxu1 %v8830_v56  ;;  %v8908_v55 = vld [vmem:[#allocation13 + $0x11cc] ss:$48 sps:$4 sm:$0xff]   ;;  %v801_v56 = vlaneseq }
 0x275   :  { %4320 = vmatpush1.bf16.msra.mxu0 %v8825_v57  ;;  %4443 = vmatpush1.bf16.msra.mxu1 %v8828_v58  ;;  %v8903_v57 = vld [vmem:[#allocation13 + $0x11c0] ss:$48 sps:$4 sm:$0xff]   ;;  %v8906_v58 = vld [vmem:[#allocation13 + $0x11c8] ss:$48 sps:$4 sm:$0xff]  }
 0x276   :  { %4321 = vmatprep.subr.bf16.mxu0 %v8833_v59  ;;  %4444 = vmatprep.subr.bf16.mxu1 %v8836_v14  ;;  %v9338_v59 = vshrl.u32 %v801_v56, 7  ;;  %v4480_v14 = vld [vmem:[#allocation14 + $0x8] sm:$0xff] }
 0x279   :  { %4322 = vmatpush1.bf16.msra.mxu0 %v8831_v60  ;;  %4445 = vmatpush1.bf16.msra.mxu1 %v8834_v61  ;;  %v4482_v60 = vld [vmem:[#allocation14 + $0x18] sm:$0xff] }
 0x27a   :  { %4323 = vmatprep.subr.bf16.mxu0 %v8839_v62  ;;  %4446 = vmatprep.subr.bf16.mxu1 %v8842_v63  ;;  %v794_v61 = vld [vmem:[#allocation14 + $0x60] ss:$8 sm:$0xf] }
 0x27b   :  { %v795_v62 = vld [vmem:[#allocation14 + $0x60] ss:$8 sm:$0xf0] }
 0x27c   :  { %v4479_v63 = vld [vmem:[#allocation14] sm:$0xff] }
 0x27d   :  { %4324 = vmatpush1.bf16.msra.mxu0 %v8837_v0  ;;  %4447 = vmatpush1.bf16.msra.mxu1 %v8840_v19  ;;  %v9340_v0 = vor.u32 %v795_v62, %v794_v61  ;;  %v9343_v19 = vsub.s32 1, %v9338_v59 }
 0x27e   :  { %4325 = vmatprep.subr.bf16.mxu0 %v8845_v1  ;;  %4448 = vmatprep.subr.bf16.mxu1 %v8848_v3  ;;  %v4481_v1 = vld [vmem:[#allocation14 + $0x10] sm:$0xff]  ;;  %v4484_v3 = vld [vmem:[#allocation14 + $0x28] sm:$0xff] }
 0x281   :  { %4326 = vmatpush1.bf16.msra.mxu0 %v8843_v4  ;;  %4449 = vmatpush1.bf16.msra.mxu1 %v8846_v6  ;;  %v9115_v4 = vmov 0.0   ;;  %v808_v6 = vrot.slane %v9340_v0, %v9343_v19 }
 0x282   :  { %4327 = vmatprep.subr.bf16.mxu0 %v8851_v7  ;;  %4450 = vmatprep.subr.bf16.mxu1 %v8854_v8  ;;  %v9351_v7 = vld [vmem:[#allocation11] sm:$0xff]  ;;  %v4483_v8 = vld [vmem:[#allocation14 + $0x20] sm:$0xff] }
 0x285   :  { %4328 = vmatpush1.bf16.msra.mxu0 %v8849_v9  ;;  %4451 = vmatpush1.bf16.msra.mxu1 %v8852_v10  ;;  %v7952_v9 = vadd.f32 %v9326_v39, %v808_v6  ;;  %v827_v10 = vsub.s32 6, %v9338_v59  ;;  %v9405_v6 = vsub.s32 5, %v9338_v59 }
 0x286   :  { %4329 = vmatprep.subr.bf16.mxu0 %v8857_v12  ;;  %4452 = vmatprep.subr.bf16.mxu1 %v8860_v13 }
 0x287   :  { %v828_v12 = vrot.slane %v9340_v0, %v827_v10 }
 0x289   :  { %4330 = vmatpush1.bf16.msra.mxu0 %v8855_v15  ;;  %4453 = vmatpush1.bf16.msra.mxu1 %v8858_v16 }
 0x28a   :  { %4331 = vmatprep.subr.bf16.mxu0 %v8863_v17  ;;  %4454 = vmatprep.subr.bf16.mxu1 %v8866_v20 }
 0x28d   :  { %4332 = vmatpush1.bf16.msra.mxu0 %v8861_v21  ;;  %4455 = vmatpush1.bf16.msra.mxu1 %v8864_v22 }
 0x28e   :  { %4333 = vmatprep.subr.bf16.mxu0 %v8869_v23  ;;  %4456 = vmatprep.subr.bf16.mxu1 %v8872_v25 }
 0x291   :  { %4334 = vmatpush1.bf16.msra.mxu0 %v8867_v26  ;;  %4457 = vmatpush1.bf16.msra.mxu1 %v8870_v28  ;;  %v4486_v28 = vld [vmem:[#allocation14 + $0x61] ss:$8 sm:$0xf] }
 0x292   :  { %4335 = vmatprep.subr.bf16.mxu0 %v8875_v48  ;;  %4458 = vmatprep.subr.bf16.mxu1 %v8878_v29  ;;  %v4487_v48 = vld [vmem:[#allocation14 + $0x61] ss:$8 sm:$0x30] }
 0x295   :  { %4336 = vmatpush1.bf16.msra.mxu0 %v8873_v31  ;;  %4459 = vmatpush1.bf16.msra.mxu1 %v8876_v33 }
 0x296   :  { %4337 = vmatprep.subr.bf16.mxu0 %v8881_v34  ;;  %4460 = vmatprep.subr.bf16.mxu1 %v8884_v35 }
 0x299   :  { %4338 = vmatpush1.bf16.msra.mxu0 %v8879_v36  ;;  %4461 = vmatpush1.bf16.msra.mxu1 %v8882_v41  ;;  %v4488_v41 = vor.u32 %v4487_v48, %v4486_v28 }
 0x29a   :  { %4339 = vmatprep.subr.bf16.mxu0 %v8887_v42  ;;  %4462 = vmatprep.subr.bf16.mxu1 %v8890_v43 }
 0x29d   :  { %4340 = vmatpush1.bf16.msra.mxu0 %v8885_v44  ;;  %4463 = vmatpush1.bf16.msra.mxu1 %v8888_v45  ;;  %v9378_v44 = vsub.s32 0, %v9338_v59  ;;  %v4497_v45 = vrot.slane %v4488_v41, %v9343_v19 }
 0x29e   :  { %4341 = vmatprep.subr.bf16.mxu0 %v8893_v47  ;;  %4464 = vmatprep.subr.bf16.mxu1 %v8896_v5  ;;  %v9382_v47 = vsub.s32 2, %v9338_v59 }
 0x29f   :  { %v4493_v5 = vrot.slane %v4488_v41, %v9378_v44 }
 0x2a1   :  { %4342 = vmatpush1.bf16.msra.mxu0 %v8891_v49  ;;  %4465 = vmatpush1.bf16.msra.mxu1 %v8894_v50  ;;  %v9386_v49 = vsub.s32 4, %v9338_v59 }
 0x2a2   :  { %4343 = vmatprep.subr.bf16.mxu0 %v8899_v51  ;;  %4466 = vmatprep.subr.bf16.mxu1 %v8902_v52 }
 0x2a3   :  { %v4509_v56 = vrot.slane %v4488_v41, %v9386_v49 }
 0x2a5   :  { %4344 = vmatpush1.bf16.msra.mxu0 %v8897_v53  ;;  %4467 = vmatpush1.bf16.msra.mxu1 %v8900_v32  ;;  %v4501_v53 = vrot.slane %v4488_v41, %v9382_v47 }
 0x2a6   :  { %4345 = vmatprep.subr.bf16.mxu0 %v8905_v54  ;;  %4468 = vmatprep.subr.bf16.mxu1 %v8908_v55  ;;  %v804_v54 = vrot.slane %v9340_v0, %v9378_v44 }
 0x2a8   :  { %v7951_v61 = vadd.f32 %v9322_v37, %v804_v54 }
 0x2a9   :  { %4346 = vmatpush1.bf16.msra.mxu0 %v8903_v57  ;;  %4469 = vmatpush1.bf16.msra.mxu1 %v8906_v58 }
 0x2aa   :  { %4524 = vmatprep.subr.mxu0 %v4480_v14  ;;  %4595 = vmatprep.subr.mxu1 %v4482_v60 }
 0x2ac   :  { %4348 = vmatmul.mubr.bf16.vlgmr.msra.gmra.mrb[8].mxu0 %v9304_v27  ;;  %4471 = vmatmul.mubr.bf16.vlgmr.msra.gmra.mrb[8].mxu1 %v9304_v27  ;;  %v831_v27 = vsub.s32 7, %v9338_v59 }
 0x2ad   :  { %4525 = vmatpush1.msra.mxu0 %v4479_v63  ;;  %4588 = vmatprep.mubr.f32.mxu0 %v9115_v4  ;;  %v9395_v63 = vsub.s32 3, %v9338_v59 }
 0x2ae   :  { %4596 = vmatpush1.msra.mxu1 %v4481_v1  ;;  %4659 = vmatprep.mubr.f32.mxu1 %v9115_v4  ;;  %v832_v39 = vrot.slane %v9340_v0, %v831_v27  ;;  %v812_v1 = vrot.slane %v9340_v0, %v9382_v47 }
 0x2af   :  { %4666 = vmatprep.subr.mxu0 %v4484_v3  ;;  %v820_v3 = vrot.slane %v9340_v0, %v9386_v49  ;;  %v4505_v37 = vrot.slane %v4488_v41, %v9395_v63 }
 0x2b4   :  { %7807 = vmatmul.mubr.msk.f32.vlgmr.msra.gmra.mrb[12].mxu0 %vm4520_vm0, %v9351_v7  ;;  %7808 = vmatmul.mubr.msk.f32.vlgmr.msra.gmra.mrb[12].mxu1 %vm4520_vm0, %v9351_v7 }
 0x2b5   :  { %4801 = vmatprep.mubr.f32.mxu1 %v7952_v9  ;;  %4667 = vmatpush1.msra.mxu0 %v4483_v8  ;;  %v7953_v8 = vadd.f32 %v9324_v38, %v812_v1  ;;  %v816_v9 = vrot.slane %v9340_v0, %v9395_v63  ;;  %v824_v38 = vrot.slane %v9340_v0, %v9405_v6 }
 0x2b6   :  { %4730 = vmatprep.mubr.f32.mxu0 %v9115_v4 }
 0x2b8   :  { %7809 = vmatmul.mubr.msk.f32.vlgmr.msra.gmra.mrb[14].mxu0 %vm4520_vm0, %v9351_v7 }
 0x2b9   :  { %4955 = vmatprep.mubr.f32.mxu0 %v9115_v4 }
 0x2bf   :  { %v4103_v13 = vpop.f32.mrb[4].mxu0  ;;  %v4226_v15 = vpop.f32.mrb[4].mxu1 }
 0x2c0   :  { %v9366_v16 = vpop.f32.mrb[5].mxu0  ;;  %v4228_v17 = vpop.f32.mrb[5].mxu1  ;;  %v7957_v23 = vadd.f32 %v4226_v15, %v828_v12  ;;  %v7955_v27 = vadd.f32 %v4103_v13, %v820_v3  ;;  %v7954_v12 = vadd.f32 %v9328_v40, %v816_v9 }
 0x2c1   :  { %v7958_v20 = vadd.f32 %v4228_v17, %v832_v39  ;;  %v4107_v21 = vpop.f32.mrb[6].mxu0  ;;  %v4230_v22 = vpop.f32.mrb[6].mxu1  ;;  %v4513_v39 = vrot.slane %v4488_v41, %v9405_v6  ;;  %v7956_v59 = vadd.f32 %v9366_v16, %v824_v38 }
 0x2c2   :  { %v4108_v25 = vpop.f32.mrb[7].mxu0  ;;  %v4231_v26 = vpop.f32.mrb[7].mxu1 }
 0x2c3   :  { %4891 = vmatprep.subr.mxu0 %v7958_v20 }
 0x2c4   :  { %4892 = vmatpush1.msra.mxu0 %v7957_v23 }
 0x2c5   :  { %7911 = vmatprep.subr.mxu0 %v9115_v4 }
 0x37f   :  { %v9369_v29 = vpop.f32.mrb[8].mxu0  ;;  %v9371_v31 = vpop.f32.mrb[8].mxu1 }
 0x380   :  { %v9373_v33 = vpop.f32.mrb[9].mxu0  ;;  %v9375_v34 = vpop.f32.mrb[9].mxu1 }
 0x381   :  { %v4353_v35 = vpop.f32.mrb[10].mxu0  ;;  %v4476_v36 = vpop.f32.mrb[10].mxu1 }
 0x382   :  { %v4354_v42 = vpop.f32.mrb[11].mxu0  ;;  %v4477_v43 = vpop.f32.mrb[11].mxu1 }
 0x383   :  { %v798_v43 = vld [vmem:[#allocation14 + $0xa0] ss:$8 sm:$0xf] }
 0x387   :  { %v4590_v50 = vpop.f32.mrb[12].mxu0  ;;  %v4661_v51 = vpop.f32.mrb[12].mxu1 }
 0x388   :  { %v4592_v52 = vpop.f32.mrb[13].mxu0  ;;  %v4663_v32 = vpop.f32.mrb[13].mxu1  ;;  %v4591_v57 = vadd.f32 %v4590_v50, %v4493_v5  ;;  %v4662_v14 = vadd.f32 %v4661_v51, %v4501_v53  ;;  %v844_v5 = vrot.slane %v798_v43, %v9382_v47 }
 0x389   :  { %v4593_v55 = vadd.f32 %v4592_v52, %v4497_v45  ;;  %v4664_v10 = vadd.f32 %v4663_v32, %v4505_v37  ;;  %v836_v45 = vrot.slane %v798_v43, %v9378_v44  ;;  %v840_v32 = vrot.slane %v798_v43, %v9343_v19 }
 0x38a   :  { %v7961_v54 = vadd.f32 %v9371_v31, %v844_v5 }
 0x38b   :  { %4737 = vmatprep.subr.mxu1 %v4593_v55  ;;  %v4732_v58 = vpop.f32.mrb[14].mxu0  ;;  %v7959_v53 = vadd.f32 %v9369_v29, %v836_v45  ;;  %v7960_v55 = vadd.f32 %v9373_v33, %v840_v32  ;;  %v848_v29 = vrot.slane %v798_v43, %v9395_v63 }
 0x38c   :  { %4738 = vmatpush1.xpose.msra.mxu1 %v4591_v57  ;;  %v4734_v60 = vpop.f32.mrb[15].mxu0  ;;  %v4733_v62 = vadd.f32 %v4732_v58, %v4509_v56 }
 0x38d   :  { %7906 = vmatprep.subr.mxu1 %v9115_v4  ;;  %v4735_v15 = vadd.f32 %v4734_v60, %v4513_v39  ;;  %v7962_v57 = vadd.f32 %v9375_v34, %v848_v29 }
 0x38f   :  { %4802 = vmatmul.mubr.f32.vlgmr.msra.gmra.mrb[14].mxu1 %v7951_v61 }
 0x390   :  { %7907 = vmatpush3.xpose.msra.mxu1 %v4662_v14  ;;  %7908 = vmatprep.mubr.msk.f32.mxu1 %vm9116_vm1, %v9115_v4 }
 0x391   :  { %5032 = vmatprep.subr.mxu1 %v4733_v62 }
 0x397   :  { %7909 = vmatmul.mubr.f32.vlgmr.msra.gmra.mrb[14].mxu1 %v7953_v8 }
 0x398   :  { %5033 = vmatpush1.xpose.msra.mxu1 %v4664_v10  ;;  %5096 = vmatprep.mubr.f32.mxu1 %v7955_v27 }
 0x399   :  { %7916 = vmatprep.subr.mxu1 %v9115_v4 }
 0x39b   :  { %5097 = vmatmul.mubr.f32.vlgmr.msra.gmra.mrb[16].mxu1 %v7954_v12 }
 0x39c   :  { %7917 = vmatpush3.xpose.msra.mxu1 %v4735_v15  ;;  %7918 = vmatprep.mubr.msk.f32.mxu1 %vm9116_vm1, %v9115_v4 }
 0x3a3   :  { %7919 = vmatmul.mubr.f32.vlgmr.msra.gmra.mrb[16].mxu1 %v7956_v59 }
 0x46a   :  { %v4873_v13 = vpop.f32.mrb[14].mxu1 }
 0x46b   :  { %v7910_v17 = vpop.f32.mrb[15].mxu1  ;;  %v4877_v20 = vsel %vm4520_vm0, %v4873_v13, -inf }
 0x46c   :  { %4878 = vmax.xlane.f32.xlu0 %v4877_v20 }
 0x476   :  { %v5168_v40 = vpop.f32.mrb[16].mxu1 }
 0x477   :  { %v7920_v21 = vpop.f32.mrb[17].mxu1  ;;  %v5172_v22 = vsel %vm4520_vm0, %v5168_v40, -inf }
 0x478   :  { %5173 = vmax.xlane.f32.xlu0 %v5172_v22 }
 0x4f9   :  { %v4879_v23 = vpop.xlane.xlu0 %4878 }
 0x4fa   :  { %v4880_v25 = vsub.f32 %v4873_v13, %v4879_v23 }
 0x4fc   :  { %v4881_v26 = vmul.f32 1.442695, %v4880_v25 }
 0x4fe   :  { %8909 = vpow2.f32 %v4881_v26 }
 0x505   :  { %v5174_v28 = vpop.xlane.xlu0 %5173 }
 0x506   :  { %v5175_v48 = vsub.f32 %v5168_v40, %v5174_v28 }
 0x508   :  { %v8910_v0 = vpop.eup %8909  ;;  %v5176_v35 = vmul.f32 1.442695, %v5175_v48 }
 0x509   :  { %v4883_v16 = vsel %vm4520_vm0, %v8910_v0, 0.0 }
 0x50a   :  { %8911 = vpow2.f32 %v5176_v35  ;;  %4884 = vadd.xlane.f32.xlu1 %v4883_v16 }
 0x514   :  { %v8912_v36 = vpop.eup %8911 }
 0x515   :  { %v5178_v41 = vsel %vm4520_vm0, %v8912_v36, 0.0 }
 0x516   :  { %5179 = vadd.xlane.f32.xlu1 %v5178_v41 }
 0x597   :  { %v4885_v42 = vpop.xlane.xlu1 %4884 }
 0x598   :  { %8913 = vrcp.f32 %v4885_v42 }
 0x5a2   :  { %v8914_v50 = vpop.eup %8913 }
 0x5a3   :  { %v4887_v51 = vmul.f32 %v8914_v50, %v8910_v0  ;;  %v5180_v52 = vpop.xlane.xlu1 %5179 }
 0x5a4   :  { %8915 = vrcp.f32 %v5180_v52 }
 0x5a5   :  { %7810 = vmatmul.mubr.msk.f32.vlgmr.msra.gmra.mrb[16].mxu0 %vm4520_vm0, %v4887_v51 }
 0x5a6   :  { %7912 = vmatpush3.msra.mxu0 %v7959_v53  ;;  %7913 = vmatprep.mubr.msk.f32.mxu0 %vm9116_vm1, %v9115_v4 }
 0x5a7   :  { %5186 = vmatprep.subr.mxu0 %v7961_v54 }
 0x5a9   :  { %7914 = vmatmul.mubr.msk.f32.vlgmr.msra.gmra.mrb[18].mxu0 %vm4520_vm0, %v4887_v51 }
 0x5aa   :  { %5187 = vmatpush1.msra.mxu0 %v7960_v55  ;;  %5250 = vmatprep.mubr.f32.mxu0 %v9115_v4 }
 0x5ab   :  { %7921 = vmatprep.subr.mxu0 %v9115_v4 }
 0x5ae   :  { %v8916_v56 = vpop.eup %8915 }
 0x5af   :  { %v5182_v31 = vmul.f32 %v8916_v56, %v8912_v36 }
 0x5b1   :  { %7812 = vmatmul.mubr.msk.f32.vlgmr.msra.gmra.mrb[20].mxu0 %vm4520_vm0, %v5182_v31 }
 0x5b2   :  { %7922 = vmatpush3.msra.mxu0 %v7962_v57  ;;  %7923 = vmatprep.mubr.msk.f32.mxu0 %vm9116_vm1, %v9115_v4 }
 0x5b5   :  { %7924 = vmatmul.mubr.msk.f32.vlgmr.msra.gmra.mrb[22].mxu0 %vm4520_vm0, %v5182_v31 }
 0x5b6   :  { %9016 = shalt.err (!%p9013_p6)  }
 0x5b7   :  { %s9017_s25 = scalar_lea.vmem %s189_s17, 6144  ;;  %p9022_p8 = scmp.lt.s32.totalorder %s189_s17, %s189_s17 }
 0x5b8   :  { %p9018_p7 = scmp.ne.s32.totalorder %s189_s17, %s9017_s25  ;;  %p9023_p9 = scmp.lt.s32.totalorder %s9017_s25, %s9017_s25 }
 0x5ba   :  { %p9024_p10 = por %p9023_p9, %p9022_p8 }
 0x5bc   :  { %p9025_p11 = pnand %p9024_p10, %p9018_p7 }
 0x5be   :  { %9028 = shalt.err (!%p9025_p11)  }
 0x5bf   :  { %191 = dma.hbm_to_vmem [thread:$0]  %s9651_s7, 6144, %s189_s17, [#allocation7 + $0x3] }
 0x5c0   :  { %s9029_s30 = scalar_lea.hbm %s9652_s8, 1024 }
 0x5c1   :  { %p9030_p12 = scmp.ne.s32.totalorder %s9652_s8, %s9029_s30  ;;  %p9033_p13 = scmp.lt.u32.totalorder %s9029_s30, %s9652_s8 }
 0x5c3   :  { %p9035_p0 = pnand %p9033_p13, %p9030_p12 }
 0x5c5   :  { %9038 = shalt.err (!%p9035_p0)  }
 0x5c6   :  { %s9039_s2 = scalar_lea.vmem %s201_s19, 1024  ;;  %p9044_p2 = scmp.lt.s32.totalorder %s201_s19, %s201_s19 }
 0x5c7   :  { %p9040_p1 = scmp.ne.s32.totalorder %s201_s19, %s9039_s2  ;;  %p9045_p3 = scmp.lt.s32.totalorder %s9039_s2, %s9039_s2 }
 0x5c9   :  { %p9046_p4 = por %p9045_p3, %p9044_p2 }
 0x5cb   :  { %p9047_p5 = pnand %p9046_p4, %p9040_p1 }
 0x5cd   :  { %9050 = shalt.err (!%p9047_p5)  }
 0x5ce   :  { %203 = dma.hbm_to_vmem [thread:$0]  %s9652_s8, 1024, %s201_s19, [#allocation7 + $0x4] }
 0x678   :  { %v9464_v33 = vpop.f32.mrb[16].mxu0 }
 0x679   :  { %v9466_v34 = vpop.f32.mrb[17].mxu0 }
 0x67c   :  { %v9468_v58 = vpop.f32.mrb[18].mxu0 }
 0x67d   :  { %v7915_v14 = vpop.f32.mrb[19].mxu0 }
 0x684   :  { %v9470_v60 = vpop.f32.mrb[20].mxu0 }
 0x685   :  { %v5254_v61 = vpop.f32.mrb[21].mxu0 }
 0x688   :  { %v9472_v62 = vpop.f32.mrb[22].mxu0 }
 0x689   :  { %v7925_v1 = vpop.f32.mrb[23].mxu0 }
 0x68a   :  { %9079 = dma.done.wait [#allocation7], 36864 }
 0x68b   :  { %9080 = vsyncadd [#allocation7], 4294930432  ;;  %v9474_v3 = vpack.c.bf16 %v5254_v61, %v5254_v61  ;;  %v9119_v37 = vmov 0   ;;  %v5482_v8 = vld [vmem:[#allocation2 + $0x488] sm:$0xff]  ;;  %v5481_v27 = vld [vmem:[#allocation2 + $0x480] sm:$0xff]  ;;  %v9480_v54 = vpack.c.bf16 %v9472_v62, %v9472_v62 }
 0x68c   :  { %5698 = vmatprep.mubr.bf16.mxu0 %v9119_v37  ;;  %v5578_v9 = vld [vmem:[#allocation2 + $0x788] sm:$0xff]  ;;  %5625 = vmatprep.subr.bf16.mxu1 %v5482_v8  ;;  %v5577_v10 = vld [vmem:[#allocation2 + $0x780] sm:$0xff]  ;;  %v5488_v39 = vld [vmem:[#allocation2 + $0x4b8] sm:$0xff] }
 0x68d   :  { %5657 = vmatprep.mubr.bf16.mxu1 %v9474_v3  ;;  %5666 = vmatprep.subr.bf16.mxu0 %v5578_v9  ;;  %v5584_v12 = vld [vmem:[#allocation2 + $0x7b8] sm:$0xff]  ;;  %v5487_v15 = vld [vmem:[#allocation2 + $0x4b0] sm:$0xff]  ;;  %v5494_v59 = vld [vmem:[#allocation2 + $0x4e8] sm:$0xff] }
 0x68e   :  { %5626 = vmatpush1.bf16.msra.mxu1 %v5481_v27  ;;  %5667 = vmatpush1.bf16.msra.mxu0 %v5577_v10  ;;  %v5583_v38 = vld [vmem:[#allocation2 + $0x7b0] sm:$0xff]  ;;  %v5590_v13 = vld [vmem:[#allocation2 + $0x7e8] sm:$0xff]  ;;  %v5493_v17 = vld [vmem:[#allocation2 + $0x4e0] sm:$0xff] }
 0x68f   :  { %5627 = vmatprep.subr.bf16.mxu1 %v5488_v39  ;;  %5668 = vmatprep.subr.bf16.mxu0 %v5584_v12  ;;  %v5589_v20 = vld [vmem:[#allocation2 + $0x7e0] sm:$0xff]  ;;  %v5500_v40 = vld [vmem:[#allocation2 + $0x518] sm:$0xff]  ;;  %v5499_v22 = vld [vmem:[#allocation2 + $0x510] sm:$0xff] }
 0x690   :  { %v5596_v21 = vld [vmem:[#allocation2 + $0x818] sm:$0xff]  ;;  %v5595_v23 = vld [vmem:[#allocation2 + $0x810] sm:$0xff]  ;;  %v5506_v25 = vld [vmem:[#allocation2 + $0x548] sm:$0xff] }
 0x691   :  { %v5602_v26 = vld [vmem:[#allocation2 + $0x848] sm:$0xff]  ;;  %v5505_v28 = vld [vmem:[#allocation2 + $0x540] sm:$0xff]  ;;  %v5512_v0 = vld [vmem:[#allocation2 + $0x578] sm:$0xff] }
 0x692   :  { %5628 = vmatpush1.bf16.msra.mxu1 %v5487_v15  ;;  %5669 = vmatpush1.bf16.msra.mxu0 %v5583_v38  ;;  %v5601_v48 = vld [vmem:[#allocation2 + $0x840] sm:$0xff]  ;;  %v5608_v35 = vld [vmem:[#allocation2 + $0x878] sm:$0xff]  ;;  %v5511_v16 = vld [vmem:[#allocation2 + $0x570] sm:$0xff] }
 0x693   :  { %5629 = vmatprep.subr.bf16.mxu1 %v5494_v59  ;;  %5670 = vmatprep.subr.bf16.mxu0 %v5590_v13  ;;  %v5607_v36 = vld [vmem:[#allocation2 + $0x870] sm:$0xff]  ;;  %v5518_v41 = vld [vmem:[#allocation2 + $0x5a8] sm:$0xff]  ;;  %v5517_v43 = vld [vmem:[#allocation2 + $0x5a0] sm:$0xff] }
 0x694   :  { %v5614_v42 = vld [vmem:[#allocation2 + $0x8a8] sm:$0xff]  ;;  %v5613_v45 = vld [vmem:[#allocation2 + $0x8a0] sm:$0xff]  ;;  %v5524_v5 = vld [vmem:[#allocation2 + $0x5d8] sm:$0xff] }
 0x695   :  { %v5620_v50 = vld [vmem:[#allocation2 + $0x8d8] sm:$0xff]  ;;  %v5523_v51 = vld [vmem:[#allocation2 + $0x5d0] sm:$0xff]  ;;  %v5530_v53 = vld [vmem:[#allocation2 + $0x608] sm:$0xff] }
 0x696   :  { %5630 = vmatpush1.bf16.msra.mxu1 %v5493_v17  ;;  %5671 = vmatpush1.bf16.msra.mxu0 %v5589_v20  ;;  %v5619_v52 = vld [vmem:[#allocation2 + $0x8d0] sm:$0xff]  ;;  %v5484_v32 = vld [vmem:[#allocation2 + $0x498] sm:$0xff]  ;;  %v5529_v55 = vld [vmem:[#allocation2 + $0x600] sm:$0xff] }
 0x697   :  { %5631 = vmatprep.subr.bf16.mxu1 %v5500_v40  ;;  %5672 = vmatprep.subr.bf16.mxu0 %v5596_v21  ;;  %v5483_v29 = vld [vmem:[#allocation2 + $0x490] sm:$0xff]  ;;  %v5536_v56 = vld [vmem:[#allocation2 + $0x638] sm:$0xff]  ;;  %v5490_v31 = vld [vmem:[#allocation2 + $0x4c8] sm:$0xff] }
 0x698   :  { %v5535_v57 = vld [vmem:[#allocation2 + $0x630] sm:$0xff]  ;;  %v5489_v14 = vld [vmem:[#allocation2 + $0x4c0] sm:$0xff]  ;;  %v5542_v61 = vld [vmem:[#allocation2 + $0x668] sm:$0xff] }
 0x699   :  { %v5496_v1 = vld [vmem:[#allocation2 + $0x4f8] sm:$0xff]  ;;  %v5541_v62 = vld [vmem:[#allocation2 + $0x660] sm:$0xff]  ;;  %v5495_v8 = vld [vmem:[#allocation2 + $0x4f0] sm:$0xff] }
 0x69a   :  { %5632 = vmatpush1.bf16.msra.mxu1 %v5499_v22  ;;  %5673 = vmatpush1.bf16.msra.mxu0 %v5595_v23  ;;  %v5548_v9 = vld [vmem:[#allocation2 + $0x698] sm:$0xff]  ;;  %v5502_v27 = vld [vmem:[#allocation2 + $0x528] sm:$0xff]  ;;  %v5547_v10 = vld [vmem:[#allocation2 + $0x690] sm:$0xff] }
 0x69b   :  { %5633 = vmatprep.subr.bf16.mxu1 %v5506_v25  ;;  %5674 = vmatprep.subr.bf16.mxu0 %v5602_v26  ;;  %v5501_v39 = vld [vmem:[#allocation2 + $0x520] sm:$0xff]  ;;  %v5554_v12 = vld [vmem:[#allocation2 + $0x6c8] sm:$0xff]  ;;  %v5508_v15 = vld [vmem:[#allocation2 + $0x558] sm:$0xff] }
 0x69c   :  { %v5553_v38 = vld [vmem:[#allocation2 + $0x6c0] sm:$0xff]  ;;  %v5507_v59 = vld [vmem:[#allocation2 + $0x550] sm:$0xff]  ;;  %v5560_v13 = vld [vmem:[#allocation2 + $0x6f8] sm:$0xff] }
 0x69d   :  { %v5514_v17 = vld [vmem:[#allocation2 + $0x588] sm:$0xff]  ;;  %v5559_v20 = vld [vmem:[#allocation2 + $0x6f0] sm:$0xff]  ;;  %v5513_v40 = vld [vmem:[#allocation2 + $0x580] sm:$0xff] }
 0x69e   :  { %5634 = vmatpush1.bf16.msra.mxu1 %v5505_v28  ;;  %5675 = vmatpush1.bf16.msra.mxu0 %v5601_v48  ;;  %v5566_v21 = vld [vmem:[#allocation2 + $0x728] sm:$0xff]  ;;  %v5520_v22 = vld [vmem:[#allocation2 + $0x5b8] sm:$0xff]  ;;  %v5565_v23 = vld [vmem:[#allocation2 + $0x720] sm:$0xff] }
 0x69f   :  { %5635 = vmatprep.subr.bf16.mxu1 %v5512_v0  ;;  %5676 = vmatprep.subr.bf16.mxu0 %v5608_v35  ;;  %v5519_v25 = vld [vmem:[#allocation2 + $0x5b0] sm:$0xff]  ;;  %v5572_v26 = vld [vmem:[#allocation2 + $0x758] sm:$0xff]  ;;  %v5526_v28 = vld [vmem:[#allocation2 + $0x5e8] sm:$0xff] }
 0x6a0   :  { %v5571_v48 = vld [vmem:[#allocation2 + $0x750] sm:$0xff]  ;;  %v5525_v0 = vld [vmem:[#allocation2 + $0x5e0] sm:$0xff]  ;;  %v5532_v35 = vld [vmem:[#allocation2 + $0x618] sm:$0xff] }
 0x6a2   :  { %5636 = vmatpush1.bf16.msra.mxu1 %v5511_v16  ;;  %5677 = vmatpush1.bf16.msra.mxu0 %v5607_v36  ;;  %v5580_v16 = vld [vmem:[#allocation2 + $0x798] sm:$0xff]  ;;  %v9486_v36 = vpack.c.bf16 %v9470_v60, %v9470_v60  ;;  %v5543_v60 = vld [vmem:[#allocation2 + $0x670] sm:$0xff] }
 0x6a3   :  { %5637 = vmatprep.subr.bf16.mxu1 %v5518_v41  ;;  %5678 = vmatprep.subr.bf16.mxu0 %v5614_v42  ;;  %v5531_v41 = vld [vmem:[#allocation2 + $0x610] sm:$0xff] }
 0x6a4   :  { %v5579_v42 = vld [vmem:[#allocation2 + $0x790] sm:$0xff] }
 0x6a6   :  { %5638 = vmatpush1.bf16.msra.mxu1 %v5517_v43  ;;  %5679 = vmatpush1.bf16.msra.mxu0 %v5613_v45  ;;  %v5538_v43 = vld [vmem:[#allocation2 + $0x648] sm:$0xff] }
 0x6a7   :  { %5639 = vmatprep.subr.bf16.mxu1 %v5524_v5  ;;  %5680 = vmatprep.subr.bf16.mxu0 %v5620_v50  ;;  %v5586_v45 = vld [vmem:[#allocation2 + $0x7c8] sm:$0xff]  ;;  %v5537_v5 = vld [vmem:[#allocation2 + $0x640] sm:$0xff] }
 0x6a8   :  { %v5585_v50 = vld [vmem:[#allocation2 + $0x7c0] sm:$0xff] }
 0x6aa   :  { %5640 = vmatpush1.bf16.msra.mxu1 %v5523_v51  ;;  %5681 = vmatpush1.bf16.msra.mxu0 %v5619_v52  ;;  %v5544_v51 = vld [vmem:[#allocation2 + $0x678] sm:$0xff] }
 0x6ab   :  { %5641 = vmatprep.subr.bf16.mxu1 %v5530_v53  ;;  %5707 = vmatprep.subr.bf16.mxu0 %v5484_v32  ;;  %v5592_v52 = vld [vmem:[#allocation2 + $0x7f8] sm:$0xff]  ;;  %v5591_v53 = vld [vmem:[#allocation2 + $0x7f0] sm:$0xff]  ;;  %v5550_v32 = vld [vmem:[#allocation2 + $0x6a8] sm:$0xff] }
 0x6ad   :  { %5699 = vmatmul.mubr.bf16.vlgmr.msra.gmra.mrb[24].mxu0 %v9480_v54 }
 0x6ae   :  { %5642 = vmatpush1.bf16.msra.mxu1 %v5529_v55  ;;  %5708 = vmatpush1.bf16.msra.mxu0 %v5483_v29  ;;  %v5598_v55 = vld [vmem:[#allocation2 + $0x828] sm:$0xff]  ;;  %v5549_v29 = vld [vmem:[#allocation2 + $0x6a0] sm:$0xff] }
 0x6af   :  { %5643 = vmatprep.subr.bf16.mxu1 %v5536_v56  ;;  %5709 = vmatprep.subr.bf16.mxu0 %v5490_v31  ;;  %v5597_v56 = vld [vmem:[#allocation2 + $0x820] sm:$0xff]  ;;  %v5556_v31 = vld [vmem:[#allocation2 + $0x6d8] sm:$0xff] }
 0x6b0   :  { %5739 = vmatprep.mubr.bf16.mxu0 %v9474_v3 }
 0x6b2   :  { %5644 = vmatpush1.bf16.msra.mxu1 %v5535_v57  ;;  %5710 = vmatpush1.bf16.msra.mxu0 %v5489_v14  ;;  %v5604_v57 = vld [vmem:[#allocation2 + $0x858] sm:$0xff]  ;;  %v5555_v14 = vld [vmem:[#allocation2 + $0x6d0] sm:$0xff] }
 0x6b3   :  { %5645 = vmatprep.subr.bf16.mxu1 %v5542_v61  ;;  %5711 = vmatprep.subr.bf16.mxu0 %v5496_v1  ;;  %v5603_v61 = vld [vmem:[#allocation2 + $0x850] sm:$0xff]  ;;  %v5562_v1 = vld [vmem:[#allocation2 + $0x708] sm:$0xff] }
 0x6b6   :  { %5646 = vmatpush1.bf16.msra.mxu1 %v5541_v62  ;;  %5712 = vmatpush1.bf16.msra.mxu0 %v5495_v8  ;;  %v5610_v62 = vld [vmem:[#allocation2 + $0x888] sm:$0xff]  ;;  %v5561_v8 = vld [vmem:[#allocation2 + $0x700] sm:$0xff] }
 0x6b7   :  { %5647 = vmatprep.subr.bf16.mxu1 %v5548_v9  ;;  %5713 = vmatprep.subr.bf16.mxu0 %v5502_v27  ;;  %v5609_v9 = vld [vmem:[#allocation2 + $0x880] sm:$0xff]  ;;  %v5568_v27 = vld [vmem:[#allocation2 + $0x738] sm:$0xff] }
 0x6ba   :  { %5648 = vmatpush1.bf16.msra.mxu1 %v5547_v10  ;;  %5714 = vmatpush1.bf16.msra.mxu0 %v5501_v39  ;;  %v5616_v10 = vld [vmem:[#allocation2 + $0x8b8] sm:$0xff]  ;;  %v5567_v39 = vld [vmem:[#allocation2 + $0x730] sm:$0xff] }
 0x6bb   :  { %5649 = vmatprep.subr.bf16.mxu1 %v5554_v12  ;;  %5715 = vmatprep.subr.bf16.mxu0 %v5508_v15  ;;  %v5615_v12 = vld [vmem:[#allocation2 + $0x8b0] sm:$0xff]  ;;  %v5574_v15 = vld [vmem:[#allocation2 + $0x768] sm:$0xff] }
 0x6be   :  { %5650 = vmatpush1.bf16.msra.mxu1 %v5553_v38  ;;  %5716 = vmatpush1.bf16.msra.mxu0 %v5507_v59  ;;  %v5622_v38 = vld [vmem:[#allocation2 + $0x8e8] sm:$0xff]  ;;  %v5573_v59 = vld [vmem:[#allocation2 + $0x760] sm:$0xff] }
 0x6bf   :  { %5651 = vmatprep.subr.bf16.mxu1 %v5560_v13  ;;  %5717 = vmatprep.subr.bf16.mxu0 %v5514_v17  ;;  %v5621_v13 = vld [vmem:[#allocation2 + $0x8e0] sm:$0xff]  ;;  %v5486_v17 = vld [vmem:[#allocation2 + $0x4a8] sm:$0xff] }
 0x6c2   :  { %5652 = vmatpush1.bf16.msra.mxu1 %v5559_v20  ;;  %5718 = vmatpush1.bf16.msra.mxu0 %v5513_v40  ;;  %v5582_v20 = vld [vmem:[#allocation2 + $0x7a8] sm:$0xff]  ;;  %v5485_v40 = vld [vmem:[#allocation2 + $0x4a0] sm:$0xff] }
 0x6c3   :  { %5653 = vmatprep.subr.bf16.mxu1 %v5566_v21  ;;  %5719 = vmatprep.subr.bf16.mxu0 %v5520_v22  ;;  %v5581_v21 = vld [vmem:[#allocation2 + $0x7a0] sm:$0xff]  ;;  %v5492_v22 = vld [vmem:[#allocation2 + $0x4d8] sm:$0xff] }
 0x6c6   :  { %5654 = vmatpush1.bf16.msra.mxu1 %v5565_v23  ;;  %5720 = vmatpush1.bf16.msra.mxu0 %v5519_v25  ;;  %v5588_v23 = vld [vmem:[#allocation2 + $0x7d8] sm:$0xff]  ;;  %v5491_v25 = vld [vmem:[#allocation2 + $0x4d0] sm:$0xff] }
 0x6c7   :  { %5655 = vmatprep.subr.bf16.mxu1 %v5572_v26  ;;  %5721 = vmatprep.subr.bf16.mxu0 %v5526_v28  ;;  %v5587_v26 = vld [vmem:[#allocation2 + $0x7d0] sm:$0xff]  ;;  %v5498_v28 = vld [vmem:[#allocation2 + $0x508] sm:$0xff] }
 0x6ca   :  { %5656 = vmatpush1.bf16.msra.mxu1 %v5571_v48  ;;  %5722 = vmatpush1.bf16.msra.mxu0 %v5525_v0  ;;  %v5594_v48 = vld [vmem:[#allocation2 + $0x808] sm:$0xff]  ;;  %v5497_v0 = vld [vmem:[#allocation2 + $0x500] sm:$0xff] }
 0x6cb   :  { %5723 = vmatprep.subr.bf16.mxu0 %v5532_v35  ;;  %5748 = vmatprep.subr.bf16.mxu1 %v5580_v16  ;;  %v5593_v35 = vld [vmem:[#allocation2 + $0x800] sm:$0xff]  ;;  %v5504_v16 = vld [vmem:[#allocation2 + $0x538] sm:$0xff] }
 0x6cd   :  { %5658 = vmatmul.mubr.bf16.vlgmr.msra.gmra.mrb[20].mxu1 %v9486_v36 }
 0x6ce   :  { %5724 = vmatpush1.bf16.msra.mxu0 %v5531_v41  ;;  %5749 = vmatpush1.bf16.msra.mxu1 %v5579_v42  ;;  %v5600_v41 = vld [vmem:[#allocation2 + $0x838] sm:$0xff]  ;;  %v5503_v42 = vld [vmem:[#allocation2 + $0x530] sm:$0xff] }
 0x6cf   :  { %5725 = vmatprep.subr.bf16.mxu0 %v5538_v43  ;;  %5750 = vmatprep.subr.bf16.mxu1 %v5586_v45  ;;  %v5599_v43 = vld [vmem:[#allocation2 + $0x830] sm:$0xff]  ;;  %v5510_v45 = vld [vmem:[#allocation2 + $0x568] sm:$0xff] }
 0x6d0   :  { %5780 = vmatprep.mubr.bf16.mxu1 %v9119_v37 }
 0x6d2   :  { %5726 = vmatpush1.bf16.msra.mxu0 %v5537_v5  ;;  %5751 = vmatpush1.bf16.msra.mxu1 %v5585_v50  ;;  %v5606_v5 = vld [vmem:[#allocation2 + $0x868] sm:$0xff]  ;;  %v5605_v50 = vld [vmem:[#allocation2 + $0x860] sm:$0xff] }
 0x6d3   :  { %5727 = vmatprep.subr.bf16.mxu0 %v5544_v51  ;;  %5752 = vmatprep.subr.bf16.mxu1 %v5592_v52  ;;  %v5516_v51 = vld [vmem:[#allocation2 + $0x598] sm:$0xff] }
 0x6d4   :  { %v5612_v52 = vld [vmem:[#allocation2 + $0x898] sm:$0xff] }
 0x6d6   :  { %5728 = vmatpush1.bf16.msra.mxu0 %v5543_v60  ;;  %5753 = vmatpush1.bf16.msra.mxu1 %v5591_v53  ;;  %v5515_v60 = vld [vmem:[#allocation2 + $0x590] sm:$0xff] }
 0x6d7   :  { %5729 = vmatprep.subr.bf16.mxu0 %v5550_v32  ;;  %5754 = vmatprep.subr.bf16.mxu1 %v5598_v55  ;;  %v5611_v53 = vld [vmem:[#allocation2 + $0x890] sm:$0xff]  ;;  %v5522_v32 = vld [vmem:[#allocation2 + $0x5c8] sm:$0xff] }
 0x6d8   :  { %v5618_v55 = vld [vmem:[#allocation2 + $0x8c8] sm:$0xff] }
 0x6da   :  { %5730 = vmatpush1.bf16.msra.mxu0 %v5549_v29  ;;  %5755 = vmatpush1.bf16.msra.mxu1 %v5597_v56  ;;  %v5521_v29 = vld [vmem:[#allocation2 + $0x5c0] sm:$0xff] }
 0x6db   :  { %5731 = vmatprep.subr.bf16.mxu0 %v5556_v31  ;;  %5756 = vmatprep.subr.bf16.mxu1 %v5604_v57  ;;  %v5617_v56 = vld [vmem:[#allocation2 + $0x8c0] sm:$0xff]  ;;  %v5528_v31 = vld [vmem:[#allocation2 + $0x5f8] sm:$0xff] }
 0x6dc   :  { %v5624_v57 = vld [vmem:[#allocation2 + $0x8f8] sm:$0xff] }
 0x6de   :  { %5732 = vmatpush1.bf16.msra.mxu0 %v5555_v14  ;;  %5757 = vmatpush1.bf16.msra.mxu1 %v5603_v61  ;;  %v5527_v14 = vld [vmem:[#allocation2 + $0x5f0] sm:$0xff] }
 0x6df   :  { %5733 = vmatprep.subr.bf16.mxu0 %v5562_v1  ;;  %5758 = vmatprep.subr.bf16.mxu1 %v5610_v62  ;;  %v5623_v61 = vld [vmem:[#allocation2 + $0x8f0] sm:$0xff]  ;;  %v5534_v1 = vld [vmem:[#allocation2 + $0x628] sm:$0xff] }
 0x6e0   :  { %v5335_v62 = vld [vmem:[#allocation2 + $0x8] sm:$0xff] }
 0x6e2   :  { %5734 = vmatpush1.bf16.msra.mxu0 %v5561_v8  ;;  %5759 = vmatpush1.bf16.msra.mxu1 %v5609_v9  ;;  %v5533_v8 = vld [vmem:[#allocation2 + $0x620] sm:$0xff] }
 0x6e3   :  { %5735 = vmatprep.subr.bf16.mxu0 %v5568_v27  ;;  %5760 = vmatprep.subr.bf16.mxu1 %v5616_v10  ;;  %v5334_v9 = vld [vmem:[#allocation2] sm:$0xff]  ;;  %v5540_v27 = vld [vmem:[#allocation2 + $0x658] sm:$0xff] }
 0x6e4   :  { %v5341_v10 = vld [vmem:[#allocation2 + $0x38] sm:$0xff] }
 0x6e6   :  { %5736 = vmatpush1.bf16.msra.mxu0 %v5567_v39  ;;  %5761 = vmatpush1.bf16.msra.mxu1 %v5615_v12  ;;  %v9496_v39 = vpack.c.bf16 %v9466_v34, %v9466_v34  ;;  %v5539_v12 = vld [vmem:[#allocation2 + $0x650] sm:$0xff]  ;;  %v5552_v34 = vld [vmem:[#allocation2 + $0x6b8] sm:$0xff] }
 0x6e7   :  { %5737 = vmatprep.subr.bf16.mxu0 %v5574_v15  ;;  %5762 = vmatprep.subr.bf16.mxu1 %v5622_v38  ;;  %v5340_v15 = vld [vmem:[#allocation2 + $0x30] sm:$0xff]  ;;  %v5546_v38 = vld [vmem:[#allocation2 + $0x688] sm:$0xff] }
 0x6ea   :  { %5738 = vmatpush1.bf16.msra.mxu0 %v5573_v59  ;;  %5763 = vmatpush1.bf16.msra.mxu1 %v5621_v13  ;;  %v5347_v59 = vld [vmem:[#allocation2 + $0x68] sm:$0xff]  ;;  %v5545_v13 = vld [vmem:[#allocation2 + $0x680] sm:$0xff] }
 0x6eb   :  { %5789 = vmatprep.subr.bf16.mxu1 %v5486_v17  ;;  %5830 = vmatprep.subr.bf16.mxu0 %v5582_v20  ;;  %v5346_v17 = vld [vmem:[#allocation2 + $0x60] sm:$0xff]  ;;  %v5353_v20 = vld [vmem:[#allocation2 + $0x98] sm:$0xff] }
 0x6ed   :  { %5740 = vmatmul.mubr.bf16.vlgmr.msra.gmra.mrb[28].mxu0 %v9486_v36  ;;  %5781 = vmatmul.mubr.bf16.vlgmr.msra.gmra.mrb[24].mxu1 %v9480_v54 }
 0x6ee   :  { %5790 = vmatpush1.bf16.msra.mxu1 %v5485_v40  ;;  %5831 = vmatpush1.bf16.msra.mxu0 %v5581_v21  ;;  %v5352_v40 = vld [vmem:[#allocation2 + $0x90] sm:$0xff]  ;;  %v5558_v21 = vld [vmem:[#allocation2 + $0x6e8] sm:$0xff] }
 0x6ef   :  { %5791 = vmatprep.subr.bf16.mxu1 %v5492_v22  ;;  %5832 = vmatprep.subr.bf16.mxu0 %v5588_v23  ;;  %v5359_v22 = vld [vmem:[#allocation2 + $0xc8] sm:$0xff]  ;;  %v5557_v23 = vld [vmem:[#allocation2 + $0x6e0] sm:$0xff] }
 0x6f0   :  { %5862 = vmatprep.mubr.bf16.mxu0 %v9119_v37  ;;  %5821 = vmatprep.mubr.bf16.mxu1 %v9474_v3  ;;  %v5509_v3 = vld [vmem:[#allocation2 + $0x560] sm:$0xff] }
 0x6f2   :  { %5792 = vmatpush1.bf16.msra.mxu1 %v5491_v25  ;;  %5833 = vmatpush1.bf16.msra.mxu0 %v5587_v26  ;;  %v5358_v25 = vld [vmem:[#allocation2 + $0xc0] sm:$0xff]  ;;  %v5564_v26 = vld [vmem:[#allocation2 + $0x718] sm:$0xff] }
 0x6f3   :  { %5793 = vmatprep.subr.bf16.mxu1 %v5498_v28  ;;  %5834 = vmatprep.subr.bf16.mxu0 %v5594_v48  ;;  %v5365_v28 = vld [vmem:[#allocation2 + $0xf8] sm:$0xff]  ;;  %v5563_v48 = vld [vmem:[#allocation2 + $0x710] sm:$0xff] }
 0x6f6   :  { %5794 = vmatpush1.bf16.msra.mxu1 %v5497_v0  ;;  %5835 = vmatpush1.bf16.msra.mxu0 %v5593_v35  ;;  %v5364_v0 = vld [vmem:[#allocation2 + $0xf0] sm:$0xff]  ;;  %v5570_v35 = vld [vmem:[#allocation2 + $0x748] sm:$0xff] }
 0x6f7   :  { %5795 = vmatprep.subr.bf16.mxu1 %v5504_v16  ;;  %5836 = vmatprep.subr.bf16.mxu0 %v5600_v41  ;;  %v5371_v16 = vld [vmem:[#allocation2 + $0x128] sm:$0xff]  ;;  %v5569_v41 = vld [vmem:[#allocation2 + $0x740] sm:$0xff] }
 0x6fa   :  { %5796 = vmatpush1.bf16.msra.mxu1 %v5503_v42  ;;  %5837 = vmatpush1.bf16.msra.mxu0 %v5599_v43  ;;  %v5370_v42 = vld [vmem:[#allocation2 + $0x120] sm:$0xff]  ;;  %v5576_v43 = vld [vmem:[#allocation2 + $0x778] sm:$0xff] }
 0x6fb   :  { %5797 = vmatprep.subr.bf16.mxu1 %v5510_v45  ;;  %5838 = vmatprep.subr.bf16.mxu0 %v5606_v5  ;;  %v5377_v45 = vld [vmem:[#allocation2 + $0x158] sm:$0xff]  ;;  %v5575_v5 = vld [vmem:[#allocation2 + $0x770] sm:$0xff] }
 0x6fe   :  { %5798 = vmatpush1.bf16.msra.mxu1 %v5509_v3  ;;  %5839 = vmatpush1.bf16.msra.mxu0 %v5605_v50  ;;  %v5376_v3 = vld [vmem:[#allocation2 + $0x150] sm:$0xff]  ;;  %v5383_v50 = vld [vmem:[#allocation2 + $0x188] sm:$0xff] }
 0x6ff   :  { %5799 = vmatprep.subr.bf16.mxu1 %v5516_v51  ;;  %5840 = vmatprep.subr.bf16.mxu0 %v5612_v52  ;;  %v5431_v51 = vld [vmem:[#allocation2 + $0x308] sm:$0xff]  ;;  %v5382_v52 = vld [vmem:[#allocation2 + $0x180] sm:$0xff] }
 0x702   :  { %5800 = vmatpush1.bf16.msra.mxu1 %v5515_v60  ;;  %5841 = vmatpush1.bf16.msra.mxu0 %v5611_v53  ;;  %v5430_v60 = vld [vmem:[#allocation2 + $0x300] sm:$0xff]  ;;  %v5389_v53 = vld [vmem:[#allocation2 + $0x1b8] sm:$0xff] }
 0x703   :  { %5801 = vmatprep.subr.bf16.mxu1 %v5522_v32  ;;  %5842 = vmatprep.subr.bf16.mxu0 %v5618_v55  ;;  %v5437_v32 = vld [vmem:[#allocation2 + $0x338] sm:$0xff]  ;;  %v5388_v55 = vld [vmem:[#allocation2 + $0x1b0] sm:$0xff] }
 0x706   :  { %5802 = vmatpush1.bf16.msra.mxu1 %v5521_v29  ;;  %5843 = vmatpush1.bf16.msra.mxu0 %v5617_v56  ;;  %v5436_v29 = vld [vmem:[#allocation2 + $0x330] sm:$0xff]  ;;  %v5395_v56 = vld [vmem:[#allocation2 + $0x1e8] sm:$0xff] }
 0x707   :  { %5803 = vmatprep.subr.bf16.mxu1 %v5528_v31  ;;  %5844 = vmatprep.subr.bf16.mxu0 %v5624_v57  ;;  %v5443_v31 = vld [vmem:[#allocation2 + $0x368] sm:$0xff]  ;;  %v5394_v57 = vld [vmem:[#allocation2 + $0x1e0] sm:$0xff] }
 0x70a   :  { %5804 = vmatpush1.bf16.msra.mxu1 %v5527_v14  ;;  %5845 = vmatpush1.bf16.msra.mxu0 %v5623_v61  ;;  %v5442_v14 = vld [vmem:[#allocation2 + $0x360] sm:$0xff]  ;;  %v5401_v61 = vld [vmem:[#allocation2 + $0x218] sm:$0xff] }
 0x70b   :  { %5805 = vmatprep.subr.bf16.mxu1 %v5534_v1  ;;  %5871 = vmatprep.subr.bf16.mxu0 %v5335_v62  ;;  %v5449_v1 = vld [vmem:[#allocation2 + $0x398] sm:$0xff]  ;;  %v5448_v62 = vld [vmem:[#allocation2 + $0x390] sm:$0xff] }
 0x70d   :  { %5863 = vmatmul.mubr.bf16.vlgmr.msra.gmra.mrb[32].mxu0 %v9480_v54  ;;  %v5551_v54 = vld [vmem:[#allocation2 + $0x6b0] sm:$0xff] }
 0x70e   :  { %5806 = vmatpush1.bf16.msra.mxu1 %v5533_v8  ;;  %5872 = vmatpush1.bf16.msra.mxu0 %v5334_v9  ;;  %v5407_v8 = vld [vmem:[#allocation2 + $0x248] sm:$0xff] }
 0x70f   :  { %5807 = vmatprep.subr.bf16.mxu1 %v5540_v27  ;;  %5873 = vmatprep.subr.bf16.mxu0 %v5341_v10  ;;  %v5455_v9 = vld [vmem:[#allocation2 + $0x3c8] sm:$0xff]  ;;  %v5406_v27 = vld [vmem:[#allocation2 + $0x240] sm:$0xff] }
 0x710   :  { %5903 = vmatprep.mubr.bf16.mxu0 %v9496_v39  ;;  %v5454_v10 = vld [vmem:[#allocation2 + $0x3c0] sm:$0xff] }
 0x712   :  { %5808 = vmatpush1.bf16.msra.mxu1 %v5539_v12  ;;  %5874 = vmatpush1.bf16.msra.mxu0 %v5340_v15  ;;  %v5413_v12 = vld [vmem:[#allocation2 + $0x278] sm:$0xff] }
 0x713   :  { %5809 = vmatprep.subr.bf16.mxu1 %v5546_v38  ;;  %5875 = vmatprep.subr.bf16.mxu0 %v5347_v59  ;;  %v5461_v15 = vld [vmem:[#allocation2 + $0x3f8] sm:$0xff]  ;;  %v5412_v38 = vld [vmem:[#allocation2 + $0x270] sm:$0xff] }
 0x714   :  { %v5460_v59 = vld [vmem:[#allocation2 + $0x3f0] sm:$0xff] }
 0x716   :  { %5810 = vmatpush1.bf16.msra.mxu1 %v5545_v13  ;;  %5876 = vmatpush1.bf16.msra.mxu0 %v5346_v17  ;;  %v5419_v13 = vld [vmem:[#allocation2 + $0x2a8] sm:$0xff] }
 0x717   :  { %5811 = vmatprep.subr.bf16.mxu1 %v5552_v34  ;;  %5877 = vmatprep.subr.bf16.mxu0 %v5353_v20  ;;  %v5467_v17 = vld [vmem:[#allocation2 + $0x428] sm:$0xff]  ;;  %v5418_v34 = vld [vmem:[#allocation2 + $0x2a0] sm:$0xff] }
 0x718   :  { %v5466_v20 = vld [vmem:[#allocation2 + $0x420] sm:$0xff] }
 0x71a   :  { %5812 = vmatpush1.bf16.msra.mxu1 %v5551_v54  ;;  %5878 = vmatpush1.bf16.msra.mxu0 %v5352_v40  ;;  %v5425_v54 = vld [vmem:[#allocation2 + $0x2d8] sm:$0xff] }
 0x71b   :  { %5813 = vmatprep.subr.bf16.mxu1 %v5558_v21  ;;  %5879 = vmatprep.subr.bf16.mxu0 %v5359_v22  ;;  %v5473_v40 = vld [vmem:[#allocation2 + $0x458] sm:$0xff]  ;;  %v5424_v21 = vld [vmem:[#allocation2 + $0x2d0] sm:$0xff] }
 0x71c   :  { %v5472_v22 = vld [vmem:[#allocation2 + $0x450] sm:$0xff] }
 0x71e   :  { %5814 = vmatpush1.bf16.msra.mxu1 %v5557_v23  ;;  %5880 = vmatpush1.bf16.msra.mxu0 %v5358_v25  ;;  %v5337_v23 = vld [vmem:[#allocation2 + $0x18] sm:$0xff] }
 0x71f   :  { %5815 = vmatprep.subr.bf16.mxu1 %v5564_v26  ;;  %5881 = vmatprep.subr.bf16.mxu0 %v5365_v28  ;;  %v5433_v25 = vld [vmem:[#allocation2 + $0x318] sm:$0xff]  ;;  %v9504_v26 = vpack.c.bf16 %v9464_v33, %v9464_v33  ;;  %v9508_v28 = vpack.c.bf16 %v9468_v58, %v9468_v58  ;;  %v5342_v33 = vld [vmem:[#allocation2 + $0x40] sm:$0xff] }
 0x720   :  { %v5349_v58 = vld [vmem:[#allocation2 + $0x78] sm:$0xff] }
 0x722   :  { %5816 = vmatpush1.bf16.msra.mxu1 %v5563_v48  ;;  %5882 = vmatpush1.bf16.msra.mxu0 %v5364_v0  ;;  %v5336_v48 = vld [vmem:[#allocation2 + $0x10] sm:$0xff] }
 0x723   :  { %5817 = vmatprep.subr.bf16.mxu1 %v5570_v35  ;;  %5883 = vmatprep.subr.bf16.mxu0 %v5371_v16  ;;  %v5432_v0 = vld [vmem:[#allocation2 + $0x310] sm:$0xff]  ;;  %v5343_v35 = vld [vmem:[#allocation2 + $0x48] sm:$0xff] }
 0x724   :  { %v5439_v16 = vld [vmem:[#allocation2 + $0x348] sm:$0xff] }
 0x726   :  { %5818 = vmatpush1.bf16.msra.mxu1 %v5569_v41  ;;  %5884 = vmatpush1.bf16.msra.mxu0 %v5370_v42  ;;  %v5438_v41 = vld [vmem:[#allocation2 + $0x340] sm:$0xff]  ;;  %v5445_v42 = vld [vmem:[#allocation2 + $0x378] sm:$0xff] }
 0x727   :  { %5819 = vmatprep.subr.bf16.mxu1 %v5576_v43  ;;  %5885 = vmatprep.subr.bf16.mxu0 %v5377_v45  ;;  %v5348_v43 = vld [vmem:[#allocation2 + $0x70] sm:$0xff] }
 0x728   :  { %v5444_v45 = vld [vmem:[#allocation2 + $0x370] sm:$0xff] }
 0x72a   :  { %5820 = vmatpush1.bf16.msra.mxu1 %v5575_v5  ;;  %5886 = vmatpush1.bf16.msra.mxu0 %v5376_v3  ;;  %v5355_v5 = vld [vmem:[#allocation2 + $0xa8] sm:$0xff] }
 0x72b   :  { %5887 = vmatprep.subr.bf16.mxu0 %v5383_v50  ;;  %5912 = vmatprep.subr.bf16.mxu1 %v5431_v51  ;;  %v5451_v3 = vld [vmem:[#allocation2 + $0x3a8] sm:$0xff]  ;;  %v5354_v50 = vld [vmem:[#allocation2 + $0xa0] sm:$0xff] }
 0x72c   :  { %v5450_v51 = vld [vmem:[#allocation2 + $0x3a0] sm:$0xff] }
 0x72d   :  { %5822 = vmatmul.mubr.bf16.vlgmr.msra.gmra.mrb[28].mxu1 %v9486_v36  ;;  %v5400_v36 = vld [vmem:[#allocation2 + $0x210] sm:$0xff] }
 0x72e   :  { %5888 = vmatpush1.bf16.msra.mxu0 %v5382_v52  ;;  %5913 = vmatpush1.bf16.msra.mxu1 %v5430_v60  ;;  %v5361_v52 = vld [vmem:[#allocation2 + $0xd8] sm:$0xff] }
 0x72f   :  { %5889 = vmatprep.subr.bf16.mxu0 %v5389_v53  ;;  %5914 = vmatprep.subr.bf16.mxu1 %v5437_v32  ;;  %v5457_v60 = vld [vmem:[#allocation2 + $0x3d8] sm:$0xff]  ;;  %v5360_v53 = vld [vmem:[#allocation2 + $0xd0] sm:$0xff] }
 0x730   :  { %5944 = vmatprep.mubr.bf16.mxu1 %v9119_v37  ;;  %v5456_v32 = vld [vmem:[#allocation2 + $0x3d0] sm:$0xff] }
 0x732   :  { %5890 = vmatpush1.bf16.msra.mxu0 %v5388_v55  ;;  %5915 = vmatpush1.bf16.msra.mxu1 %v5436_v29  ;;  %v5367_v55 = vld [vmem:[#allocation2 + $0x108] sm:$0xff] }
 0x733   :  { %5891 = vmatprep.subr.bf16.mxu0 %v5395_v56  ;;  %5916 = vmatprep.subr.bf16.mxu1 %v5443_v31  ;;  %v5463_v29 = vld [vmem:[#allocation2 + $0x408] sm:$0xff]  ;;  %v5366_v56 = vld [vmem:[#allocation2 + $0x100] sm:$0xff] }
 0x734   :  { %v5462_v31 = vld [vmem:[#allocation2 + $0x400] sm:$0xff] }
 0x736   :  { %5892 = vmatpush1.bf16.msra.mxu0 %v5394_v57  ;;  %5917 = vmatpush1.bf16.msra.mxu1 %v5442_v14  ;;  %v5373_v57 = vld [vmem:[#allocation2 + $0x138] sm:$0xff] }
 0x737   :  { %5893 = vmatprep.subr.bf16.mxu0 %v5401_v61  ;;  %5918 = vmatprep.subr.bf16.mxu1 %v5449_v1  ;;  %v5469_v14 = vld [vmem:[#allocation2 + $0x438] sm:$0xff]  ;;  %v5372_v61 = vld [vmem:[#allocation2 + $0x130] sm:$0xff] }
 0x738   :  { %v5468_v1 = vld [vmem:[#allocation2 + $0x430] sm:$0xff] }
 0x73a   :  { %5894 = vmatpush1.bf16.msra.mxu0 %v5400_v36  ;;  %5919 = vmatpush1.bf16.msra.mxu1 %v5448_v62  ;;  %v5379_v36 = vld [vmem:[#allocation2 + $0x168] sm:$0xff] }
 0x73b   :  { %5895 = vmatprep.subr.bf16.mxu0 %v5407_v8  ;;  %5920 = vmatprep.subr.bf16.mxu1 %v5455_v9  ;;  %v5475_v62 = vld [vmem:[#allocation2 + $0x468] sm:$0xff]  ;;  %v5378_v8 = vld [vmem:[#allocation2 + $0x160] sm:$0xff] }
 0x73c   :  { %v5474_v9 = vld [vmem:[#allocation2 + $0x460] sm:$0xff] }
 0x73e   :  { %5896 = vmatpush1.bf16.msra.mxu0 %v5406_v27  ;;  %5921 = vmatpush1.bf16.msra.mxu1 %v5454_v10  ;;  %v5385_v27 = vld [vmem:[#allocation2 + $0x198] sm:$0xff]  ;;  %v5339_v10 = vld [vmem:[#allocation2 + $0x28] sm:$0xff] }
 0x73f   :  { %5897 = vmatprep.subr.bf16.mxu0 %v5413_v12  ;;  %5922 = vmatprep.subr.bf16.mxu1 %v5461_v15  ;;  %v5384_v12 = vld [vmem:[#allocation2 + $0x190] sm:$0xff]  ;;  %v5338_v15 = vld [vmem:[#allocation2 + $0x20] sm:$0xff] }
 0x742   :  { %5898 = vmatpush1.bf16.msra.mxu0 %v5412_v38  ;;  %5923 = vmatpush1.bf16.msra.mxu1 %v5460_v59  ;;  %v5391_v38 = vld [vmem:[#allocation2 + $0x1c8] sm:$0xff]  ;;  %v5345_v59 = vld [vmem:[#allocation2 + $0x58] sm:$0xff] }
 0x743   :  { %5899 = vmatprep.subr.bf16.mxu0 %v5419_v13  ;;  %5924 = vmatprep.subr.bf16.mxu1 %v5467_v17  ;;  %v5390_v13 = vld [vmem:[#allocation2 + $0x1c0] sm:$0xff]  ;;  %v5344_v17 = vld [vmem:[#allocation2 + $0x50] sm:$0xff] }
 0x746   :  { %5900 = vmatpush1.bf16.msra.mxu0 %v5418_v34  ;;  %5925 = vmatpush1.bf16.msra.mxu1 %v5466_v20  ;;  %v5397_v34 = vld [vmem:[#allocation2 + $0x1f8] sm:$0xff]  ;;  %v5351_v20 = vld [vmem:[#allocation2 + $0x88] sm:$0xff] }
 0x747   :  { %5901 = vmatprep.subr.bf16.mxu0 %v5425_v54  ;;  %5926 = vmatprep.subr.bf16.mxu1 %v5473_v40  ;;  %v5396_v54 = vld [vmem:[#allocation2 + $0x1f0] sm:$0xff]  ;;  %v5350_v40 = vld [vmem:[#allocation2 + $0x80] sm:$0xff] }
 0x74a   :  { %5902 = vmatpush1.bf16.msra.mxu0 %v5424_v21  ;;  %5927 = vmatpush1.bf16.msra.mxu1 %v5472_v22  ;;  %v5403_v21 = vld [vmem:[#allocation2 + $0x228] sm:$0xff]  ;;  %v5357_v22 = vld [vmem:[#allocation2 + $0xb8] sm:$0xff] }
 0x74b   :  { %5953 = vmatprep.subr.bf16.mxu1 %v5337_v23  ;;  %5994 = vmatprep.subr.bf16.mxu0 %v5433_v25  ;;  %v5402_v23 = vld [vmem:[#allocation2 + $0x220] sm:$0xff]  ;;  %v5356_v25 = vld [vmem:[#allocation2 + $0xb0] sm:$0xff] }
 0x74d   :  { %5904 = vmatmul.mubr.bf16.vlgmr.msra.gmra.mrb[36].mxu0 %v9504_v26  ;;  %5945 = vmatmul.mubr.bf16.vlgmr.msra.gmra.mrb[32].mxu1 %v9508_v28 }
 0x74e   :  { %5954 = vmatpush1.bf16.msra.mxu1 %v5336_v48  ;;  %5995 = vmatpush1.bf16.msra.mxu0 %v5432_v0  ;;  %v5409_v48 = vld [vmem:[#allocation2 + $0x258] sm:$0xff]  ;;  %v5363_v0 = vld [vmem:[#allocation2 + $0xe8] sm:$0xff] }
 0x74f   :  { %5955 = vmatprep.subr.bf16.mxu1 %v5343_v35  ;;  %5996 = vmatprep.subr.bf16.mxu0 %v5439_v16  ;;  %v5362_v35 = vld [vmem:[#allocation2 + $0xe0] sm:$0xff]  ;;  %v5415_v16 = vld [vmem:[#allocation2 + $0x288] sm:$0xff] }
 0x750   :  { %6026 = vmatprep.mubr.bf16.mxu0 %v9119_v37  ;;  %5985 = vmatprep.mubr.bf16.mxu1 %v9496_v39 }
 0x752   :  { %5956 = vmatpush1.bf16.msra.mxu1 %v5342_v33  ;;  %5997 = vmatpush1.bf16.msra.mxu0 %v5438_v41  ;;  %v5369_v33 = vld [vmem:[#allocation2 + $0x118] sm:$0xff]  ;;  %v5414_v41 = vld [vmem:[#allocation2 + $0x280] sm:$0xff] }
 0x753   :  { %5957 = vmatprep.subr.bf16.mxu1 %v5349_v58  ;;  %5998 = vmatprep.subr.bf16.mxu0 %v5445_v42  ;;  %v5368_v58 = vld [vmem:[#allocation2 + $0x110] sm:$0xff] }
 0x756   :  { %5958 = vmatpush1.bf16.msra.mxu1 %v5348_v43  ;;  %5999 = vmatpush1.bf16.msra.mxu0 %v5444_v45  ;;  %v5421_v43 = vld [vmem:[#allocation2 + $0x2b8] sm:$0xff]  ;;  %v5375_v45 = vld [vmem:[#allocation2 + $0x148] sm:$0xff] }
 0x757   :  { %5959 = vmatprep.subr.bf16.mxu1 %v5355_v5  ;;  %6000 = vmatprep.subr.bf16.mxu0 %v5451_v3 }
 0x75a   :  { %5960 = vmatpush1.bf16.msra.mxu1 %v5354_v50  ;;  %6001 = vmatpush1.bf16.msra.mxu0 %v5450_v51  ;;  %v5420_v51 = vld [vmem:[#allocation2 + $0x2b0] sm:$0xff] }
 0x75b   :  { %5961 = vmatprep.subr.bf16.mxu1 %v5361_v52  ;;  %6002 = vmatprep.subr.bf16.mxu0 %v5457_v60  ;;  %v5374_v52 = vld [vmem:[#allocation2 + $0x140] sm:$0xff]  ;;  %v5427_v60 = vld [vmem:[#allocation2 + $0x2e8] sm:$0xff] }
 0x75e   :  { %5962 = vmatpush1.bf16.msra.mxu1 %v5360_v53  ;;  %6003 = vmatpush1.bf16.msra.mxu0 %v5456_v32  ;;  %v5381_v53 = vld [vmem:[#allocation2 + $0x178] sm:$0xff]  ;;  %v5426_v32 = vld [vmem:[#allocation2 + $0x2e0] sm:$0xff] }
 0x75f   :  { %5963 = vmatprep.subr.bf16.mxu1 %v5367_v55  ;;  %6004 = vmatprep.subr.bf16.mxu0 %v5463_v29  ;;  %v5380_v55 = vld [vmem:[#allocation2 + $0x170] sm:$0xff]  ;;  %v5387_v29 = vld [vmem:[#allocation2 + $0x1a8] sm:$0xff] }
 0x762   :  { %5964 = vmatpush1.bf16.msra.mxu1 %v5366_v56  ;;  %6005 = vmatpush1.bf16.msra.mxu0 %v5462_v31  ;;  %v5435_v56 = vld [vmem:[#allocation2 + $0x328] sm:$0xff]  ;;  %v5386_v31 = vld [vmem:[#allocation2 + $0x1a0] sm:$0xff] }
 0x763   :  { %5965 = vmatprep.subr.bf16.mxu1 %v5373_v57  ;;  %6006 = vmatprep.subr.bf16.mxu0 %v5469_v14  ;;  %v5434_v57 = vld [vmem:[#allocation2 + $0x320] sm:$0xff]  ;;  %v5393_v14 = vld [vmem:[#allocation2 + $0x1d8] sm:$0xff] }
 0x766   :  { %5966 = vmatpush1.bf16.msra.mxu1 %v5372_v61  ;;  %6007 = vmatpush1.bf16.msra.mxu0 %v5468_v1  ;;  %v5441_v61 = vld [vmem:[#allocation2 + $0x358] sm:$0xff]  ;;  %v5392_v1 = vld [vmem:[#allocation2 + $0x1d0] sm:$0xff] }
 0x767   :  { %5967 = vmatprep.subr.bf16.mxu1 %v5379_v36  ;;  %6008 = vmatprep.subr.bf16.mxu0 %v5475_v62  ;;  %v5440_v36 = vld [vmem:[#allocation2 + $0x350] sm:$0xff]  ;;  %v5399_v62 = vld [vmem:[#allocation2 + $0x208] sm:$0xff] }
 0x76a   :  { %5968 = vmatpush1.bf16.msra.mxu1 %v5378_v8  ;;  %6009 = vmatpush1.bf16.msra.mxu0 %v5474_v9  ;;  %v5447_v8 = vld [vmem:[#allocation2 + $0x388] sm:$0xff]  ;;  %v5398_v9 = vld [vmem:[#allocation2 + $0x200] sm:$0xff] }
 0x76b   :  { %5969 = vmatprep.subr.bf16.mxu1 %v5385_v27  ;;  %6035 = vmatprep.subr.bf16.mxu0 %v5339_v10  ;;  %v5446_v27 = vld [vmem:[#allocation2 + $0x380] sm:$0xff]  ;;  %v5405_v10 = vld [vmem:[#allocation2 + $0x238] sm:$0xff] }
 0x76d   :  { %6027 = vmatmul.mubr.bf16.vlgmr.msra.gmra.mrb[40].mxu0 %v9508_v28 }
 0x76e   :  { %5970 = vmatpush1.bf16.msra.mxu1 %v5384_v12  ;;  %6036 = vmatpush1.bf16.msra.mxu0 %v5338_v15  ;;  %v5453_v12 = vld [vmem:[#allocation2 + $0x3b8] sm:$0xff]  ;;  %v5404_v15 = vld [vmem:[#allocation2 + $0x230] sm:$0xff] }
 0x76f   :  { %5971 = vmatprep.subr.bf16.mxu1 %v5391_v38  ;;  %6037 = vmatprep.subr.bf16.mxu0 %v5345_v59  ;;  %v5452_v38 = vld [vmem:[#allocation2 + $0x3b0] sm:$0xff]  ;;  %v5411_v59 = vld [vmem:[#allocation2 + $0x268] sm:$0xff] }
 0x770   :  { %6067 = vmatprep.mubr.bf16.mxu0 %v9496_v39  ;;  %v5408_v39 = vld [vmem:[#allocation2 + $0x250] sm:$0xff] }
 0x772   :  { %5972 = vmatpush1.bf16.msra.mxu1 %v5390_v13  ;;  %6038 = vmatpush1.bf16.msra.mxu0 %v5344_v17  ;;  %v5459_v13 = vld [vmem:[#allocation2 + $0x3e8] sm:$0xff]  ;;  %v5458_v17 = vld [vmem:[#allocation2 + $0x3e0] sm:$0xff] }
 0x773   :  { %5973 = vmatprep.subr.bf16.mxu1 %v5397_v34  ;;  %6039 = vmatprep.subr.bf16.mxu0 %v5351_v20  ;;  %v5417_v34 = vld [vmem:[#allocation2 + $0x298] sm:$0xff] }
 0x774   :  { %v5465_v20 = vld [vmem:[#allocation2 + $0x418] sm:$0xff] }
 0x776   :  { %5974 = vmatpush1.bf16.msra.mxu1 %v5396_v54  ;;  %6040 = vmatpush1.bf16.msra.mxu0 %v5350_v40  ;;  %v5416_v54 = vld [vmem:[#allocation2 + $0x290] sm:$0xff] }
 0x777   :  { %5975 = vmatprep.subr.bf16.mxu1 %v5403_v21  ;;  %6041 = vmatprep.subr.bf16.mxu0 %v5357_v22  ;;  %v5464_v40 = vld [vmem:[#allocation2 + $0x410] sm:$0xff]  ;;  %v5423_v22 = vld [vmem:[#allocation2 + $0x2c8] sm:$0xff] }
 0x77a   :  { %5976 = vmatpush1.bf16.msra.mxu1 %v5402_v23  ;;  %6042 = vmatpush1.bf16.msra.mxu0 %v5356_v25  ;;  %v5471_v23 = vld [vmem:[#allocation2 + $0x448] sm:$0xff] }
 0x77b   :  { %5977 = vmatprep.subr.bf16.mxu1 %v5409_v48  ;;  %6043 = vmatprep.subr.bf16.mxu0 %v5363_v0 }
 0x77e   :  { %5978 = vmatpush1.bf16.msra.mxu1 %v5408_v39  ;;  %6044 = vmatpush1.bf16.msra.mxu0 %v5362_v35 }
 0x77f   :  { %5979 = vmatprep.subr.bf16.mxu1 %v5415_v16  ;;  %6045 = vmatprep.subr.bf16.mxu0 %v5369_v33  ;;  %v5422_v16 = vld [vmem:[#allocation2 + $0x2c0] sm:$0xff] }
 0x780   :  { %v9516_v42 = vpop.f32.mrb[24].mxu0  ;;  %v5470_v33 = vld [vmem:[#allocation2 + $0x440] sm:$0xff] }
 0x781   :  { %v9518_v5 = vpop.f32.mrb[25].mxu0 }
 0x782   :  { %v5704_v3 = vpop.f32.mrb[26].mxu0  ;;  %5980 = vmatpush1.bf16.msra.mxu1 %v5414_v41  ;;  %6046 = vmatpush1.bf16.msra.mxu0 %v5368_v58  ;;  %v5429_v41 = vld [vmem:[#allocation2 + $0x2f8] sm:$0xff] }
 0x783   :  { %v5705_v50 = vpop.f32.mrb[27].mxu0  ;;  %5981 = vmatprep.subr.bf16.mxu1 %v5421_v43  ;;  %6047 = vmatprep.subr.bf16.mxu0 %v5375_v45  ;;  %v5477_v58 = vld [vmem:[#allocation2 + $0x478] sm:$0xff]  ;;  %v5428_v43 = vld [vmem:[#allocation2 + $0x2f0] sm:$0xff] }
 0x784   :  { %v5476_v45 = vld [vmem:[#allocation2 + $0x470] sm:$0xff] }
 0x786   :  { %5982 = vmatpush1.bf16.msra.mxu1 %v5420_v51  ;;  %6048 = vmatpush1.bf16.msra.mxu0 %v5374_v52 }
 0x787   :  { %5983 = vmatprep.subr.bf16.mxu1 %v5427_v60  ;;  %6049 = vmatprep.subr.bf16.mxu0 %v5381_v53 }
 0x78a   :  { %5984 = vmatpush1.bf16.msra.mxu1 %v5426_v32  ;;  %6050 = vmatpush1.bf16.msra.mxu0 %v5380_v55 }
 0x78b   :  { %6051 = vmatprep.subr.bf16.mxu0 %v5387_v29  ;;  %6076 = vmatprep.subr.bf16.mxu1 %v5435_v56 }
 0x78d   :  { %5986 = vmatmul.mubr.bf16.vlgmr.msra.gmra.mrb[36].mxu1 %v9504_v26 }
 0x78e   :  { %6052 = vmatpush1.bf16.msra.mxu0 %v5386_v31  ;;  %6077 = vmatpush1.bf16.msra.mxu1 %v5434_v57 }
 0x78f   :  { %6053 = vmatprep.subr.bf16.mxu0 %v5393_v14  ;;  %6078 = vmatprep.subr.bf16.mxu1 %v5441_v61 }
 0x790   :  { %6108 = vmatprep.mubr.bf16.mxu1 %v9119_v37  ;;  %v5410_v37 = vld [vmem:[#allocation2 + $0x260] sm:$0xff] }
 0x792   :  { %6054 = vmatpush1.bf16.msra.mxu0 %v5392_v1  ;;  %6079 = vmatpush1.bf16.msra.mxu1 %v5440_v36 }
 0x793   :  { %6055 = vmatprep.subr.bf16.mxu0 %v5399_v62  ;;  %6080 = vmatprep.subr.bf16.mxu1 %v5447_v8 }
 0x796   :  { %6056 = vmatpush1.bf16.msra.mxu0 %v5398_v9  ;;  %6081 = vmatpush1.bf16.msra.mxu1 %v5446_v27 }
 0x797   :  { %6057 = vmatprep.subr.bf16.mxu0 %v5405_v10  ;;  %6082 = vmatprep.subr.bf16.mxu1 %v5453_v12 }
 0x79a   :  { %6058 = vmatpush1.bf16.msra.mxu0 %v5404_v15  ;;  %6083 = vmatpush1.bf16.msra.mxu1 %v5452_v38 }
 0x79b   :  { %6059 = vmatprep.subr.bf16.mxu0 %v5411_v59  ;;  %6084 = vmatprep.subr.bf16.mxu1 %v5459_v13 }
 0x79e   :  { %6060 = vmatpush1.bf16.msra.mxu0 %v5410_v37  ;;  %6085 = vmatpush1.bf16.msra.mxu1 %v5458_v17 }
 0x79f   :  { %6061 = vmatprep.subr.bf16.mxu0 %v5417_v34  ;;  %6086 = vmatprep.subr.bf16.mxu1 %v5465_v20 }
 0x7a0   :  { %v5659_v21 = vpop.f32.mrb[20].mxu1 }
 0x7a1   :  { %v5701_v25 = vadd.f32 %v9516_v42, %v5659_v21  ;;  %v5661_v48 = vpop.f32.mrb[21].mxu1 }
 0x7a2   :  { %v5703_v0 = vadd.f32 %v9518_v5, %v5661_v48  ;;  %v5663_v39 = vpop.f32.mrb[22].mxu1  ;;  %6062 = vmatpush1.bf16.msra.mxu0 %v5416_v54  ;;  %6087 = vmatpush1.bf16.msra.mxu1 %v5464_v40 }
 0x7a3   :  { %v5664_v35 = vpop.f32.mrb[23].mxu1  ;;  %6063 = vmatprep.subr.bf16.mxu0 %v5423_v22  ;;  %6088 = vmatprep.subr.bf16.mxu1 %v5471_v23 }
 0x7a6   :  { %6064 = vmatpush1.bf16.msra.mxu0 %v5422_v16  ;;  %6089 = vmatpush1.bf16.msra.mxu1 %v5470_v33  ;;  %v6118_v33 = vld [vmem:[#allocation14 + $0x91] ss:$8 sm:$0xf] }
 0x7a7   :  { %6065 = vmatprep.subr.bf16.mxu0 %v5429_v41  ;;  %6090 = vmatprep.subr.bf16.mxu1 %v5477_v58 }
 0x7aa   :  { %6066 = vmatpush1.bf16.msra.mxu0 %v5428_v43  ;;  %6091 = vmatpush1.bf16.msra.mxu1 %v5476_v45 }
 0x7ad   :  { %6068 = vmatmul.mubr.bf16.vlgmr.msra.gmra.mrb[44].mxu0 %v9504_v26  ;;  %6109 = vmatmul.mubr.bf16.vlgmr.msra.gmra.mrb[40].mxu1 %v9508_v28 }
 0x7c0   :  { %v5741_v42 = vpop.f32.mrb[28].mxu0  ;;  %v5782_v5 = vpop.f32.mrb[24].mxu1 }
 0x7c1   :  { %v5783_v3 = vadd.f32 %v5782_v5, %v5741_v42  ;;  %v5743_v50 = vpop.f32.mrb[29].mxu0  ;;  %v5784_v51 = vpop.f32.mrb[25].mxu1 }
 0x7c2   :  { %v5785_v52 = vadd.f32 %v5784_v51, %v5743_v50  ;;  %v5745_v60 = vpop.f32.mrb[30].mxu0  ;;  %v5786_v53 = vpop.f32.mrb[26].mxu1 }
 0x7c3   :  { %v5746_v32 = vpop.f32.mrb[31].mxu0  ;;  %v5787_v55 = vpop.f32.mrb[27].mxu1 }
 0x7e0   :  { %v5864_v29 = vpop.f32.mrb[32].mxu0 }
 0x7e1   :  { %v5866_v56 = vpop.f32.mrb[33].mxu0 }
 0x7e2   :  { %v5868_v31 = vpop.f32.mrb[34].mxu0 }
 0x7e3   :  { %v5869_v57 = vpop.f32.mrb[35].mxu0 }
 0x800   :  { %v5823_v14 = vpop.f32.mrb[28].mxu1 }
 0x801   :  { %v5865_v61 = vadd.f32 %v5864_v29, %v5823_v14  ;;  %v5825_v1 = vpop.f32.mrb[29].mxu1 }
 0x802   :  { %v5867_v26 = vadd.f32 %v5866_v56, %v5825_v1  ;;  %v5827_v36 = vpop.f32.mrb[30].mxu1 }
 0x803   :  { %v5828_v28 = vpop.f32.mrb[31].mxu1 }
 0x820   :  { %v5905_v62 = vpop.f32.mrb[36].mxu0  ;;  %v5946_v8 = vpop.f32.mrb[32].mxu1 }
 0x821   :  { %v5906_v9 = vadd.f32 %v5905_v62, %v5701_v25  ;;  %v5907_v27 = vpop.f32.mrb[37].mxu0  ;;  %v5948_v10 = vpop.f32.mrb[33].mxu1 }
 0x822   :  { %v5908_v12 = vadd.f32 %v5907_v27, %v5703_v0  ;;  %v5909_v15 = vpop.f32.mrb[38].mxu0  ;;  %v5950_v38 = vpop.f32.mrb[34].mxu1  ;;  %v6119_v0 = vld [vmem:[#allocation14 + $0x91] ss:$8 sm:$0x30] }
 0x823   :  { %v5947_v59 = vadd.f32 %v5946_v8, %v5906_v9  ;;  %v5910_v13 = vpop.f32.mrb[39].mxu0  ;;  %v5951_v37 = vpop.f32.mrb[35].mxu1  ;;  %v6120_v41 = vor.u32 %v6119_v0, %v6118_v33 }
 0x824   :  { %v5949_v17 = vadd.f32 %v5948_v10, %v5908_v12 }
 0x825   :  { %v6125_v58 = vrot.slane %v6120_v41, %v9378_v44  ;;  %v6129_v43 = vrot.slane %v6120_v41, %v9343_v19  ;;  %v6133_v45 = vrot.slane %v6120_v41, %v9382_v47  ;;  %v6141_v31 = vrot.slane %v6120_v41, %v9386_v49 }
 0x826   :  { %v6145_v62 = vrot.slane %v6120_v41, %v9405_v6 }
 0x827   :  { %v6152_v42 = vadd.f32 %v6125_v58, %v5947_v59  ;;  %v6153_v5 = vadd.f32 %v6129_v43, %v5949_v17  ;;  %v6202_v43 = vld [vmem:[#allocation14 + $0x62] ss:$8 sm:$0xf] }
 0x829   :  { %v6158_v51 = vadd.f32 %v6152_v42, %v9268_v2  ;;  %v6243_v42 = vld [vmem:[#allocation14 + $0x92] ss:$8 sm:$0xf] }
 0x840   :  { %v6028_v34 = vpop.f32.mrb[40].mxu0 }
 0x841   :  { %v6030_v20 = vpop.f32.mrb[41].mxu0 }
 0x842   :  { %v6032_v54 = vpop.f32.mrb[42].mxu0 }
 0x843   :  { %v6033_v40 = vpop.f32.mrb[43].mxu0 }
 0x860   :  { %v5987_v21 = vpop.f32.mrb[36].mxu1 }
 0x861   :  { %v5988_v22 = vadd.f32 %v5987_v21, %v5783_v3  ;;  %v5989_v23 = vpop.f32.mrb[37].mxu1  ;;  %v6137_v3 = vrot.slane %v6120_v41, %v9395_v63 }
 0x862   :  { %v5990_v48 = vadd.f32 %v5989_v23, %v5785_v52  ;;  %v5991_v39 = vpop.f32.mrb[38].mxu1  ;;  %v6159_v52 = vadd.f32 %v6153_v5, %v9260_v46  ;;  %v6244_v5 = vld [vmem:[#allocation14 + $0x92] ss:$8 sm:$0x30] }
 0x863   :  { %v6029_v35 = vadd.f32 %v6028_v34, %v5988_v22  ;;  %v5992_v25 = vpop.f32.mrb[39].mxu1 }
 0x864   :  { %v6031_v16 = vadd.f32 %v6030_v20, %v5990_v48  ;;  %v6164_v29 = vadd.f32 %v6159_v52, %v6158_v51 }
 0x865   :  { %v6154_v50 = vadd.f32 %v6133_v45, %v6029_v35  ;;  %v6203_v45 = vld [vmem:[#allocation14 + $0x62] ss:$8 sm:$0x30] }
 0x866   :  { %v6155_v53 = vadd.f32 %v6137_v3, %v6031_v16  ;;  %v6245_v3 = vor.u32 %v6244_v5, %v6243_v42 }
 0x867   :  { %v6160_v60 = vadd.f32 %v6154_v50, %v9284_v11  ;;  %v6204_v50 = vor.u32 %v6203_v45, %v6202_v43 }
 0x868   :  { %v6161_v2 = vadd.f32 %v6155_v53, %v9276_v30 }
 0x869   :  { %v6165_v11 = vadd.f32 %v6164_v29, %v6160_v60  ;;  %v6221_v53 = vrot.slane %v6204_v50, %v9395_v63 }
 0x86b   :  { %v6166_v15 = vadd.f32 %v6165_v11, %v6161_v2 }
 0x880   :  { %v6069_v32 = vpop.f32.mrb[44].mxu0  ;;  %v6110_v55 = vpop.f32.mrb[40].mxu1 }
 0x881   :  { %v6070_v56 = vadd.f32 %v6069_v32, %v5865_v61  ;;  %v6071_v57 = vpop.f32.mrb[45].mxu0  ;;  %v6112_v14 = vpop.f32.mrb[41].mxu1  ;;  %v6225_v32 = vrot.slane %v6204_v50, %v9386_v49 }
 0x882   :  { %v6072_v1 = vadd.f32 %v6071_v57, %v5867_v26  ;;  %v6073_v36 = vpop.f32.mrb[46].mxu0  ;;  %v6114_v28 = vpop.f32.mrb[42].mxu1  ;;  %v6258_v57 = vrot.slane %v6245_v3, %v9382_v47 }
 0x883   :  { %v6111_v8 = vadd.f32 %v6110_v55, %v6070_v56  ;;  %v6074_v46 = vpop.f32.mrb[47].mxu0  ;;  %v6115_v9 = vpop.f32.mrb[43].mxu1  ;;  %v6229_v55 = vrot.slane %v6204_v50, %v9405_v6  ;;  %v6250_v56 = vrot.slane %v6245_v3, %v9378_v44 }
 0x884   :  { %v6113_v27 = vadd.f32 %v6112_v14, %v6072_v1  ;;  %v6262_v14 = vrot.slane %v6245_v3, %v9395_v63 }
 0x885   :  { %v6156_v10 = vadd.f32 %v6141_v31, %v6111_v8  ;;  %v6254_v31 = vrot.slane %v6245_v3, %v9343_v19  ;;  %v6270_v8 = vrot.slane %v6245_v3, %v9405_v6 }
 0x886   :  { %v6157_v12 = vadd.f32 %v6145_v62, %v6113_v27 }
 0x887   :  { %v6162_v61 = vadd.f32 %v6156_v10, %v9300_v24 }
 0x888   :  { %v6163_v38 = vadd.f32 %v6157_v12, %v9290_v18 }
 0x889   :  { %v6167_v59 = vadd.f32 %v6166_v15, %v6162_v61 }
 0x88b   :  { %v6168_v26 = vadd.f32 %v6167_v59, %v6163_v38 }
 0x88d   :  { %6169 = vadd.xlane.f32.xlu0 %v6168_v26 }
 0x91a   :  { %v6170_v13 = vpop.xlane.xlu0 %6169 }
 0x91b   :  { %v6172_v37 = vmul.f32 0.0013020834, %v6170_v13 }
 0x91d   :  { %v6173_v17 = vsub.f32 %v6158_v51, %v6172_v37  ;;  %v6174_v34 = vsub.f32 %v6159_v52, %v6172_v37  ;;  %v6175_v30 = vsub.f32 %v6160_v60, %v6172_v37  ;;  %v6176_v20 = vsub.f32 %v6161_v2, %v6172_v37 }
 0x91e   :  { %v6177_v21 = vsub.f32 %v6162_v61, %v6172_v37  ;;  %v6178_v48 = vsub.f32 %v6163_v38, %v6172_v37  ;;  %v6209_v51 = vrot.slane %v6204_v50, %v9378_v44  ;;  %v6213_v52 = vrot.slane %v6204_v50, %v9343_v19 }
 0x91f   :  { %v6179_v54 = vmul.f32 %v6173_v17, %v6173_v17  ;;  %v6180_v40 = vmul.f32 %v6174_v34, %v6174_v34  ;;  %v6181_v22 = vmul.f32 %v6175_v30, %v6175_v30  ;;  %v6182_v39 = vmul.f32 %v6176_v20, %v6176_v20 }
 0x920   :  { %v6183_v35 = vmul.f32 %v6177_v21, %v6177_v21  ;;  %v6184_v18 = vmul.f32 %v6178_v48, %v6178_v48  ;;  %v6217_v60 = vrot.slane %v6204_v50, %v9382_v47  ;;  %v6266_v2 = vrot.slane %v6245_v3, %v9386_v49 }
 0x921   :  { %v6185_v23 = vadd.f32 %v6180_v40, %v6179_v54 }
 0x923   :  { %v6186_v24 = vadd.f32 %v6185_v23, %v6181_v22 }
 0x925   :  { %v6187_v25 = vadd.f32 %v6186_v24, %v6182_v39 }
 0x927   :  { %v6188_v16 = vadd.f32 %v6187_v25, %v6183_v35 }
 0x929   :  { %v6189_v33 = vadd.f32 %v6188_v16, %v6184_v18 }
 0x92b   :  { %6190 = vadd.xlane.f32.xlu0 %v6189_v33 }
 0x9b8   :  { %v6191_v0 = vpop.xlane.xlu0 %6190 }
 0x9b9   :  { %v6192_v41 = vmul.f32 0.0013020834, %v6191_v0 }
 0x9bb   :  { %v6193_v58 = vadd.f32 1e-05, %v6192_v41 }
 0x9bd   :  { %8917 = vrsqrt.f32 %v6193_v58 }
 0x9c7   :  { %v8918_v29 = vpop.eup %8917 }
 0x9c8   :  { %v6195_v1 = vmul.f32 %v8918_v29, %v6173_v17  ;;  %v6196_v36 = vmul.f32 %v8918_v29, %v6174_v34  ;;  %v6197_v28 = vmul.f32 %v8918_v29, %v6175_v30  ;;  %v6198_v62 = vmul.f32 %v8918_v29, %v6176_v20 }
 0x9c9   :  { %v6199_v46 = vmul.f32 %v8918_v29, %v6177_v21  ;;  %v6200_v9 = vmul.f32 %v8918_v29, %v6178_v48 }
 0x9ca   :  { %v6236_v11 = vmul.f32 %v6209_v51, %v6195_v1  ;;  %v6237_v27 = vmul.f32 %v6213_v52, %v6196_v36  ;;  %v6238_v10 = vmul.f32 %v6217_v60, %v6197_v28  ;;  %v6239_v12 = vmul.f32 %v6221_v53, %v6198_v62 }
 0x9cb   :  { %v6240_v61 = vmul.f32 %v6225_v32, %v6199_v46  ;;  %v6241_v15 = vmul.f32 %v6229_v55, %v6200_v9 }
 0x9cc   :  { %v9550_v38 = vadd.f32 %v6250_v56, %v6236_v11  ;;  %v6278_v59 = vadd.f32 %v6254_v31, %v6237_v27  ;;  %v9552_v26 = vadd.f32 %v6258_v57, %v6238_v10  ;;  %v6280_v13 = vadd.f32 %v6262_v14, %v6239_v12 }
 0x9cd   :  { %v9554_v37 = vadd.f32 %v6266_v2, %v6240_v61  ;;  %v9556_v17 = vadd.f32 %v6270_v8, %v6241_v15 }
 0x9ce   :  { %9081 = dma.done.wait [#allocation7 + $0x1], 12288 }
 0x9cf   :  { %9082 = vsyncadd [#allocation7 + $0x1], 4294955008  ;;  %6454 = vmatprep.mubr.f32.mxu1 %v9115_v4  ;;  %v6287_v34 = vpack.c.bf16 %v6278_v59, %v6278_v59  ;;  %v6389_v30 = vld [vmem:[#allocation14 + $0x38] sm:$0xff]  ;;  %v6293_v20 = vld [vmem:[#allocation3 + $0x8] sm:$0xff]  ;;  %v6289_v23 = vpack.c.bf16 %v6280_v13, %v6280_v13 }
 0x9d0   :  { %v6388_v54 = vld [vmem:[#allocation14 + $0x30] sm:$0xff]  ;;  %6390 = vmatprep.subr.mxu1 %v6389_v30  ;;  %6461 = vmatprep.subr.bf16.mxu0 %v6293_v20  ;;  %v6292_v40 = vld [vmem:[#allocation3] sm:$0xff]  ;;  %v6295_v48 = vld [vmem:[#allocation3 + $0x18] sm:$0xff] }
 0x9d1   :  { %6493 = vmatprep.mubr.bf16.mxu0 %v6287_v34  ;;  %v6325_v21 = vld [vmem:[#allocation3 + $0x108] sm:$0xff]  ;;  %v6324_v22 = vld [vmem:[#allocation3 + $0x100] sm:$0xff]  ;;  %6391 = vmatpush1.msra.mxu1 %v6388_v54  ;;  %v6327_v39 = vld [vmem:[#allocation3 + $0x118] sm:$0xff] }
 0x9d2   :  { %6462 = vmatpush1.bf16.msra.mxu0 %v6292_v40  ;;  %6502 = vmatprep.subr.bf16.mxu1 %v6325_v21  ;;  %v6294_v24 = vld [vmem:[#allocation3 + $0x10] sm:$0xff]  ;;  %v6297_v35 = vld [vmem:[#allocation3 + $0x28] sm:$0xff]  ;;  %v6296_v16 = vld [vmem:[#allocation3 + $0x20] sm:$0xff] }
 0x9d3   :  { %7814 = vmatmul.mubr.msk.f32.vlgmr.msra.gmra.mrb[18].mxu1 %vm4520_vm0, %v9351_v7  ;;  %6463 = vmatprep.subr.bf16.mxu0 %v6295_v48  ;;  %v6326_v25 = vld [vmem:[#allocation3 + $0x110] sm:$0xff]  ;;  %v6329_v18 = vld [vmem:[#allocation3 + $0x128] sm:$0xff]  ;;  %v6299_v33 = vld [vmem:[#allocation3 + $0x38] sm:$0xff] }
 0x9d4   :  { %6503 = vmatpush1.bf16.msra.mxu1 %v6324_v22  ;;  %6534 = vmatprep.mubr.bf16.mxu1 %v6289_v23  ;;  %v6328_v0 = vld [vmem:[#allocation3 + $0x120] sm:$0xff]  ;;  %v6331_v41 = vld [vmem:[#allocation3 + $0x138] sm:$0xff]  ;;  %v6298_v58 = vld [vmem:[#allocation3 + $0x30] sm:$0xff] }
 0x9d5   :  { %6504 = vmatprep.subr.bf16.mxu1 %v6327_v39  ;;  %v6301_v43 = vld [vmem:[#allocation3 + $0x48] sm:$0xff]  ;;  %v6330_v45 = vld [vmem:[#allocation3 + $0x130] sm:$0xff]  ;;  %v6300_v5 = vld [vmem:[#allocation3 + $0x40] sm:$0xff] }
 0x9d6   :  { %6464 = vmatpush1.bf16.msra.mxu0 %v6294_v24  ;;  %v6333_v42 = vld [vmem:[#allocation3 + $0x148] sm:$0xff]  ;;  %v6303_v50 = vld [vmem:[#allocation3 + $0x58] sm:$0xff]  ;;  %v6332_v3 = vld [vmem:[#allocation3 + $0x140] sm:$0xff] }
 0x9d7   :  { %6465 = vmatprep.subr.bf16.mxu0 %v6297_v35  ;;  %v6335_v51 = vld [vmem:[#allocation3 + $0x158] sm:$0xff]  ;;  %v6302_v52 = vld [vmem:[#allocation3 + $0x50] sm:$0xff]  ;;  %v6305_v60 = vld [vmem:[#allocation3 + $0x68] sm:$0xff] }
 0x9d8   :  { %6505 = vmatpush1.bf16.msra.mxu1 %v6326_v25  ;;  %v6334_v53 = vld [vmem:[#allocation3 + $0x150] sm:$0xff]  ;;  %v6337_v32 = vld [vmem:[#allocation3 + $0x168] sm:$0xff]  ;;  %v6304_v55 = vld [vmem:[#allocation3 + $0x60] sm:$0xff] }
 0x9d9   :  { %6506 = vmatprep.subr.bf16.mxu1 %v6329_v18  ;;  %v6307_v29 = vld [vmem:[#allocation3 + $0x78] sm:$0xff]  ;;  %v6336_v56 = vld [vmem:[#allocation3 + $0x160] sm:$0xff]  ;;  %v6306_v57 = vld [vmem:[#allocation3 + $0x70] sm:$0xff] }
 0x9da   :  { %6466 = vmatpush1.bf16.msra.mxu0 %v6296_v16  ;;  %v6339_v31 = vld [vmem:[#allocation3 + $0x178] sm:$0xff]  ;;  %v6309_v14 = vld [vmem:[#allocation3 + $0x88] sm:$0xff]  ;;  %v6338_v1 = vld [vmem:[#allocation3 + $0x170] sm:$0xff] }
 0x9db   :  { %6467 = vmatprep.subr.bf16.mxu0 %v6299_v33  ;;  %v6341_v36 = vld [vmem:[#allocation3 + $0x188] sm:$0xff]  ;;  %v6308_v28 = vld [vmem:[#allocation3 + $0x80] sm:$0xff]  ;;  %v6311_v62 = vld [vmem:[#allocation3 + $0x98] sm:$0xff] }
 0x9dc   :  { %6507 = vmatpush1.bf16.msra.mxu1 %v6328_v0  ;;  %v6340_v2 = vld [vmem:[#allocation3 + $0x180] sm:$0xff]  ;;  %v6343_v8 = vld [vmem:[#allocation3 + $0x198] sm:$0xff]  ;;  %v6310_v46 = vld [vmem:[#allocation3 + $0x90] sm:$0xff] }
 0x9dd   :  { %6508 = vmatprep.subr.bf16.mxu1 %v6331_v41  ;;  %v6313_v9 = vld [vmem:[#allocation3 + $0xa8] sm:$0xff]  ;;  %v6342_v11 = vld [vmem:[#allocation3 + $0x190] sm:$0xff]  ;;  %v6312_v10 = vld [vmem:[#allocation3 + $0xa0] sm:$0xff]  ;;  %v6286_v41 = vpack.c.bf16 %v9550_v38, %v9550_v38 }
 0x9de   :  { %6468 = vmatpush1.bf16.msra.mxu0 %v6298_v58  ;;  %v6345_v27 = vld [vmem:[#allocation3 + $0x1a8] sm:$0xff]  ;;  %v6315_v12 = vld [vmem:[#allocation3 + $0xb8] sm:$0xff]  ;;  %v6344_v61 = vld [vmem:[#allocation3 + $0x1a0] sm:$0xff]  ;;  %v6291_v58 = vpack.c.bf16 %v9556_v17, %v9556_v17 }
 0x9df   :  { %6469 = vmatprep.subr.bf16.mxu0 %v6301_v43  ;;  %v6347_v15 = vld [vmem:[#allocation3 + $0x1b8] sm:$0xff]  ;;  %v6314_v59 = vld [vmem:[#allocation3 + $0xb0] sm:$0xff]  ;;  %v6317_v13 = vld [vmem:[#allocation3 + $0xc8] sm:$0xff] }
 0x9e0   :  { %6509 = vmatpush1.bf16.msra.mxu1 %v6330_v45  ;;  %v6346_v34 = vld [vmem:[#allocation3 + $0x1b0] sm:$0xff]  ;;  %v6349_v30 = vld [vmem:[#allocation3 + $0x1c8] sm:$0xff]  ;;  %v6316_v20 = vld [vmem:[#allocation3 + $0xc0] sm:$0xff]  ;;  %v6288_v45 = vpack.c.bf16 %v9552_v26, %v9552_v26 }
 0x9e1   :  { %6510 = vmatprep.subr.bf16.mxu1 %v6333_v42  ;;  %v6319_v54 = vld [vmem:[#allocation3 + $0xd8] sm:$0xff]  ;;  %v6348_v40 = vld [vmem:[#allocation3 + $0x1c0] sm:$0xff]  ;;  %v6318_v22 = vld [vmem:[#allocation3 + $0xd0] sm:$0xff] }
 0x9e2   :  { %6470 = vmatpush1.bf16.msra.mxu0 %v6300_v5  ;;  %v6351_v21 = vld [vmem:[#allocation3 + $0x1d8] sm:$0xff]  ;;  %v6321_v23 = vld [vmem:[#allocation3 + $0xe8] sm:$0xff]  ;;  %v6350_v48 = vld [vmem:[#allocation3 + $0x1d0] sm:$0xff] }
 0x9e3   :  { %6471 = vmatprep.subr.bf16.mxu0 %v6303_v50  ;;  %v6353_v39 = vld [vmem:[#allocation3 + $0x1e8] sm:$0xff]  ;;  %v6320_v24 = vld [vmem:[#allocation3 + $0xe0] sm:$0xff]  ;;  %v6323_v35 = vld [vmem:[#allocation3 + $0xf8] sm:$0xff] }
 0x9e4   :  { %6511 = vmatpush1.bf16.msra.mxu1 %v6332_v3  ;;  %v6352_v25 = vld [vmem:[#allocation3 + $0x1e0] sm:$0xff]  ;;  %v6355_v18 = vld [vmem:[#allocation3 + $0x1f8] sm:$0xff]  ;;  %v6322_v16 = vld [vmem:[#allocation3 + $0xf0] sm:$0xff] }
 0x9e5   :  { %6512 = vmatprep.subr.bf16.mxu1 %v6335_v51  ;;  %v6357_v33 = vld [vmem:[#allocation3 + $0x208] sm:$0xff]  ;;  %v6354_v0 = vld [vmem:[#allocation3 + $0x1f0] sm:$0xff]  ;;  %v6356_v43 = vld [vmem:[#allocation3 + $0x200] sm:$0xff] }
 0x9e6   :  { %6472 = vmatpush1.bf16.msra.mxu0 %v6302_v52  ;;  %v6359_v42 = vld [vmem:[#allocation3 + $0x218] sm:$0xff]  ;;  %v6358_v5 = vld [vmem:[#allocation3 + $0x210] sm:$0xff]  ;;  %v6361_v50 = vld [vmem:[#allocation3 + $0x228] sm:$0xff] }
 0x9e7   :  { %6473 = vmatprep.subr.bf16.mxu0 %v6305_v60  ;;  %v6360_v38 = vld [vmem:[#allocation3 + $0x220] sm:$0xff]  ;;  %v6363_v3 = vld [vmem:[#allocation3 + $0x238] sm:$0xff]  ;;  %v6362_v17 = vld [vmem:[#allocation3 + $0x230] sm:$0xff] }
 0x9e8   :  { %6513 = vmatpush1.bf16.msra.mxu1 %v6334_v53  ;;  %v6365_v51 = vld [vmem:[#allocation3 + $0x248] sm:$0xff]  ;;  %v6364_v26 = vld [vmem:[#allocation3 + $0x240] sm:$0xff]  ;;  %v6367_v52 = vld [vmem:[#allocation3 + $0x258] sm:$0xff] }
 0x9e9   :  { %6514 = vmatprep.subr.bf16.mxu1 %v6337_v32  ;;  %v6366_v60 = vld [vmem:[#allocation3 + $0x250] sm:$0xff]  ;;  %v6369_v53 = vld [vmem:[#allocation3 + $0x268] sm:$0xff]  ;;  %v6368_v32 = vld [vmem:[#allocation3 + $0x260] sm:$0xff] }
 0x9ea   :  { %6474 = vmatpush1.bf16.msra.mxu0 %v6304_v55  ;;  %v6371_v55 = vld [vmem:[#allocation3 + $0x278] sm:$0xff] }
 0x9eb   :  { %6475 = vmatprep.subr.bf16.mxu0 %v6307_v29  ;;  %v6370_v29 = vld [vmem:[#allocation3 + $0x270] sm:$0xff] }
 0x9ec   :  { %6515 = vmatpush1.bf16.msra.mxu1 %v6336_v56  ;;  %v6373_v56 = vld [vmem:[#allocation3 + $0x288] sm:$0xff] }
 0x9ed   :  { %6516 = vmatprep.subr.bf16.mxu1 %v6339_v31  ;;  %v6372_v31 = vld [vmem:[#allocation3 + $0x280] sm:$0xff] }
 0x9ee   :  { %6476 = vmatpush1.bf16.msra.mxu0 %v6306_v57  ;;  %v6375_v57 = vld [vmem:[#allocation3 + $0x298] sm:$0xff] }
 0x9ef   :  { %6477 = vmatprep.subr.bf16.mxu0 %v6309_v14  ;;  %v6374_v14 = vld [vmem:[#allocation3 + $0x290] sm:$0xff] }
 0x9f0   :  { %6517 = vmatpush1.bf16.msra.mxu1 %v6338_v1  ;;  %v6377_v1 = vld [vmem:[#allocation3 + $0x2a8] sm:$0xff] }
 0x9f1   :  { %6518 = vmatprep.subr.bf16.mxu1 %v6341_v36  ;;  %v6376_v36 = vld [vmem:[#allocation3 + $0x2a0] sm:$0xff] }
 0x9f2   :  { %6478 = vmatpush1.bf16.msra.mxu0 %v6308_v28  ;;  %v6379_v28 = vld [vmem:[#allocation3 + $0x2b8] sm:$0xff] }
 0x9f3   :  { %6479 = vmatprep.subr.bf16.mxu0 %v6311_v62  ;;  %v6378_v62 = vld [vmem:[#allocation3 + $0x2b0] sm:$0xff] }
 0x9f4   :  { %6519 = vmatpush1.bf16.msra.mxu1 %v6340_v2  ;;  %v6381_v2 = vld [vmem:[#allocation3 + $0x2c8] sm:$0xff] }
 0x9f5   :  { %6520 = vmatprep.subr.bf16.mxu1 %v6343_v8  ;;  %v6380_v8 = vld [vmem:[#allocation3 + $0x2c0] sm:$0xff] }
 0x9f6   :  { %6480 = vmatpush1.bf16.msra.mxu0 %v6310_v46  ;;  %v6383_v46 = vld [vmem:[#allocation3 + $0x2d8] sm:$0xff] }
 0x9f7   :  { %6481 = vmatprep.subr.bf16.mxu0 %v6313_v9  ;;  %v6382_v9 = vld [vmem:[#allocation3 + $0x2d0] sm:$0xff] }
 0x9f8   :  { %6521 = vmatpush1.bf16.msra.mxu1 %v6342_v11  ;;  %v6385_v11 = vld [vmem:[#allocation3 + $0x2e8] sm:$0xff] }
 0x9f9   :  { %6522 = vmatprep.subr.bf16.mxu1 %v6345_v27  ;;  %v6384_v27 = vld [vmem:[#allocation3 + $0x2e0] sm:$0xff] }
 0x9fa   :  { %6482 = vmatpush1.bf16.msra.mxu0 %v6312_v10  ;;  %v6387_v10 = vld [vmem:[#allocation3 + $0x2f8] sm:$0xff] }
 0x9fb   :  { %6483 = vmatprep.subr.bf16.mxu0 %v6315_v12  ;;  %v6386_v12 = vld [vmem:[#allocation3 + $0x2f0] sm:$0xff] }
 0x9fc   :  { %6523 = vmatpush1.bf16.msra.mxu1 %v6344_v61  ;;  %v6290_v61 = vpack.c.bf16 %v9554_v37, %v9554_v37 }
 0x9fd   :  { %6524 = vmatprep.subr.bf16.mxu1 %v6347_v15 }
 0x9fe   :  { %6484 = vmatpush1.bf16.msra.mxu0 %v6314_v59 }
 0x9ff   :  { %6485 = vmatprep.subr.bf16.mxu0 %v6317_v13 }
 0xa00   :  { %6525 = vmatpush1.bf16.msra.mxu1 %v6346_v34 }
 0xa01   :  { %6526 = vmatprep.subr.bf16.mxu1 %v6349_v30 }
 0xa02   :  { %6486 = vmatpush1.bf16.msra.mxu0 %v6316_v20 }
 0xa03   :  { %6487 = vmatprep.subr.bf16.mxu0 %v6319_v54 }
 0xa04   :  { %6527 = vmatpush1.bf16.msra.mxu1 %v6348_v40 }
 0xa05   :  { %6528 = vmatprep.subr.bf16.mxu1 %v6351_v21 }
 0xa06   :  { %6488 = vmatpush1.bf16.msra.mxu0 %v6318_v22 }
 0xa07   :  { %6489 = vmatprep.subr.bf16.mxu0 %v6321_v23 }
 0xa08   :  { %6529 = vmatpush1.bf16.msra.mxu1 %v6350_v48 }
 0xa09   :  { %6530 = vmatprep.subr.bf16.mxu1 %v6353_v39 }
 0xa0a   :  { %6490 = vmatpush1.bf16.msra.mxu0 %v6320_v24 }
 0xa0b   :  { %6491 = vmatprep.subr.bf16.mxu0 %v6323_v35  ;;  %v6585_v35 = vld [vmem:[#allocation14 + $0x63] ss:$8 sm:$0x3] }
 0xa0c   :  { %6531 = vmatpush1.bf16.msra.mxu1 %v6352_v25  ;;  %v6590_v25 = vrot.slane %v6585_v35, %v9378_v44 }
 0xa0d   :  { %6532 = vmatprep.subr.bf16.mxu1 %v6355_v18  ;;  %v6594_v18 = vrot.slane %v6585_v35, %v9343_v19 }
 0xa0e   :  { %6492 = vmatpush1.bf16.msra.mxu0 %v6322_v16 }
 0xa0f   :  { %6543 = vmatprep.subr.bf16.mxu0 %v6357_v33 }
 0xa10   :  { %6533 = vmatpush1.bf16.msra.mxu1 %v6354_v0 }
 0xa11   :  { %6494 = vmatmul.mubr.bf16.vlgmr.msra.gmra.mrb[48].mxu0 %v6286_v41 }
 0xa12   :  { %6544 = vmatpush1.bf16.msra.mxu0 %v6356_v43  ;;  %6575 = vmatprep.mubr.bf16.mxu0 %v6291_v58 }
 0xa13   :  { %6535 = vmatmul.mubr.bf16.vlgmr.msra.gmra.mrb[44].mxu1 %v6288_v45  ;;  %6545 = vmatprep.subr.bf16.mxu0 %v6359_v42 }
 0xa16   :  { %6546 = vmatpush1.bf16.msra.mxu0 %v6358_v5 }
 0xa17   :  { %6547 = vmatprep.subr.bf16.mxu0 %v6361_v50 }
 0xa1a   :  { %6548 = vmatpush1.bf16.msra.mxu0 %v6360_v38 }
 0xa1b   :  { %6549 = vmatprep.subr.bf16.mxu0 %v6363_v3 }
 0xa1e   :  { %6550 = vmatpush1.bf16.msra.mxu0 %v6362_v17 }
 0xa1f   :  { %6551 = vmatprep.subr.bf16.mxu0 %v6365_v51 }
 0xa22   :  { %6552 = vmatpush1.bf16.msra.mxu0 %v6364_v26 }
 0xa23   :  { %6553 = vmatprep.subr.bf16.mxu0 %v6367_v52 }
 0xa26   :  { %6554 = vmatpush1.bf16.msra.mxu0 %v6366_v60 }
 0xa27   :  { %6555 = vmatprep.subr.bf16.mxu0 %v6369_v53 }
 0xa2a   :  { %6556 = vmatpush1.bf16.msra.mxu0 %v6368_v32 }
 0xa2b   :  { %6557 = vmatprep.subr.bf16.mxu0 %v6371_v55 }
 0xa2e   :  { %6558 = vmatpush1.bf16.msra.mxu0 %v6370_v29 }
 0xa2f   :  { %6559 = vmatprep.subr.bf16.mxu0 %v6373_v56 }
 0xa32   :  { %6560 = vmatpush1.bf16.msra.mxu0 %v6372_v31 }
 0xa33   :  { %6561 = vmatprep.subr.bf16.mxu0 %v6375_v57 }
 0xa36   :  { %6562 = vmatpush1.bf16.msra.mxu0 %v6374_v14 }
 0xa37   :  { %6563 = vmatprep.subr.bf16.mxu0 %v6377_v1 }
 0xa3a   :  { %6564 = vmatpush1.bf16.msra.mxu0 %v6376_v36 }
 0xa3b   :  { %6565 = vmatprep.subr.bf16.mxu0 %v6379_v28 }
 0xa3e   :  { %6566 = vmatpush1.bf16.msra.mxu0 %v6378_v62 }
 0xa3f   :  { %6567 = vmatprep.subr.bf16.mxu0 %v6381_v2 }
 0xa42   :  { %6568 = vmatpush1.bf16.msra.mxu0 %v6380_v8 }
 0xa43   :  { %6569 = vmatprep.subr.bf16.mxu0 %v6383_v46 }
 0xa46   :  { %6570 = vmatpush1.bf16.msra.mxu0 %v6382_v9 }
 0xa47   :  { %6571 = vmatprep.subr.bf16.mxu0 %v6385_v11 }
 0xa4a   :  { %6572 = vmatpush1.bf16.msra.mxu0 %v6384_v27 }
 0xa4b   :  { %6573 = vmatprep.subr.bf16.mxu0 %v6387_v10 }
 0xa4e   :  { %6574 = vmatpush1.bf16.msra.mxu0 %v6386_v12 }
 0xa51   :  { %6576 = vmatmul.mubr.bf16.vlgmr.msra.gmra.mrb[52].mxu0 %v6290_v61 }
 0xaa6   :  { %v6456_v15 = vpop.f32.mrb[18].mxu1 }
 0xaa7   :  { %v6458_v59 = vpop.f32.mrb[19].mxu1 }
 0xae4   :  { %v6495_v13 = vpop.f32.mrb[48].mxu0 }
 0xae5   :  { %v6496_v34 = vadd.f32 %v6495_v13, %v6456_v15  ;;  %v6497_v30 = vpop.f32.mrb[49].mxu0 }
 0xae6   :  { %v6498_v20 = vadd.f32 %v6497_v30, %v6458_v59  ;;  %v6499_v54 = vpop.f32.mrb[50].mxu0  ;;  %v6536_v40 = vpop.f32.mrb[44].mxu1 }
 0xae7   :  { %v6537_v21 = vadd.f32 %v6536_v40, %v6496_v34  ;;  %v6500_v22 = vpop.f32.mrb[51].mxu0  ;;  %v6538_v23 = vpop.f32.mrb[45].mxu1 }
 0xae8   :  { %v6539_v48 = vadd.f32 %v6538_v23, %v6498_v20  ;;  %v6540_v39 = vpop.f32.mrb[46].mxu1 }
 0xae9   :  { %v6541_v24 = vpop.f32.mrb[47].mxu1 }
 0xb24   :  { %v6577_v37 = vpop.f32.mrb[52].mxu0 }
 0xb25   :  { %v6578_v16 = vadd.f32 %v6577_v37, %v6537_v21  ;;  %v6579_v33 = vpop.f32.mrb[53].mxu0 }
 0xb26   :  { %v6580_v0 = vadd.f32 %v6579_v33, %v6539_v48  ;;  %v6581_v41 = vpop.f32.mrb[54].mxu0 }
 0xb27   :  { %v9571_v58 = vadd.f32 %v6590_v25, %v6578_v16  ;;  %v6582_v43 = vpop.f32.mrb[55].mxu0 }
 0xb28   :  { %v6598_v45 = vadd.f32 %v6594_v18, %v6580_v0 }
 0xb29   :  { %v6599_v42 = vmax.f32 %v9571_v58, 0.0 }
 0xb2a   :  { %v6600_v5 = vmax.f32 %v6598_v45, 0.0 }
 0xb2b   :  { %9083 = dma.done.wait [#allocation7 + $0x2], 12288 }
 0xb2c   :  { %9084 = vsyncadd [#allocation7 + $0x2], 4294955008  ;;  %v9574_v50 = vpack.c.bf16 %v6600_v5, %v6600_v5  ;;  %v6608_v38 = vld [vmem:[#allocation4 + $0x8] sm:$0xff]  ;;  %v6607_v3 = vld [vmem:[#allocation4] sm:$0xff] }
 0xb2d   :  { %v6614_v17 = vld [vmem:[#allocation4 + $0x38] sm:$0xff]  ;;  %6738 = vmatprep.subr.bf16.mxu1 %v6608_v38  ;;  %v6613_v51 = vld [vmem:[#allocation4 + $0x30] sm:$0xff]  ;;  %v6620_v26 = vld [vmem:[#allocation4 + $0x68] sm:$0xff] }
 0xb2e   :  { %6770 = vmatprep.mubr.bf16.mxu1 %v9574_v50  ;;  %6811 = vmatprep.mubr.bf16.mxu0 %v9574_v50  ;;  %v6619_v52 = vld [vmem:[#allocation4 + $0x60] sm:$0xff]  ;;  %v6626_v60 = vld [vmem:[#allocation4 + $0x98] sm:$0xff]  ;;  %v6625_v32 = vld [vmem:[#allocation4 + $0x90] sm:$0xff] }
 0xb2f   :  { %6739 = vmatpush1.bf16.msra.mxu1 %v6607_v3  ;;  %v6610_v53 = vld [vmem:[#allocation4 + $0x18] sm:$0xff]  ;;  %v6609_v55 = vld [vmem:[#allocation4 + $0x10] sm:$0xff]  ;;  %v6616_v29 = vld [vmem:[#allocation4 + $0x48] sm:$0xff] }
 0xb30   :  { %6740 = vmatprep.subr.bf16.mxu1 %v6614_v17  ;;  %6779 = vmatprep.subr.bf16.mxu0 %v6610_v53  ;;  %v6632_v56 = vld [vmem:[#allocation4 + $0xc8] sm:$0xff]  ;;  %v6615_v31 = vld [vmem:[#allocation4 + $0x40] sm:$0xff]  ;;  %v6622_v57 = vld [vmem:[#allocation4 + $0x78] sm:$0xff]  ;;  %v9581_v53 = vpack.c.bf16 %v6599_v42, %v6599_v42 }
 0xb31   :  { %6780 = vmatpush1.bf16.msra.mxu0 %v6609_v55  ;;  %v6631_v14 = vld [vmem:[#allocation4 + $0xc0] sm:$0xff]  ;;  %v6638_v1 = vld [vmem:[#allocation4 + $0xf8] sm:$0xff]  ;;  %v6621_v36 = vld [vmem:[#allocation4 + $0x70] sm:$0xff] }
 0xb32   :  { %6781 = vmatprep.subr.bf16.mxu0 %v6616_v29  ;;  %v6628_v28 = vld [vmem:[#allocation4 + $0xa8] sm:$0xff]  ;;  %v6637_v62 = vld [vmem:[#allocation4 + $0xf0] sm:$0xff]  ;;  %v6627_v8 = vld [vmem:[#allocation4 + $0xa0] sm:$0xff] }
 0xb33   :  { %6741 = vmatpush1.bf16.msra.mxu1 %v6613_v51  ;;  %v6644_v2 = vld [vmem:[#allocation4 + $0x128] sm:$0xff]  ;;  %v6634_v46 = vld [vmem:[#allocation4 + $0xd8] sm:$0xff]  ;;  %v6643_v9 = vld [vmem:[#allocation4 + $0x120] sm:$0xff] }
 0xb34   :  { %6742 = vmatprep.subr.bf16.mxu1 %v6620_v26  ;;  %v6650_v11 = vld [vmem:[#allocation4 + $0x158] sm:$0xff]  ;;  %v6633_v27 = vld [vmem:[#allocation4 + $0xd0] sm:$0xff]  ;;  %v6640_v10 = vld [vmem:[#allocation4 + $0x108] sm:$0xff] }
 0xb35   :  { %6782 = vmatpush1.bf16.msra.mxu0 %v6615_v31  ;;  %v6649_v12 = vld [vmem:[#allocation4 + $0x150] sm:$0xff]  ;;  %v6656_v61 = vld [vmem:[#allocation4 + $0x188] sm:$0xff]  ;;  %v6639_v15 = vld [vmem:[#allocation4 + $0x100] sm:$0xff] }
 0xb36   :  { %6783 = vmatprep.subr.bf16.mxu0 %v6622_v57  ;;  %v6646_v59 = vld [vmem:[#allocation4 + $0x138] sm:$0xff]  ;;  %v6655_v13 = vld [vmem:[#allocation4 + $0x180] sm:$0xff]  ;;  %v6645_v30 = vld [vmem:[#allocation4 + $0x130] sm:$0xff] }
 0xb37   :  { %6743 = vmatpush1.bf16.msra.mxu1 %v6619_v52  ;;  %v6662_v34 = vld [vmem:[#allocation4 + $0x1b8] sm:$0xff]  ;;  %v6652_v20 = vld [vmem:[#allocation4 + $0x168] sm:$0xff]  ;;  %v6661_v54 = vld [vmem:[#allocation4 + $0x1b0] sm:$0xff] }
 0xb38   :  { %6744 = vmatprep.subr.bf16.mxu1 %v6626_v60  ;;  %v6668_v40 = vld [vmem:[#allocation4 + $0x1e8] sm:$0xff]  ;;  %v6651_v21 = vld [vmem:[#allocation4 + $0x160] sm:$0xff]  ;;  %v6658_v22 = vld [vmem:[#allocation4 + $0x198] sm:$0xff] }
 0xb39   :  { %6784 = vmatpush1.bf16.msra.mxu0 %v6621_v36  ;;  %v6667_v23 = vld [vmem:[#allocation4 + $0x1e0] sm:$0xff]  ;;  %v6674_v48 = vld [vmem:[#allocation4 + $0x218] sm:$0xff]  ;;  %v6657_v39 = vld [vmem:[#allocation4 + $0x190] sm:$0xff] }
 0xb3a   :  { %6785 = vmatprep.subr.bf16.mxu0 %v6628_v28  ;;  %v6664_v24 = vld [vmem:[#allocation4 + $0x1c8] sm:$0xff]  ;;  %v6673_v35 = vld [vmem:[#allocation4 + $0x210] sm:$0xff]  ;;  %v6663_v37 = vld [vmem:[#allocation4 + $0x1c0] sm:$0xff] }
 0xb3b   :  { %6745 = vmatpush1.bf16.msra.mxu1 %v6625_v32  ;;  %v6680_v25 = vld [vmem:[#allocation4 + $0x248] sm:$0xff]  ;;  %v6670_v18 = vld [vmem:[#allocation4 + $0x1f8] sm:$0xff]  ;;  %v6679_v16 = vld [vmem:[#allocation4 + $0x240] sm:$0xff] }
 0xb3c   :  { %6746 = vmatprep.subr.bf16.mxu1 %v6632_v56  ;;  %v6686_v33 = vld [vmem:[#allocation4 + $0x278] sm:$0xff]  ;;  %v6669_v0 = vld [vmem:[#allocation4 + $0x1f0] sm:$0xff]  ;;  %v6676_v41 = vld [vmem:[#allocation4 + $0x228] sm:$0xff] }
 0xb3d   :  { %6786 = vmatpush1.bf16.msra.mxu0 %v6627_v8  ;;  %v6685_v43 = vld [vmem:[#allocation4 + $0x270] sm:$0xff]  ;;  %v6692_v45 = vld [vmem:[#allocation4 + $0x2a8] sm:$0xff]  ;;  %v6675_v5 = vld [vmem:[#allocation4 + $0x220] sm:$0xff] }
 0xb3e   :  { %6787 = vmatprep.subr.bf16.mxu0 %v6634_v46  ;;  %v6682_v38 = vld [vmem:[#allocation4 + $0x258] sm:$0xff]  ;;  %v6691_v3 = vld [vmem:[#allocation4 + $0x2a0] sm:$0xff]  ;;  %v6681_v51 = vld [vmem:[#allocation4 + $0x250] sm:$0xff] }
 0xb3f   :  { %6747 = vmatpush1.bf16.msra.mxu1 %v6631_v14  ;;  %v6698_v17 = vld [vmem:[#allocation4 + $0x2d8] sm:$0xff]  ;;  %v6688_v26 = vld [vmem:[#allocation4 + $0x288] sm:$0xff]  ;;  %v6697_v52 = vld [vmem:[#allocation4 + $0x2d0] sm:$0xff] }
 0xb40   :  { %6748 = vmatprep.subr.bf16.mxu1 %v6638_v1  ;;  %v6612_v60 = vld [vmem:[#allocation4 + $0x28] sm:$0xff]  ;;  %v6687_v32 = vld [vmem:[#allocation4 + $0x280] sm:$0xff]  ;;  %v6694_v55 = vld [vmem:[#allocation4 + $0x2b8] sm:$0xff] }
 0xb41   :  { %6788 = vmatpush1.bf16.msra.mxu0 %v6633_v27  ;;  %v6611_v29 = vld [vmem:[#allocation4 + $0x20] sm:$0xff]  ;;  %v6618_v56 = vld [vmem:[#allocation4 + $0x58] sm:$0xff]  ;;  %v6693_v31 = vld [vmem:[#allocation4 + $0x2b0] sm:$0xff] }
 0xb42   :  { %6789 = vmatprep.subr.bf16.mxu0 %v6640_v10  ;;  %v6700_v57 = vld [vmem:[#allocation4 + $0x2e8] sm:$0xff]  ;;  %v6617_v58 = vld [vmem:[#allocation4 + $0x50] sm:$0xff]  ;;  %v6699_v14 = vld [vmem:[#allocation4 + $0x2e0] sm:$0xff] }
 0xb43   :  { %6749 = vmatpush1.bf16.msra.mxu1 %v6637_v62  ;;  %v6624_v42 = vld [vmem:[#allocation4 + $0x88] sm:$0xff]  ;;  %v6623_v1 = vld [vmem:[#allocation4 + $0x80] sm:$0xff]  ;;  %v6630_v36 = vld [vmem:[#allocation4 + $0xb8] sm:$0xff] }
 0xb44   :  { %6750 = vmatprep.subr.bf16.mxu1 %v6644_v2  ;;  %v6629_v28 = vld [vmem:[#allocation4 + $0xb0] sm:$0xff]  ;;  %v6636_v62 = vld [vmem:[#allocation4 + $0xe8] sm:$0xff]  ;;  %v6642_v2 = vld [vmem:[#allocation4 + $0x118] sm:$0xff] }
 0xb45   :  { %6790 = vmatpush1.bf16.msra.mxu0 %v6639_v15  ;;  %v6641_v8 = vld [vmem:[#allocation4 + $0x110] sm:$0xff]  ;;  %v6648_v46 = vld [vmem:[#allocation4 + $0x148] sm:$0xff] }
 0xb46   :  { %6791 = vmatprep.subr.bf16.mxu0 %v6646_v59  ;;  %v6653_v27 = vld [vmem:[#allocation4 + $0x170] sm:$0xff]  ;;  %v6660_v10 = vld [vmem:[#allocation4 + $0x1a8] sm:$0xff] }
 0xb47   :  { %6751 = vmatpush1.bf16.msra.mxu1 %v6643_v9  ;;  %v6647_v9 = vld [vmem:[#allocation4 + $0x140] sm:$0xff]  ;;  %v6665_v15 = vld [vmem:[#allocation4 + $0x1d0] sm:$0xff]  ;;  %v6672_v59 = vld [vmem:[#allocation4 + $0x208] sm:$0xff] }
 0xb48   :  { %6752 = vmatprep.subr.bf16.mxu1 %v6650_v11  ;;  %v6654_v11 = vld [vmem:[#allocation4 + $0x178] sm:$0xff] }
 0xb49   :  { %6792 = vmatpush1.bf16.msra.mxu0 %v6645_v30  ;;  %v6677_v30 = vld [vmem:[#allocation4 + $0x230] sm:$0xff] }
 0xb4a   :  { %6793 = vmatprep.subr.bf16.mxu0 %v6652_v20  ;;  %v6684_v20 = vld [vmem:[#allocation4 + $0x268] sm:$0xff] }
 0xb4b   :  { %6753 = vmatpush1.bf16.msra.mxu1 %v6649_v12  ;;  %v6659_v12 = vld [vmem:[#allocation4 + $0x1a0] sm:$0xff] }
 0xb4c   :  { %6754 = vmatprep.subr.bf16.mxu1 %v6656_v61  ;;  %v6666_v61 = vld [vmem:[#allocation4 + $0x1d8] sm:$0xff] }
 0xb4d   :  { %6794 = vmatpush1.bf16.msra.mxu0 %v6651_v21  ;;  %v6689_v21 = vld [vmem:[#allocation4 + $0x290] sm:$0xff] }
 0xb4e   :  { %6795 = vmatprep.subr.bf16.mxu0 %v6658_v22  ;;  %v6696_v22 = vld [vmem:[#allocation4 + $0x2c8] sm:$0xff] }
 0xb4f   :  { %6755 = vmatpush1.bf16.msra.mxu1 %v6655_v13  ;;  %v6671_v13 = vld [vmem:[#allocation4 + $0x200] sm:$0xff] }
 0xb50   :  { %6756 = vmatprep.subr.bf16.mxu1 %v6662_v34  ;;  %v6678_v34 = vld [vmem:[#allocation4 + $0x238] sm:$0xff] }
 0xb51   :  { %6796 = vmatpush1.bf16.msra.mxu0 %v6657_v39  ;;  %v6701_v39 = vld [vmem:[#allocation4 + $0x2f0] sm:$0xff] }
 0xb52   :  { %6797 = vmatprep.subr.bf16.mxu0 %v6664_v24  ;;  %v6704_v24 = vld [vmem:[#allocation14 + $0x73] ss:$8 sm:$0xf] }
 0xb53   :  { %6757 = vmatpush1.bf16.msra.mxu1 %v6661_v54  ;;  %v6683_v54 = vld [vmem:[#allocation4 + $0x260] sm:$0xff] }
 0xb54   :  { %6758 = vmatprep.subr.bf16.mxu1 %v6668_v40  ;;  %v6690_v40 = vld [vmem:[#allocation4 + $0x298] sm:$0xff] }
 0xb55   :  { %6798 = vmatpush1.bf16.msra.mxu0 %v6663_v37 }
 0xb56   :  { %6799 = vmatprep.subr.bf16.mxu0 %v6670_v18 }
 0xb57   :  { %6759 = vmatpush1.bf16.msra.mxu1 %v6667_v23  ;;  %v6695_v23 = vld [vmem:[#allocation4 + $0x2c0] sm:$0xff] }
 0xb58   :  { %6760 = vmatprep.subr.bf16.mxu1 %v6674_v48  ;;  %v6702_v48 = vld [vmem:[#allocation4 + $0x2f8] sm:$0xff] }
 0xb59   :  { %6800 = vmatpush1.bf16.msra.mxu0 %v6669_v0 }
 0xb5a   :  { %6801 = vmatprep.subr.bf16.mxu0 %v6676_v41 }
 0xb5b   :  { %6761 = vmatpush1.bf16.msra.mxu1 %v6673_v35  ;;  %v6705_v35 = vld [vmem:[#allocation14 + $0x73] ss:$8 sm:$0x30] }
 0xb5c   :  { %6762 = vmatprep.subr.bf16.mxu1 %v6680_v25  ;;  %v6706_v25 = vor.u32 %v6705_v35, %v6704_v24 }
 0xb5d   :  { %6802 = vmatpush1.bf16.msra.mxu0 %v6675_v5 }
 0xb5e   :  { %6803 = vmatprep.subr.bf16.mxu0 %v6682_v38  ;;  %v6711_v37 = vrot.slane %v6706_v25, %v9378_v44  ;;  %v6715_v18 = vrot.slane %v6706_v25, %v9343_v19 }
 0xb5f   :  { %6763 = vmatpush1.bf16.msra.mxu1 %v6679_v16 }
 0xb60   :  { %6764 = vmatprep.subr.bf16.mxu1 %v6686_v33 }
 0xb61   :  { %6804 = vmatpush1.bf16.msra.mxu0 %v6681_v51 }
 0xb62   :  { %6805 = vmatprep.subr.bf16.mxu0 %v6688_v26 }
 0xb63   :  { %6765 = vmatpush1.bf16.msra.mxu1 %v6685_v43 }
 0xb64   :  { %6766 = vmatprep.subr.bf16.mxu1 %v6692_v45 }
 0xb65   :  { %6806 = vmatpush1.bf16.msra.mxu0 %v6687_v32 }
 0xb66   :  { %6807 = vmatprep.subr.bf16.mxu0 %v6694_v55  ;;  %v6727_v55 = vrot.slane %v6706_v25, %v9386_v49 }
 0xb67   :  { %6767 = vmatpush1.bf16.msra.mxu1 %v6691_v3  ;;  %v6719_v3 = vrot.slane %v6706_v25, %v9382_v47 }
 0xb68   :  { %6768 = vmatprep.subr.bf16.mxu1 %v6698_v17  ;;  %v6723_v17 = vrot.slane %v6706_v25, %v9395_v63 }
 0xb69   :  { %6808 = vmatpush1.bf16.msra.mxu0 %v6693_v31 }
 0xb6a   :  { %6809 = vmatprep.subr.bf16.mxu0 %v6700_v57 }
 0xb6b   :  { %6769 = vmatpush1.bf16.msra.mxu1 %v6697_v52 }
 0xb6c   :  { %6820 = vmatprep.subr.bf16.mxu1 %v6612_v60 }
 0xb6d   :  { %6810 = vmatpush1.bf16.msra.mxu0 %v6699_v14 }
 0xb6e   :  { %6771 = vmatmul.mubr.bf16.vlgmr.msra.gmra.mrb[48].mxu1 %v9581_v53 }
 0xb6f   :  { %6821 = vmatpush1.bf16.msra.mxu1 %v6611_v29  ;;  %6852 = vmatprep.mubr.bf16.mxu1 %v9574_v50  ;;  %v6635_v50 = vld [vmem:[#allocation4 + $0xe0] sm:$0xff]  ;;  %v6731_v29 = vrot.slane %v6706_v25, %v9405_v6 }
 0xb70   :  { %6822 = vmatprep.subr.bf16.mxu1 %v6618_v56  ;;  %6812 = vmatmul.mubr.bf16.vlgmr.msra.gmra.mrb[56].mxu0 %v9581_v53 }
 0xb73   :  { %6823 = vmatpush1.bf16.msra.mxu1 %v6617_v58 }
 0xb74   :  { %6824 = vmatprep.subr.bf16.mxu1 %v6624_v42 }
 0xb77   :  { %6825 = vmatpush1.bf16.msra.mxu1 %v6623_v1 }
 0xb78   :  { %6826 = vmatprep.subr.bf16.mxu1 %v6630_v36 }
 0xb7b   :  { %6827 = vmatpush1.bf16.msra.mxu1 %v6629_v28 }
 0xb7c   :  { %6828 = vmatprep.subr.bf16.mxu1 %v6636_v62 }
 0xb7f   :  { %6829 = vmatpush1.bf16.msra.mxu1 %v6635_v50 }
 0xb80   :  { %6830 = vmatprep.subr.bf16.mxu1 %v6642_v2 }
 0xb83   :  { %6831 = vmatpush1.bf16.msra.mxu1 %v6641_v8 }
 0xb84   :  { %6832 = vmatprep.subr.bf16.mxu1 %v6648_v46 }
 0xb87   :  { %6833 = vmatpush1.bf16.msra.mxu1 %v6647_v9 }
 0xb88   :  { %6834 = vmatprep.subr.bf16.mxu1 %v6654_v11 }
 0xb8b   :  { %6835 = vmatpush1.bf16.msra.mxu1 %v6653_v27 }
 0xb8c   :  { %6836 = vmatprep.subr.bf16.mxu1 %v6660_v10 }
 0xb8f   :  { %6837 = vmatpush1.bf16.msra.mxu1 %v6659_v12 }
 0xb90   :  { %6838 = vmatprep.subr.bf16.mxu1 %v6666_v61 }
 0xb93   :  { %6839 = vmatpush1.bf16.msra.mxu1 %v6665_v15 }
 0xb94   :  { %6840 = vmatprep.subr.bf16.mxu1 %v6672_v59 }
 0xb97   :  { %6841 = vmatpush1.bf16.msra.mxu1 %v6671_v13 }
 0xb98   :  { %6842 = vmatprep.subr.bf16.mxu1 %v6678_v34 }
 0xb9b   :  { %6843 = vmatpush1.bf16.msra.mxu1 %v6677_v30 }
 0xb9c   :  { %6844 = vmatprep.subr.bf16.mxu1 %v6684_v20 }
 0xb9f   :  { %6845 = vmatpush1.bf16.msra.mxu1 %v6683_v54 }
 0xba0   :  { %6846 = vmatprep.subr.bf16.mxu1 %v6690_v40 }
 0xba3   :  { %6847 = vmatpush1.bf16.msra.mxu1 %v6689_v21 }
 0xba4   :  { %6848 = vmatprep.subr.bf16.mxu1 %v6696_v22 }
 0xba7   :  { %6849 = vmatpush1.bf16.msra.mxu1 %v6695_v23 }
 0xba8   :  { %6850 = vmatprep.subr.bf16.mxu1 %v6702_v48 }
 0xbab   :  { %6851 = vmatpush1.bf16.msra.mxu1 %v6701_v39 }
 0xbae   :  { %6853 = vmatmul.mubr.bf16.vlgmr.msra.gmra.mrb[52].mxu1 %v9581_v53 }
 0xc41   :  { %v6772_v16 = vpop.f32.mrb[48].mxu1 }
 0xc42   :  { %v9589_v33 = vadd.f32 %v6772_v16, %v6711_v37  ;;  %v6774_v0 = vpop.f32.mrb[49].mxu1 }
 0xc43   :  { %v6775_v41 = vadd.f32 %v6774_v0, %v6715_v18  ;;  %v6776_v43 = vpop.f32.mrb[50].mxu1  ;;  %v6813_v51 = vpop.f32.mrb[56].mxu0 }
 0xc44   :  { %v6861_v45 = vmax.f32 %v9589_v33, 0.0  ;;  %v6777_v5 = vpop.f32.mrb[51].mxu1  ;;  %v9594_v26 = vadd.f32 %v6813_v51, %v6719_v3  ;;  %v6815_v44 = vpop.f32.mrb[57].mxu0 }
 0xc45   :  { %v6862_v38 = vmax.f32 %v6775_v41, 0.0  ;;  %v6816_v52 = vadd.f32 %v6815_v44, %v6723_v17  ;;  %v6817_v19 = vpop.f32.mrb[58].mxu0 }
 0xc46   :  { %v6863_v60 = vmax.f32 %v9594_v26, 0.0  ;;  %v6818_v53 = vpop.f32.mrb[59].mxu0 }
 0xc47   :  { %v6864_v32 = vmax.f32 %v6816_v52, 0.0 }
 0xc81   :  { %v6854_v56 = vpop.f32.mrb[52].mxu1 }
 0xc82   :  { %v9599_v31 = vadd.f32 %v6854_v56, %v6727_v55  ;;  %v6856_v47 = vpop.f32.mrb[53].mxu1 }
 0xc83   :  { %v9601_v57 = vadd.f32 %v6856_v47, %v6731_v29  ;;  %v6858_v63 = vpop.f32.mrb[54].mxu1 }
 0xc84   :  { %v6865_v58 = vmax.f32 %v9599_v31, 0.0  ;;  %v6859_v42 = vpop.f32.mrb[55].mxu1 }
 0xc85   :  { %v6866_v14 = vmax.f32 %v9601_v57, 0.0 }
 0xc86   :  { %9085 = dma.done.wait [#allocation7 + $0x3], 6144 }
 0xc87   :  { %9086 = vsyncadd [#allocation7 + $0x3], 4294961152  ;;  %7926 = vmatprep.subr.mxu0 %v9115_v4  ;;  %7928 = vmatprep.mubr.msk.f32.mxu0 %vm9116_vm1, %v9115_v4  ;;  %v6871_v49 = vpack.c.bf16 %v6862_v38, %v6862_v38  ;;  %v6884_v6 = vld [vmem:[#allocation5 + $0x40] sm:$0xff]  ;;  %v6924_v1 = vld [vmem:[#allocation14 + $0x40] sm:$0xff]  ;;  %v6873_v28 = vpack.c.bf16 %v6864_v32, %v6864_v32  ;;  %v6870_v0 = vpack.c.bf16 %v6861_v45, %v6861_v45 }
 0xc88   :  { %v6876_v36 = vld [vmem:[#allocation5] sm:$0xff]  ;;  %7831 = vmatprep.subr.bf16.mxu1 %v6884_v6  ;;  %7927 = vmatpush3.msra.mxu0 %v6924_v1  ;;  %v6885_v2 = vld [vmem:[#allocation5 + $0x48] sm:$0xff]  ;;  %v6886_v9 = vld [vmem:[#allocation5 + $0x50] sm:$0xff]  ;;  %v6875_v41 = vpack.c.bf16 %v6866_v14, %v6866_v14  ;;  %v6872_v5 = vpack.c.bf16 %v6863_v60, %v6863_v60  ;;  %v6874_v29 = vpack.c.bf16 %v6865_v58, %v6865_v58 }
 0xc89   :  { %7027 = vmatprep.mubr.bf16.mxu1 %v6871_v49  ;;  %v6900_v62 = vld [vmem:[#allocation5 + $0xc0] sm:$0xff]  ;;  %7832 = vmatpush3.bf16.msra.mxu1 %v6876_v36  ;;  %v6901_v8 = vld [vmem:[#allocation5 + $0xc8] sm:$0xff]  ;;  %v6902_v27 = vld [vmem:[#allocation5 + $0xd0] sm:$0xff] }
 0xc8a   :  { %v6892_v50 = vld [vmem:[#allocation5 + $0x80] sm:$0xff]  ;;  %7853 = vmatprep.subr.bf16.mxu0 %v6900_v62  ;;  %7929 = vmatmul.mubr.msk.f32.vlgmr.msra.gmra.mrb[60].mxu0 %vm4520_vm0, %v9351_v7  ;;  %v6877_v46 = vld [vmem:[#allocation5 + $0x8] sm:$0xff]  ;;  %v6878_v10 = vld [vmem:[#allocation5 + $0x10] sm:$0xff] }
 0xc8b   :  { %7833 = vmatprep.subr.bf16.mxu1 %v6885_v2  ;;  %7854 = vmatpush3.bf16.msra.mxu0 %v6892_v50  ;;  %v6893_v11 = vld [vmem:[#allocation5 + $0x88] sm:$0xff]  ;;  %v6887_v12 = vld [vmem:[#allocation5 + $0x58] sm:$0xff]  ;;  %v6894_v61 = vld [vmem:[#allocation5 + $0x90] sm:$0xff] }
 0xc8c   :  { %7067 = vmatprep.mubr.bf16.mxu0 %v6873_v28  ;;  %7855 = vmatprep.subr.bf16.mxu0 %v6901_v8  ;;  %v6903_v15 = vld [vmem:[#allocation5 + $0xd8] sm:$0xff]  ;;  %v6888_v7 = vld [vmem:[#allocation5 + $0x60] sm:$0xff]  ;;  %v6889_v20 = vld [vmem:[#allocation5 + $0x68] sm:$0xff] }
 0xc8d   :  { %7834 = vmatpush3.bf16.msra.mxu1 %v6877_v46  ;;  %v6879_v59 = vld [vmem:[#allocation5 + $0x18] sm:$0xff]  ;;  %v6904_v34 = vld [vmem:[#allocation5 + $0xe0] sm:$0xff]  ;;  %v6905_v40 = vld [vmem:[#allocation5 + $0xe8] sm:$0xff] }
 0xc8e   :  { %7835 = vmatprep.subr.bf16.mxu1 %v6886_v9  ;;  %v6895_v13 = vld [vmem:[#allocation5 + $0x98] sm:$0xff]  ;;  %v6880_v30 = vld [vmem:[#allocation5 + $0x20] sm:$0xff]  ;;  %v6881_v21 = vld [vmem:[#allocation5 + $0x28] sm:$0xff] }
 0xc8f   :  { %7856 = vmatpush3.bf16.msra.mxu0 %v6893_v11  ;;  %v6896_v54 = vld [vmem:[#allocation5 + $0xa0] sm:$0xff]  ;;  %v6890_v22 = vld [vmem:[#allocation5 + $0x70] sm:$0xff]  ;;  %v6897_v23 = vld [vmem:[#allocation5 + $0xa8] sm:$0xff] }
 0xc90   :  { %7857 = vmatprep.subr.bf16.mxu0 %v6902_v27  ;;  %v6906_v48 = vld [vmem:[#allocation5 + $0xf0] sm:$0xff]  ;;  %v6891_v24 = vld [vmem:[#allocation5 + $0x78] sm:$0xff]  ;;  %v6916_v18 = vld [vmem:[#allocation5 + $0x140] sm:$0xff] }
 0xc91   :  { %7836 = vmatpush3.bf16.msra.mxu1 %v6878_v10  ;;  %v6882_v39 = vld [vmem:[#allocation5 + $0x30] sm:$0xff]  ;;  %v6907_v25 = vld [vmem:[#allocation5 + $0xf8] sm:$0xff]  ;;  %v6908_v43 = vld [vmem:[#allocation5 + $0x100] sm:$0xff] }
 0xc92   :  { %7837 = vmatprep.subr.bf16.mxu1 %v6887_v12  ;;  %v6898_v35 = vld [vmem:[#allocation5 + $0xb0] sm:$0xff]  ;;  %v6883_v37 = vld [vmem:[#allocation5 + $0x38] sm:$0xff]  ;;  %v6917_v38 = vld [vmem:[#allocation5 + $0x148] sm:$0xff] }
 0xc93   :  { %7858 = vmatpush3.bf16.msra.mxu0 %v6894_v61  ;;  %v6899_v16 = vld [vmem:[#allocation5 + $0xb8] sm:$0xff]  ;;  %v6909_v33 = vld [vmem:[#allocation5 + $0x108] sm:$0xff]  ;;  %v6918_v45 = vld [vmem:[#allocation5 + $0x150] sm:$0xff] }
 0xc94   :  { %7859 = vmatprep.subr.bf16.mxu0 %v6903_v15  ;;  %v6910_v3 = vld [vmem:[#allocation5 + $0x110] sm:$0xff]  ;;  %v6919_v17 = vld [vmem:[#allocation5 + $0x158] sm:$0xff]  ;;  %v6920_v44 = vld [vmem:[#allocation5 + $0x160] sm:$0xff] }
 0xc95   :  { %7838 = vmatpush3.bf16.msra.mxu1 %v6879_v59  ;;  %v6911_v51 = vld [vmem:[#allocation5 + $0x118] sm:$0xff]  ;;  %v6912_v26 = vld [vmem:[#allocation5 + $0x120] sm:$0xff]  ;;  %v6921_v52 = vld [vmem:[#allocation5 + $0x168] sm:$0xff] }
 0xc96   :  { %7839 = vmatprep.subr.bf16.mxu1 %v6888_v7  ;;  %v6913_v19 = vld [vmem:[#allocation5 + $0x128] sm:$0xff]  ;;  %v6922_v60 = vld [vmem:[#allocation5 + $0x170] sm:$0xff]  ;;  %v6923_v32 = vld [vmem:[#allocation5 + $0x178] sm:$0xff] }
 0xc97   :  { %7860 = vmatpush3.bf16.msra.mxu0 %v6895_v13  ;;  %v6914_v53 = vld [vmem:[#allocation5 + $0x130] sm:$0xff]  ;;  %v6915_v55 = vld [vmem:[#allocation5 + $0x138] sm:$0xff] }
 0xc98   :  { %7861 = vmatprep.subr.bf16.mxu0 %v6904_v34  ;;  %v7115_v9 = vld [vmem:[#allocation14 + $0xa3] ss:$0 sm:$0xff] }
 0xc99   :  { %7840 = vmatpush3.bf16.msra.mxu1 %v6880_v30 }
 0xc9a   :  { %7841 = vmatprep.subr.bf16.mxu1 %v6889_v20 }
 0xc9b   :  { %7862 = vmatpush3.bf16.msra.mxu0 %v6896_v54 }
 0xc9c   :  { %7863 = vmatprep.subr.bf16.mxu0 %v6905_v40 }
 0xc9d   :  { %7842 = vmatpush3.bf16.msra.mxu1 %v6881_v21 }
 0xc9e   :  { %7843 = vmatprep.subr.bf16.mxu1 %v6890_v22 }
 0xc9f   :  { %7864 = vmatpush3.bf16.msra.mxu0 %v6897_v23 }
 0xca0   :  { %7865 = vmatprep.subr.bf16.mxu0 %v6906_v48 }
 0xca1   :  { %7844 = vmatpush3.bf16.msra.mxu1 %v6882_v39 }
 0xca2   :  { %7845 = vmatprep.subr.bf16.mxu1 %v6891_v24 }
 0xca3   :  { %7866 = vmatpush3.bf16.msra.mxu0 %v6898_v35 }
 0xca4   :  { %7867 = vmatprep.subr.bf16.mxu0 %v6907_v25 }
 0xca5   :  { %7846 = vmatpush3.bf16.msra.mxu1 %v6883_v37 }
 0xca6   :  { %7875 = vmatprep.subr.bf16.mxu1 %v6916_v18 }
 0xca7   :  { %7868 = vmatpush3.bf16.msra.mxu0 %v6899_v16 }
 0xca8   :  { %7028 = vmatmul.mubr.bf16.vlgmr.msra.gmra.mrb[56].mxu1 %v6870_v0 }
 0xca9   :  { %7876 = vmatpush3.bf16.msra.mxu1 %v6908_v43  ;;  %7107 = vmatprep.mubr.bf16.mxu1 %v6875_v41 }
 0xcaa   :  { %7068 = vmatmul.mubr.bf16.vlgmr.msra.gmra.mrb[64].mxu0 %v6872_v5  ;;  %7877 = vmatprep.subr.bf16.mxu1 %v6917_v38 }
 0xcad   :  { %7878 = vmatpush3.bf16.msra.mxu1 %v6909_v33 }
 0xcae   :  { %7879 = vmatprep.subr.bf16.mxu1 %v6918_v45 }
 0xcb1   :  { %7880 = vmatpush3.bf16.msra.mxu1 %v6910_v3 }
 0xcb2   :  { %7881 = vmatprep.subr.bf16.mxu1 %v6919_v17 }
 0xcb5   :  { %7882 = vmatpush3.bf16.msra.mxu1 %v6911_v51 }
 0xcb6   :  { %7883 = vmatprep.subr.bf16.mxu1 %v6920_v44 }
 0xcb9   :  { %7884 = vmatpush3.bf16.msra.mxu1 %v6912_v26 }
 0xcba   :  { %7885 = vmatprep.subr.bf16.mxu1 %v6921_v52 }
 0xcbd   :  { %7886 = vmatpush3.bf16.msra.mxu1 %v6913_v19 }
 0xcbe   :  { %7887 = vmatprep.subr.bf16.mxu1 %v6922_v60 }
 0xcc1   :  { %7888 = vmatpush3.bf16.msra.mxu1 %v6914_v53 }
 0xcc2   :  { %7889 = vmatprep.subr.bf16.mxu1 %v6923_v32 }
 0xcc5   :  { %7890 = vmatpush3.bf16.msra.mxu1 %v6915_v55 }
 0xcc8   :  { %7108 = vmatmul.mubr.bf16.vlgmr.msra.gmra.mrb[60].mxu1 %v6874_v29 }
 0xd5d   :  { %v6991_v56 = vpop.f32.mrb[60].mxu0 }
 0xd5e   :  { %v7930_v47 = vpop.f32.mrb[61].mxu0 }
 0xd7b   :  { %v7847_v57 = vpop.f32.mrb[56].mxu1 }
 0xd7c   :  { %v7848_v63 = vpop.f32.mrb[57].mxu1 }
 0xd7d   :  { %v7849_v42 = vadd.f32 %v7848_v63, %v7847_v57  ;;  %v7850_v14 = vpop.f32.mrb[58].mxu1  ;;  %v7869_v49 = vpop.f32.mrb[64].mxu0 }
 0xd7e   :  { %v7851_v6 = vpop.f32.mrb[59].mxu1  ;;  %v7870_v1 = vpop.f32.mrb[65].mxu0 }
 0xd7f   :  { %v7030_v36 = vadd.f32 %v7849_v42, %v6991_v56  ;;  %v7871_v28 = vadd.f32 %v7870_v1, %v7869_v49  ;;  %v7872_v62 = vpop.f32.mrb[66].mxu0 }
 0xd80   :  { %v7873_v50 = vpop.f32.mrb[67].mxu0 }
 0xd81   :  { %v7070_v2 = vadd.f32 %v7871_v28, %v7030_v36 }
 0xd9b   :  { %v7891_v8 = vpop.f32.mrb[60].mxu1 }
 0xd9c   :  { %v7892_v31 = vpop.f32.mrb[61].mxu1 }
 0xd9d   :  { %v7893_v46 = vadd.f32 %v7892_v31, %v7891_v8  ;;  %v7894_v58 = vpop.f32.mrb[62].mxu1 }
 0xd9e   :  { %v7895_v11 = vpop.f32.mrb[63].mxu1 }
 0xd9f   :  { %v7110_v27 = vadd.f32 %v7893_v46, %v7070_v2 }
 0xda1   :  { %v7116_v10 = vadd.f32 %v7115_v9, %v7110_v27 }
 0xda3   :  { %v7117_v12 = vmax.f32 %v7116_v10, 0.0 }
 0xda4   :  { %9087 = dma.done.wait [#allocation7 + $0x4], 1024 }
 0xda5   :  { %9088 = vsyncadd [#allocation7 + $0x4], 4294966272  ;;  %7931 = vmatprep.subr.bf16.mxu0 %v9115_v4  ;;  %7947 = vmatprep.mubr.msk.bf16.mxu0 %vm9116_vm1, %v9115_v4  ;;  %v7123_v61 = vld [vmem:[#allocation6] sm:$0xff]  ;;  %v7124_v15 = vld [vmem:[#allocation6 + $0x8] sm:$0xff]  ;;  %v7122_v54 = vpack.c.bf16 %v7117_v12, %v7117_v12  ;;  %s9120_s8 = smov [#allocation16]  }
 0xda6   :  { %7932 = vmatpush3.bf16.msra.mxu0 %v7123_v61  ;;  %v7125_v59 = vld [vmem:[#allocation6 + $0x10] sm:$0xff]  ;;  %v7126_v7 = vld [vmem:[#allocation6 + $0x18] sm:$0xff]  ;;  %v7127_v13 = vld [vmem:[#allocation6 + $0x20] sm:$0xff]  ;;  %s7180_s14 = sshll.u32 %s9120_s8, 4  ;;  %s7181_s14 = int_to_ptr.vmem [resolvable:$true] %s7180_s14 }
 0xda7   :  { %7933 = vmatprep.subr.bf16.mxu0 %v9115_v4  ;;  %v7128_v34 = vld [vmem:[#allocation6 + $0x28] sm:$0xff]  ;;  %v7129_v30 = vld [vmem:[#allocation6 + $0x30] sm:$0xff]  ;;  %v7130_v20 = vld [vmem:[#allocation6 + $0x38] sm:$0xff]  ;;  %s9051_s5 = scalar_lea.vmem %s7181_s14, 128  ;;  %p9056_p7 = scmp.lt.s32.totalorder %s7181_s14, %s7181_s14 }
 0xda8   :  { %v7131_v40 = vld [vmem:[#allocation14 + $0xab] ss:$0 sm:$0xff]  ;;  %p9052_p6 = scmp.ne.s32.totalorder %s7181_s14, %s9051_s5  ;;  %p9057_p8 = scmp.lt.s32.totalorder %s9051_s5, %s9051_s5 }
 0xdaa   :  { %7934 = vmatpush3.bf16.msra.mxu0 %v7124_v15  ;;  %p9058_p9 = por %p9057_p8, %p9056_p7 }
 0xdab   :  { %7935 = vmatprep.subr.bf16.mxu0 %v9115_v4 }
 0xdac   :  { %p9059_p10 = pnand %p9058_p9, %p9052_p6 }
 0xdae   :  { %7936 = vmatpush3.bf16.msra.mxu0 %v7125_v59 }
 0xdaf   :  { %7937 = vmatprep.subr.bf16.mxu0 %v9115_v4 }
 0xdb2   :  { %7938 = vmatpush3.bf16.msra.mxu0 %v7126_v7 }
 0xdb3   :  { %7939 = vmatprep.subr.bf16.mxu0 %v9115_v4 }
 0xdb6   :  { %7940 = vmatpush3.bf16.msra.mxu0 %v7127_v13 }
 0xdb7   :  { %7941 = vmatprep.subr.bf16.mxu0 %v9115_v4 }
 0xdba   :  { %7942 = vmatpush3.bf16.msra.mxu0 %v7128_v34 }
 0xdbb   :  { %7943 = vmatprep.subr.bf16.mxu0 %v9115_v4 }
 0xdbe   :  { %7944 = vmatpush3.bf16.msra.mxu0 %v7129_v30 }
 0xdbf   :  { %7945 = vmatprep.subr.bf16.mxu0 %v9115_v4 }
 0xdc2   :  { %7946 = vmatpush3.bf16.msra.mxu0 %v7130_v20 }
 0xdc5   :  { %7948 = vmatmul.mubr.bf16.vlgmr.msra.gmra.mrb[68].mxu0 %v7122_v54 }
 0xe98   :  { %v7166_v21 = vpop.f32.mrb[68].mxu0 }
 0xe99   :  { %v7167_v22 = vadd.f32 %v7166_v21, %v7131_v40  ;;  %v7949_v23 = vpop.f32.mrb[69].mxu0 }
 0xe9a   :  { %v7169_v48 = vpop.f32.mrb[70].mxu0 }
 0xe9b   :  { %v7172_v39 = vmax.f32 %v7167_v22, 0.0  ;;  %v7950_v24 = vpop.f32.mrb[71].mxu0 }
 0xe9d   :  { %7173 = vst [vmem:[#allocation16] sm:$0xff] %v7172_v39 }
 0xe9e   :  { %9062 = shalt.err (!%p9059_p10)
}
 0xe9f   :  { %s9063_s16 = scalar_lea.hbm %s9653_s9, 128 }
 0xea0   :  { %p9064_p11 = scmp.ne.s32.totalorder %s9653_s9, %s9063_s16  ;;  %p9067_p12 = scmp.lt.u32.totalorder %s9063_s16, %s9653_s9 }
 0xea2   :  { %p9069_p13 = pnand %p9067_p12, %p9064_p11 }
 0xea4   :  { %9072 = shalt.err (!%p9069_p13)
}
 0xea5   :  { %7183 = dma.vmem_to_hbm [thread:$0]  %s7181_s14, 128, %s9653_s9, [#allocation10]  }
 0xea6   :  { %9089 = dma.done.wait [#allocation10], 128  }
 0xea7   :  { %9090 = vsyncadd [#allocation10], 4294967168 }
 0xea8   :  { %7187 = vsyncpa [#allocation9], 1 }
 0xea9   :  { %7188 = vsyncpa [#allocation12], 1 }
 0xeaa   :  { %7189 = vsyncpa [#allocation15], 1 }
 0xeab   :  { %7190 = vsyncpa [#allocation10], 1 }
 0xeac   :  { %7191 = vsyncmov [#allocation7] }
 0xeaf   :  { %s7192_s21 = vpop.sfrf %7191 }
 0xeb0   :  { %p7816_p0 = scmp.ne.s32.totalorder %s7192_s21, 0 }
 0xeb2   :  { %7196 = shalt.err (%p7816_p0)  }
 0xeb3   :  { %7198 = vsyncmov [#allocation7 + $0x1] }
 0xeb6   :  { %s7199_s12 = vpop.sfrf %7198 }
 0xeb7   :  { %p7817_p1 = scmp.ne.s32.totalorder %s7199_s12, 0 }
 0xeb9   :  { %7203 = shalt.err (%p7817_p1)  }
 0xeba   :  { %7205 = vsyncmov [#allocation7 + $0x2] }
 0xebd   :  { %s7206_s22 = vpop.sfrf %7205 }
 0xebe   :  { %p7818_p2 = scmp.ne.s32.totalorder %s7206_s22, 0 }
 0xec0   :  { %7210 = shalt.err (%p7818_p2)  }
 0xec1   :  { %7212 = vsyncmov [#allocation7 + $0x3] }
 0xec4   :  { %s7213_s9 = vpop.sfrf %7212 }
 0xec5   :  { %p7819_p3 = scmp.ne.s32.totalorder %s7213_s9, 0 }
 0xec7   :  { %7217 = shalt.err (%p7819_p3)  }
 0xec8   :  { %7219 = vsyncmov [#allocation7 + $0x4] }
 0xecb   :  { %s7220_s23 = vpop.sfrf %7219 }
 0xecc   :  { %p7820_p4 = scmp.ne.s32.totalorder %s7220_s23, 0 }
 0xece   :  { %7224 = shalt.err (%p7820_p4)  }

</bundles_post_ra>
